<compile_context>
chip_gen: v7x
topology: tpu7x:2x2x1
jax: 0.10.0
libtpu: 0.0.40
codegen_flags: <defaults>
</compile_context>

<pallas_src>
import math

import jax
import jax.numpy as jnp
from jax import lax
from jax.experimental import pallas as pl
from jax.experimental.pallas import tpu as pltpu

# ----------------------- configuration (mirrors __init__) -----------------------
C, H, W = 3, 16, 16                 # small spatial size for the demo
B = 2
HW = H * W
FEAT_IN = C * HW                    # flattened image fed to the synthetic backbone
HIDDEN = 512                        # stands in for resnet18.fc.in_features
N_AUG = 11 + 19 + 19 + 1            # = 50 augmentations (define_augmentations)

MEAN = (0.485, 0.456, 0.406)        # kornia normalize/denormalize constants
STD = (0.229, 0.224, 0.225)


# ------------------------------ in-kernel helpers ------------------------------
def _roll_lanes(x, shift):
    """Circular roll along the last (lane) axis with a static shift."""
    n = x.shape[-1]
    s = shift % n
    if s == 0:
        return x
    left = lax.slice_in_dim(x, n - s, n, axis=1)
    right = lax.slice_in_dim(x, 0, n - s, axis=1)
    return lax.concatenate([left, right], dimension=1)


def _box_blur3(img):
    # 3x3 box blur computed directly in the lane-dense (C, H*W) layout.
    # TODO(synk): circular (flattened-roll) boundary instead of replicate padding.
    acc = img
    for dh in (-1, 0, 1):
        for dw in (-1, 0, 1):
            if dh == 0 and dw == 0:
                continue
            acc = acc + _roll_lanes(img, dh * W + dw)
    return acc * (1.0 / 9.0)


def _gray(img):
    g = 0.299 * img[0:1, :] + 0.587 * img[1:2, :] + 0.114 * img[2:3, :]
    return jnp.broadcast_to(g, img.shape)


def _hue_rotate(img, u):
    # Rotation of the IQ chroma plane; u (~tan(theta/2)) parameterises the
    # rotation rationally to avoid in-kernel sin/cos.
    r, g, b = img[0:1, :], img[1:2, :], img[2:3, :]
    y = 0.299 * r + 0.587 * g + 0.114 * b
    i_ = 0.596 * r - 0.274 * g - 0.322 * b
    q = 0.211 * r - 0.523 * g + 0.312 * b
    denom = 1.0 + u * u
    c = (1.0 - u * u) / denom
    s = (2.0 * u) / denom
    i2 = c * i_ - s * q
    q2 = s * i_ + c * q
    r2 = y + 0.956 * i2 + 0.621 * q2
    g2 = y - 0.272 * i2 - 0.647 * q2
    b2 = y - 1.106 * i2 + 1.703 * q2
    return jnp.clip(jnp.concatenate([r2, g2, b2], axis=0), 0.0, 1.0)


def _apply_augment(i, img, blur, diff, m):
    """Non-collapsed augment index i (static); img/blur/diff: (C, H*W); m: scalar."""
    if i == 2:    # saturation, max 5
        gray = _gray(img)
        return jnp.clip(gray + (1.0 + m * 5.0) * (img - gray), 0.0, 1.0)
    if i == 3:    # contrast, max 3
        mean = jnp.mean(img)
        return jnp.clip(mean + (1.0 + m * 3.0) * (img - mean), 0.0, 1.0)
    if i == 4:    # sharpness, max 10
        return jnp.clip(blur + (1.0 + m * 10.0) * diff, 0.0, 1.0)
    if i == 5:    # brightness, max 0.6
        return jnp.clip(img + m * 0.6, 0.0, 1.0)
    if i == 6:    # auto_contrast (magnitude unused in the original)
        mn = jnp.min(img, axis=1, keepdims=True)
        mx = jnp.max(img, axis=1, keepdims=True)
        return (img - mn) / (mx - mn + 1e-6)
    if i == 7:    # hue, max 2
        return _hue_rotate(img, m * 2.0)
    if i == 9:    # invert
        return 1.0 - img
    if i == 10:   # gamma, max 3   (gamma = 3 ** m)
        gamma = jnp.exp(m * math.log(3.0))
        return jnp.clip(jnp.exp(gamma * jnp.log(jnp.maximum(img, 1e-6))), 0.0, 1.0)
    raise ValueError(f"unexpected augment index {i}")


# ================================ fused kernel ================================
def _dyntta_kernel(xf_ref, x_ref, w1_ref, b1_ref, w2_ref, b2_ref,
                   o_ref, mag_ref, wts_ref):
    # ---------------- backbone head: flatten -> MLP -> mags / softmax weights ----------------
    xf = xf_ref[0]                                                    # (1, FEAT_IN) bf16
    h = jnp.dot(xf, w1_ref[...], preferred_element_type=jnp.float32) + b1_ref[...]
    h = jnp.maximum(h, 0.0)                                           # ReLU
    head = jnp.dot(h.astype(w2_ref.dtype), w2_ref[...],
                   preferred_element_type=jnp.float32) + b2_ref[...]  # (1, 2*N_AUG)
    mags = head[:, :N_AUG]                                            # (1, N_AUG)
    logits = head[:, N_AUG:]                                          # (1, N_AUG)
    mmax = jnp.max(logits, axis=1, keepdims=True)
    e = jnp.exp(logits - mmax)
    wts = e / jnp.sum(e, axis=1, keepdims=True)                       # softmax (dim=1)
    mag_ref[0] = mags
    wts_ref[0] = wts

    # ---------------- augmentation layer (lane-dense (C, H*W) layout) ----------------
    x = x_ref[0]                                                      # (C, HW) normalized input
    # kornia.denormalize + clamp (per-channel python-float constants, no captured arrays)
    img = jnp.concatenate(
        [jnp.clip(x[c:c + 1, :] * STD[c] + MEAN[c], 0.0, 1.0) for c in range(C)], axis=0)
    blur = _box_blur3(img)                  # shared by sharpness / lpf / hpf
    diff = img - blur

    # Collapsed linear groups (exact algebra, no per-pixel pass per augment):
    #   identities i in {0,1,8,49}  -> (sum w_i) * img
    #   lpf i in 11..29 (blur + c_i*diff) -> (sum w_i)*blur + (sum w_i*c_i)*diff
    # TODO(synk): rotate(0)/scale(1) need a spatial warp, equalize(8) needs histograms,
    #             URIE(49) needs the SKUNet weights; all treated as identity.
    # TODO(synk): FFT lpf/hpf replaced by box-blur low/high-pass approximations.
    idx = lax.broadcasted_iota(jnp.int32, (1, N_AUG), 1)
    idf = idx.astype(jnp.float32)
    id_mask = (idx == 0) | (idx == 1) | (idx == 8) | (idx == 49)
    lpf_mask = (idx >= 11) & (idx <= 29)
    s_id = jnp.sum(jnp.where(id_mask, wts, 0.0))
    s_lpf = jnp.sum(jnp.where(lpf_mask, wts, 0.0))
    t_lpf = jnp.sum(jnp.where(lpf_mask, wts * ((idf - 10.0) * 0.05), 0.0))
    acc = s_id * img + s_lpf * blur + t_lpf * diff

    # Remaining non-linear augments, individually weighted with scalar wts/mags.
    for i in (2, 3, 4, 5, 6, 7, 9, 10):
        acc = acc + wts[0, i] * _apply_augment(i, img, blur, diff, mags[0, i])
    for i in range(30, 49):                  # hpf(cutoff = (i-29)*0.05)
        cutoff = (i - 29) * 0.05
        aug = jnp.clip(diff * (1.0 - cutoff) + 0.5, 0.0, 1.0)
        acc = acc + wts[0, i] * aug

    out = jnp.clip(acc, 0.0, 1.0)
    # kornia.normalize
    o_ref[0] = jnp.concatenate(
        [(out[c:c + 1, :] - MEAN[c]) * (1.0 / STD[c]) for c in range(C)], axis=0)


# ================================== wrapper ==================================
def dyntta_forward(x, params):
    b, c, h, w = x.shape
    hw = h * w
    feat = c * hw
    xf = x.reshape(b, 1, feat).astype(jnp.bfloat16)    # features for the synthetic head
    x2 = x.reshape(b, c, hw)                           # lane-dense image layout

    out2, mags, wts = pl.pallas_call(
        _dyntta_kernel,
        grid=(b,),
        in_specs=[
            pl.BlockSpec((1, 1, feat), lambda i: (i, 0, 0)),        # flattened features
            pl.BlockSpec((1, c, hw), lambda i: (i, 0, 0)),          # image (C, H*W)
            pl.BlockSpec((feat, HIDDEN), lambda i: (0, 0)),         # w1 (bf16)
            pl.BlockSpec((1, HIDDEN), lambda i: (0, 0)),            # b1
            pl.BlockSpec((HIDDEN, 2 * N_AUG), lambda i: (0, 0)),    # fused w2 (bf16)
            pl.BlockSpec((1, 2 * N_AUG), lambda i: (0, 0)),         # fused b2
        ],
        out_specs=(
            pl.BlockSpec((1, c, hw), lambda i: (i, 0, 0)),
            pl.BlockSpec((1, 1, N_AUG), lambda i: (i, 0, 0)),
            pl.BlockSpec((1, 1, N_AUG), lambda i: (i, 0, 0)),
        ),
        out_shape=(
            jax.ShapeDtypeStruct((b, c, hw), jnp.float32),
            jax.ShapeDtypeStruct((b, 1, N_AUG), jnp.float32),
            jax.ShapeDtypeStruct((b, 1, N_AUG), jnp.float32),
        ),
        compiler_params=pltpu.CompilerParams(
            dimension_semantics=("parallel",)),
    )(xf, x2, params["w1"], params["b1"], params["w2"], params["b2"])

    return out2.reshape(b, c, h, w), mags[:, 0, :], wts[:, 0, :]


# ==================================== main ====================================
if __name__ == "__main__":
    key = jax.random.PRNGKey(0)
    k_img, k1, k2, k3, k4 = jax.random.split(key, 5)

    # image-like input, normalized the way DynTTA expects its input
    raw = jax.random.uniform(k_img, (B, C, H, W), jnp.float32)
    mean4 = jnp.asarray(MEAN, jnp.float32).reshape(1, C, 1, 1)
    std4 = jnp.asarray(STD, jnp.float32).reshape(1, C, 1, 1)
    x = (raw - mean4) / std4

    # deterministic synthetic parameters for the backbone head
    # (single fused fc producing 2*N_AUG outputs, as in the original module)
    params = {
        "w1": (jax.random.normal(k1, (FEAT_IN, HIDDEN), jnp.float32) * 0.02).astype(jnp.bfloat16),
        "b1": jax.random.normal(k2, (1, HIDDEN), jnp.float32) * 0.01,
        "w2": (jax.random.normal(k3, (HIDDEN, 2 * N_AUG), jnp.float32) * 0.02).astype(jnp.bfloat16),
        "b2": jax.random.normal(k4, (1, 2 * N_AUG), jnp.float32) * 0.01,
    }

    out, mags, wts = jax.jit(dyntta_forward)(x, params)
    jax.block_until_ready((out, mags, wts))

    assert out.shape == (B, C, H, W)
    assert mags.shape == (B, N_AUG)
    assert wts.shape == (B, N_AUG)
    assert bool(jnp.all(jnp.isfinite(out)))
    # softmax rows sum to 1
    assert bool(jnp.allclose(jnp.sum(wts, axis=1), 1.0, atol=1e-5))

    print("KERNEL_OK")
</pallas_src>

<mosaic_0001>
module attributes {stable_mosaic.version = 11 : i64} {
  func.func @_dyntta_kernel(%arg0: i32, %arg1: memref<1x1x768xbf16, #tpu.memory_space<vmem>>, %arg2: memref<1x3x256xf32, #tpu.memory_space<vmem>>, %arg3: memref<768x512xbf16, #tpu.memory_space<vmem>>, %arg4: memref<1x512xf32, #tpu.memory_space<vmem>>, %arg5: memref<512x100xbf16, #tpu.memory_space<vmem>>, %arg6: memref<1x100xf32, #tpu.memory_space<vmem>>, %arg7: memref<1x3x256xf32, #tpu.memory_space<vmem>>, %arg8: memref<1x1x50xf32, #tpu.memory_space<vmem>>, %arg9: memref<1x1x50xf32, #tpu.memory_space<vmem>>) attributes {dimension_semantics = [#tpu.dimension_semantics<parallel>], iteration_bounds = array<i64: 2>, scalar_prefetch = 0 : i64, scratch_operands = 0 : i64, tpu.core_type = #tpu.core_type<tc>, window_params = [{transform_indices = @transform_0, window_bounds = array<i64: 1, 1, 768>}, {transform_indices = @transform_1, window_bounds = array<i64: 1, 3, 256>}, {pipeline_mode = #tpu.pipeline_mode<synchronous>, transform_indices = @transform_2, window_bounds = array<i64: 768, 512>}, {pipeline_mode = #tpu.pipeline_mode<synchronous>, transform_indices = @transform_3, window_bounds = array<i64: 1, 512>}, {pipeline_mode = #tpu.pipeline_mode<synchronous>, transform_indices = @transform_4, window_bounds = array<i64: 512, 100>}, {pipeline_mode = #tpu.pipeline_mode<synchronous>, transform_indices = @transform_5, window_bounds = array<i64: 1, 100>}, {transform_indices = @transform_6, window_bounds = array<i64: 1, 3, 256>}, {transform_indices = @transform_7, window_bounds = array<i64: 1, 1, 50>}, {transform_indices = @transform_8, window_bounds = array<i64: 1, 1, 50>}]} {
    %c0 = arith.constant 0 : index
    %c0_0 = arith.constant 0 : index
    %c0_1 = arith.constant 0 : index
    %0 = vector.load %arg1[%c0, %c0_0, %c0_1] : memref<1x1x768xbf16, #tpu.memory_space<vmem>>, vector<1x1x768xbf16>
    %1 = vector.shape_cast %0 : vector<1x1x768xbf16> to vector<1x768xbf16>
    %c0_2 = arith.constant 0 : index
    %c0_3 = arith.constant 0 : index
    %2 = vector.load %arg3[%c0_2, %c0_3] : memref<768x512xbf16, #tpu.memory_space<vmem>>, vector<768x512xbf16>
    %cst = arith.constant dense<0.000000e+00> : vector<1x512xf32>
    %3 = tpu.matmul %1, %2, %cst {dimension_numbers = #tpu.dot_dimension_numbers<[1], [0], [0], [1], [0, 0, 1, 1], [], []>} : vector<1x768xbf16>, vector<768x512xbf16>, vector<1x512xf32> -> vector<1x512xf32>
    %c0_4 = arith.constant 0 : index
    %c0_5 = arith.constant 0 : index
    %4 = vector.load %arg4[%c0_4, %c0_5] : memref<1x512xf32, #tpu.memory_space<vmem>>, vector<1x512xf32>
    %5 = arith.addf %3, %4 : vector<1x512xf32>
    %cst_6 = arith.constant 0.000000e+00 : f32
    %6 = vector.broadcast %cst_6 : f32 to vector<1x512xf32>
    %7 = arith.maximumf %5, %6 : vector<1x512xf32>
    %8 = arith.truncf %7 : vector<1x512xf32> to vector<1x512xbf16>
    %c0_7 = arith.constant 0 : index
    %c0_8 = arith.constant 0 : index
    %9 = vector.load %arg5[%c0_7, %c0_8] : memref<512x100xbf16, #tpu.memory_space<vmem>>, vector<512x100xbf16>
    %cst_9 = arith.constant dense<0.000000e+00> : vector<1x100xf32>
    %10 = tpu.matmul %8, %9, %cst_9 {dimension_numbers = #tpu.dot_dimension_numbers<[1], [0], [0], [1], [0, 0, 1, 1], [], []>} : vector<1x512xbf16>, vector<512x100xbf16>, vector<1x100xf32> -> vector<1x100xf32>
    %c0_10 = arith.constant 0 : index
    %c0_11 = arith.constant 0 : index
    %11 = vector.load %arg6[%c0_10, %c0_11] : memref<1x100xf32, #tpu.memory_space<vmem>>, vector<1x100xf32>
    %12 = arith.addf %10, %11 : vector<1x100xf32>
    %13 = vector.extract_strided_slice %12 {offsets = [0, 0], sizes = [1, 50], strides = [1, 1]} : vector<1x100xf32> to vector<1x50xf32>
    %14 = vector.extract_strided_slice %12 {offsets = [0, 50], sizes = [1, 50], strides = [1, 1]} : vector<1x100xf32> to vector<1x50xf32>
    %cst_12 = arith.constant dense<0xFF800000> : vector<1xf32>
    %15 = vector.multi_reduction <maximumf>, %14, %cst_12 [1] : vector<1x50xf32> to vector<1xf32>
    %16 = vector.shape_cast %15 : vector<1xf32> to vector<1x1xf32>
    %17 = vector.broadcast %16 : vector<1x1xf32> to vector<1x50xf32>
    %18 = arith.subf %14, %17 : vector<1x50xf32>
    %19 = math.exp %18 : vector<1x50xf32>
    %cst_13 = arith.constant dense<0.000000e+00> : vector<1xf32>
    %20 = vector.multi_reduction <add>, %19, %cst_13 [1] : vector<1x50xf32> to vector<1xf32>
    %21 = vector.shape_cast %20 : vector<1xf32> to vector<1x1xf32>
    %22 = vector.broadcast %21 : vector<1x1xf32> to vector<1x50xf32>
    %23 = arith.divf %19, %22 : vector<1x50xf32>
    %c0_14 = arith.constant 0 : index
    %c0_15 = arith.constant 0 : index
    %c0_16 = arith.constant 0 : index
    %24 = vector.load %arg8[%c0_14, %c0_15, %c0_16] : memref<1x1x50xf32, #tpu.memory_space<vmem>>, vector<1x1x50xf32>
    %25 = vector.shape_cast %24 : vector<1x1x50xf32> to vector<1x50xf32>
    %26 = vector.shape_cast %13 : vector<1x50xf32> to vector<1x1x50xf32>
    tpu.vector_store %arg8[%c0_14, %c0_15, %c0_16], %26 {strides = array<i32>} : memref<1x1x50xf32, #tpu.memory_space<vmem>>, vector<1x1x50xf32>,
    %c0_17 = arith.constant 0 : index
    %c0_18 = arith.constant 0 : index
    %c0_19 = arith.constant 0 : index
    %27 = vector.load %arg9[%c0_17, %c0_18, %c0_19] : memref<1x1x50xf32, #tpu.memory_space<vmem>>, vector<1x1x50xf32>
    %28 = vector.shape_cast %27 : vector<1x1x50xf32> to vector<1x50xf32>
    %29 = vector.shape_cast %23 : vector<1x50xf32> to vector<1x1x50xf32>
    tpu.vector_store %arg9[%c0_17, %c0_18, %c0_19], %29 {strides = array<i32>} : memref<1x1x50xf32, #tpu.memory_space<vmem>>, vector<1x1x50xf32>,
    %c0_20 = arith.constant 0 : index
    %c0_21 = arith.constant 0 : index
    %c0_22 = arith.constant 0 : index
    %30 = vector.load %arg2[%c0_20, %c0_21, %c0_22] : memref<1x3x256xf32, #tpu.memory_space<vmem>>, vector<1x3x256xf32>
    %31 = vector.shape_cast %30 : vector<1x3x256xf32> to vector<3x256xf32>
    %32 = vector.extract_strided_slice %31 {offsets = [0, 0], sizes = [1, 256], strides = [1, 1]} : vector<3x256xf32> to vector<1x256xf32>
    %cst_23 = arith.constant 2.290000e-01 : f32
    %33 = vector.broadcast %cst_23 : f32 to vector<1x256xf32>
    %34 = arith.mulf %32, %33 : vector<1x256xf32>
    %cst_24 = arith.constant 4.850000e-01 : f32
    %35 = vector.broadcast %cst_24 : f32 to vector<1x256xf32>
    %36 = arith.addf %34, %35 : vector<1x256xf32>
    %cst_25 = arith.constant 0.000000e+00 : f32
    %cst_26 = arith.constant 1.000000e+00 : f32
    %37 = vector.broadcast %cst_25 : f32 to vector<1x256xf32>
    %38 = arith.maximumf %37, %36 : vector<1x256xf32>
    %39 = vector.broadcast %cst_26 : f32 to vector<1x256xf32>
    %40 = arith.minimumf %39, %38 : vector<1x256xf32>
    %41 = vector.extract_strided_slice %31 {offsets = [1, 0], sizes = [1, 256], strides = [1, 1]} : vector<3x256xf32> to vector<1x256xf32>
    %cst_27 = arith.constant 2.240000e-01 : f32
    %42 = vector.broadcast %cst_27 : f32 to vector<1x256xf32>
    %43 = arith.mulf %41, %42 : vector<1x256xf32>
    %cst_28 = arith.constant 4.560000e-01 : f32
    %44 = vector.broadcast %cst_28 : f32 to vector<1x256xf32>
    %45 = arith.addf %43, %44 : vector<1x256xf32>
    %cst_29 = arith.constant 0.000000e+00 : f32
    %cst_30 = arith.constant 1.000000e+00 : f32
    %46 = vector.broadcast %cst_29 : f32 to vector<1x256xf32>
    %47 = arith.maximumf %46, %45 : vector<1x256xf32>
    %48 = vector.broadcast %cst_30 : f32 to vector<1x256xf32>
    %49 = arith.minimumf %48, %47 : vector<1x256xf32>
    %50 = vector.extract_strided_slice %31 {offsets = [2, 0], sizes = [1, 256], strides = [1, 1]} : vector<3x256xf32> to vector<1x256xf32>
    %cst_31 = arith.constant 2.250000e-01 : f32
    %51 = vector.broadcast %cst_31 : f32 to vector<1x256xf32>
    %52 = arith.mulf %50, %51 : vector<1x256xf32>
    %cst_32 = arith.constant 4.060000e-01 : f32
    %53 = vector.broadcast %cst_32 : f32 to vector<1x256xf32>
    %54 = arith.addf %52, %53 : vector<1x256xf32>
    %cst_33 = arith.constant 0.000000e+00 : f32
    %cst_34 = arith.constant 1.000000e+00 : f32
    %55 = vector.broadcast %cst_33 : f32 to vector<1x256xf32>
    %56 = arith.maximumf %55, %54 : vector<1x256xf32>
    %57 = vector.broadcast %cst_34 : f32 to vector<1x256xf32>
    %58 = arith.minimumf %57, %56 : vector<1x256xf32>
    %59 = tpu.concatenate %40, %49, %58 in 0 : vector<1x256xf32>, vector<1x256xf32>, vector<1x256xf32> -> vector<3x256xf32>
    %60 = vector.extract_strided_slice %59 {offsets = [0, 17], sizes = [3, 239], strides = [1, 1]} : vector<3x256xf32> to vector<3x239xf32>
    %61 = vector.extract_strided_slice %59 {offsets = [0, 0], sizes = [3, 17], strides = [1, 1]} : vector<3x256xf32> to vector<3x17xf32>
    %62 = tpu.concatenate %60, %61 in 1 : vector<3x239xf32>, vector<3x17xf32> -> vector<3x256xf32>
    %63 = arith.addf %59, %62 : vector<3x256xf32>
    %64 = vector.extract_strided_slice %59 {offsets = [0, 16], sizes = [3, 240], strides = [1, 1]} : vector<3x256xf32> to vector<3x240xf32>
    %65 = vector.extract_strided_slice %59 {offsets = [0, 0], sizes = [3, 16], strides = [1, 1]} : vector<3x256xf32> to vector<3x16xf32>
    %66 = tpu.concatenate %64, %65 in 1 : vector<3x240xf32>, vector<3x16xf32> -> vector<3x256xf32>
    %67 = arith.addf %63, %66 : vector<3x256xf32>
    %68 = vector.extract_strided_slice %59 {offsets = [0, 15], sizes = [3, 241], strides = [1, 1]} : vector<3x256xf32> to vector<3x241xf32>
    %69 = vector.extract_strided_slice %59 {offsets = [0, 0], sizes = [3, 15], strides = [1, 1]} : vector<3x256xf32> to vector<3x15xf32>
    %70 = tpu.concatenate %68, %69 in 1 : vector<3x241xf32>, vector<3x15xf32> -> vector<3x256xf32>
    %71 = arith.addf %67, %70 : vector<3x256xf32>
    %72 = vector.extract_strided_slice %59 {offsets = [0, 1], sizes = [3, 255], strides = [1, 1]} : vector<3x256xf32> to vector<3x255xf32>
    %73 = vector.extract_strided_slice %59 {offsets = [0, 0], sizes = [3, 1], strides = [1, 1]} : vector<3x256xf32> to vector<3x1xf32>
    %74 = tpu.concatenate %72, %73 in 1 : vector<3x255xf32>, vector<3x1xf32> -> vector<3x256xf32>
    %75 = arith.addf %71, %74 : vector<3x256xf32>
    %76 = vector.extract_strided_slice %59 {offsets = [0, 255], sizes = [3, 1], strides = [1, 1]} : vector<3x256xf32> to vector<3x1xf32>
    %77 = vector.extract_strided_slice %59 {offsets = [0, 0], sizes = [3, 255], strides = [1, 1]} : vector<3x256xf32> to vector<3x255xf32>
    %78 = tpu.concatenate %76, %77 in 1 : vector<3x1xf32>, vector<3x255xf32> -> vector<3x256xf32>
    %79 = arith.addf %75, %78 : vector<3x256xf32>
    %80 = vector.extract_strided_slice %59 {offsets = [0, 241], sizes = [3, 15], strides = [1, 1]} : vector<3x256xf32> to vector<3x15xf32>
    %81 = vector.extract_strided_slice %59 {offsets = [0, 0], sizes = [3, 241], strides = [1, 1]} : vector<3x256xf32> to vector<3x241xf32>
    %82 = tpu.concatenate %80, %81 in 1 : vector<3x15xf32>, vector<3x241xf32> -> vector<3x256xf32>
    %83 = arith.addf %79, %82 : vector<3x256xf32>
    %84 = vector.extract_strided_slice %59 {offsets = [0, 240], sizes = [3, 16], strides = [1, 1]} : vector<3x256xf32> to vector<3x16xf32>
    %85 = vector.extract_strided_slice %59 {offsets = [0, 0], sizes = [3, 240], strides = [1, 1]} : vector<3x256xf32> to vector<3x240xf32>
    %86 = tpu.concatenate %84, %85 in 1 : vector<3x16xf32>, vector<3x240xf32> -> vector<3x256xf32>
    %87 = arith.addf %83, %86 : vector<3x256xf32>
    %88 = vector.extract_strided_slice %59 {offsets = [0, 239], sizes = [3, 17], strides = [1, 1]} : vector<3x256xf32> to vector<3x17xf32>
    %89 = vector.extract_strided_slice %59 {offsets = [0, 0], sizes = [3, 239], strides = [1, 1]} : vector<3x256xf32> to vector<3x239xf32>
    %90 = tpu.concatenate %88, %89 in 1 : vector<3x17xf32>, vector<3x239xf32> -> vector<3x256xf32>
    %91 = arith.addf %87, %90 : vector<3x256xf32>
    %cst_35 = arith.constant 0.111111112 : f32
    %92 = vector.broadcast %cst_35 : f32 to vector<3x256xf32>
    %93 = arith.mulf %91, %92 : vector<3x256xf32>
    %94 = arith.subf %59, %93 : vector<3x256xf32>
    %95 = tpu.iota {dimensions = array<i32: 1>} : vector<1x50xi32>
    %96 = arith.sitofp %95 : vector<1x50xi32> to vector<1x50xf32>
    %c0_i32 = arith.constant 0 : i32
    %97 = vector.broadcast %c0_i32 : i32 to vector<1x50xi32>
    %98 = arith.cmpi eq, %95, %97 : vector<1x50xi32>
    %c1_i32 = arith.constant 1 : i32
    %99 = vector.broadcast %c1_i32 : i32 to vector<1x50xi32>
    %100 = arith.cmpi eq, %95, %99 : vector<1x50xi32>
    %101 = arith.ori %98, %100 : vector<1x50xi1>
    %c8_i32 = arith.constant 8 : i32
    %102 = vector.broadcast %c8_i32 : i32 to vector<1x50xi32>
    %103 = arith.cmpi eq, %95, %102 : vector<1x50xi32>
    %104 = arith.ori %101, %103 : vector<1x50xi1>
    %c49_i32 = arith.constant 49 : i32
    %105 = vector.broadcast %c49_i32 : i32 to vector<1x50xi32>
    %106 = arith.cmpi eq, %95, %105 : vector<1x50xi32>
    %107 = arith.ori %104, %106 : vector<1x50xi1>
    %c11_i32 = arith.constant 11 : i32
    %108 = vector.broadcast %c11_i32 : i32 to vector<1x50xi32>
    %109 = arith.cmpi sge, %95, %108 : vector<1x50xi32>
    %c29_i32 = arith.constant 29 : i32
    %110 = vector.broadcast %c29_i32 : i32 to vector<1x50xi32>
    %111 = arith.cmpi sle, %95, %110 : vector<1x50xi32>
    %112 = arith.andi %109, %111 : vector<1x50xi1>
    %cst_36 = arith.constant 0.000000e+00 : f32
    %113 = vector.broadcast %cst_36 : f32 to vector<1x50xf32>
    %114 = arith.select %107, %23, %113 : vector<1x50xi1>, vector<1x50xf32>
    %115 = vector.shape_cast %114 : vector<1x50xf32> to vector<1x1x50xf32>
    %cst_37 = arith.constant dense<0.000000e+00> : vector<1xf32>
    %116 = vector.multi_reduction <add>, %115, %cst_37 [1, 2] : vector<1x1x50xf32> to vector<1xf32>
    %117 = vector.shape_cast %116 : vector<1xf32> to vector<1x1x1xf32>
    %118 = vector.extract %117[0, 0, 0] : f32 from vector<1x1x1xf32>
    %cst_38 = arith.constant 0.000000e+00 : f32
    %119 = vector.broadcast %cst_38 : f32 to vector<1x50xf32>
    %120 = arith.select %112, %23, %119 : vector<1x50xi1>, vector<1x50xf32>
    %121 = vector.shape_cast %120 : vector<1x50xf32> to vector<1x1x50xf32>
    %cst_39 = arith.constant dense<0.000000e+00> : vector<1xf32>
    %122 = vector.multi_reduction <add>, %121, %cst_39 [1, 2] : vector<1x1x50xf32> to vector<1xf32>
    %123 = vector.shape_cast %122 : vector<1xf32> to vector<1x1x1xf32>
    %124 = vector.extract %123[0, 0, 0] : f32 from vector<1x1x1xf32>
    %cst_40 = arith.constant 1.000000e+01 : f32
    %125 = vector.broadcast %cst_40 : f32 to vector<1x50xf32>
    %126 = arith.subf %96, %125 : vector<1x50xf32>
    %cst_41 = arith.constant 5.000000e-02 : f32
    %127 = vector.broadcast %cst_41 : f32 to vector<1x50xf32>
    %128 = arith.mulf %126, %127 : vector<1x50xf32>
    %129 = arith.mulf %23, %128 : vector<1x50xf32>
    %cst_42 = arith.constant 0.000000e+00 : f32
    %130 = vector.broadcast %cst_42 : f32 to vector<1x50xf32>
    %131 = arith.select %112, %129, %130 : vector<1x50xi1>, vector<1x50xf32>
    %132 = vector.shape_cast %131 : vector<1x50xf32> to vector<1x1x50xf32>
    %cst_43 = arith.constant dense<0.000000e+00> : vector<1xf32>
    %133 = vector.multi_reduction <add>, %132, %cst_43 [1, 2] : vector<1x1x50xf32> to vector<1xf32>
    %134 = vector.shape_cast %133 : vector<1xf32> to vector<1x1x1xf32>
    %135 = vector.extract %134[0, 0, 0] : f32 from vector<1x1x1xf32>
    %136 = vector.broadcast %118 : f32 to vector<3x256xf32>
    %137 = arith.mulf %136, %59 : vector<3x256xf32>
    %138 = vector.broadcast %124 : f32 to vector<3x256xf32>
    %139 = arith.mulf %138, %93 : vector<3x256xf32>
    %140 = arith.addf %137, %139 : vector<3x256xf32>
    %141 = vector.broadcast %135 : f32 to vector<3x256xf32>
    %142 = arith.mulf %141, %94 : vector<3x256xf32>
    %143 = arith.addf %140, %142 : vector<3x256xf32>
    %144 = vector.extract_strided_slice %23 {offsets = [0, 2], sizes = [1, 1], strides = [1, 1]} : vector<1x50xf32> to vector<1x1xf32>
    %145 = vector.extract %144[0, 0] : f32 from vector<1x1xf32>
    %146 = vector.extract_strided_slice %13 {offsets = [0, 2], sizes = [1, 1], strides = [1, 1]} : vector<1x50xf32> to vector<1x1xf32>
    %147 = vector.extract %146[0, 0] : f32 from vector<1x1xf32>
    %148 = vector.extract_strided_slice %59 {offsets = [0, 0], sizes = [1, 256], strides = [1, 1]} : vector<3x256xf32> to vector<1x256xf32>
    %cst_44 = arith.constant 2.990000e-01 : f32
    %149 = vector.broadcast %cst_44 : f32 to vector<1x256xf32>
    %150 = arith.mulf %149, %148 : vector<1x256xf32>
    %151 = vector.extract_strided_slice %59 {offsets = [1, 0], sizes = [1, 256], strides = [1, 1]} : vector<3x256xf32> to vector<1x256xf32>
    %cst_45 = arith.constant 5.870000e-01 : f32
    %152 = vector.broadcast %cst_45 : f32 to vector<1x256xf32>
    %153 = arith.mulf %152, %151 : vector<1x256xf32>
    %154 = arith.addf %150, %153 : vector<1x256xf32>
    %155 = vector.extract_strided_slice %59 {offsets = [2, 0], sizes = [1, 256], strides = [1, 1]} : vector<3x256xf32> to vector<1x256xf32>
    %cst_46 = arith.constant 1.140000e-01 : f32
    %156 = vector.broadcast %cst_46 : f32 to vector<1x256xf32>
    %157 = arith.mulf %156, %155 : vector<1x256xf32>
    %158 = arith.addf %154, %157 : vector<1x256xf32>
    %159 = vector.shape_cast %158 : vector<1x256xf32> to vector<1x256xf32>
    %160 = vector.broadcast %159 : vector<1x256xf32> to vector<3x256xf32>
    %cst_47 = arith.constant 5.000000e+00 : f32
    %161 = arith.mulf %147, %cst_47 : f32
    %cst_48 = arith.constant 1.000000e+00 : f32
    %162 = arith.addf %cst_48, %161 : f32
    %163 = arith.subf %59, %160 : vector<3x256xf32>
    %164 = vector.broadcast %162 : f32 to vector<3x256xf32>
    %165 = arith.mulf %164, %163 : vector<3x256xf32>
    %166 = arith.addf %160, %165 : vector<3x256xf32>
    %cst_49 = arith.constant 0.000000e+00 : f32
    %cst_50 = arith.constant 1.000000e+00 : f32
    %167 = vector.broadcast %cst_49 : f32 to vector<3x256xf32>
    %168 = arith.maximumf %167, %166 : vector<3x256xf32>
    %169 = vector.broadcast %cst_50 : f32 to vector<3x256xf32>
    %170 = arith.minimumf %169, %168 : vector<3x256xf32>
    %171 = vector.broadcast %145 : f32 to vector<3x256xf32>
    %172 = arith.mulf %171, %170 : vector<3x256xf32>
    %173 = arith.addf %143, %172 : vector<3x256xf32>
    %174 = vector.extract_strided_slice %23 {offsets = [0, 3], sizes = [1, 1], strides = [1, 1]} : vector<1x50xf32> to vector<1x1xf32>
    %175 = vector.extract %174[0, 0] : f32 from vector<1x1xf32>
    %176 = vector.extract_strided_slice %13 {offsets = [0, 3], sizes = [1, 1], strides = [1, 1]} : vector<1x50xf32> to vector<1x1xf32>
    %177 = vector.extract %176[0, 0] : f32 from vector<1x1xf32>
    %178 = vector.shape_cast %59 : vector<3x256xf32> to vector<1x3x256xf32>
    %cst_51 = arith.constant dense<0.000000e+00> : vector<1xf32>
    %179 = vector.multi_reduction <add>, %178, %cst_51 [1, 2] : vector<1x3x256xf32> to vector<1xf32>
    %180 = vector.shape_cast %179 : vector<1xf32> to vector<1x1x1xf32>
    %181 = vector.extract %180[0, 0, 0] : f32 from vector<1x1x1xf32>
    %cst_52 = arith.constant 7.680000e+02 : f32
    %182 = arith.divf %181, %cst_52 : f32
    %cst_53 = arith.constant 3.000000e+00 : f32
    %183 = arith.mulf %177, %cst_53 : f32
    %cst_54 = arith.constant 1.000000e+00 : f32
    %184 = arith.addf %cst_54, %183 : f32
    %185 = vector.broadcast %182 : f32 to vector<3x256xf32>
    %186 = arith.subf %59, %185 : vector<3x256xf32>
    %187 = vector.broadcast %184 : f32 to vector<3x256xf32>
    %188 = arith.mulf %187, %186 : vector<3x256xf32>
    %189 = vector.broadcast %182 : f32 to vector<3x256xf32>
    %190 = arith.addf %189, %188 : vector<3x256xf32>
    %cst_55 = arith.constant 0.000000e+00 : f32
    %cst_56 = arith.constant 1.000000e+00 : f32
    %191 = vector.broadcast %cst_55 : f32 to vector<3x256xf32>
    %192 = arith.maximumf %191, %190 : vector<3x256xf32>
    %193 = vector.broadcast %cst_56 : f32 to vector<3x256xf32>
    %194 = arith.minimumf %193, %192 : vector<3x256xf32>
    %195 = vector.broadcast %175 : f32 to vector<3x256xf32>
    %196 = arith.mulf %195, %194 : vector<3x256xf32>
    %197 = arith.addf %173, %196 : vector<3x256xf32>
    %198 = vector.extract_strided_slice %23 {offsets = [0, 4], sizes = [1, 1], strides = [1, 1]} : vector<1x50xf32> to vector<1x1xf32>
    %199 = vector.extract %198[0, 0] : f32 from vector<1x1xf32>
    %200 = vector.extract_strided_slice %13 {offsets = [0, 4], sizes = [1, 1], strides = [1, 1]} : vector<1x50xf32> to vector<1x1xf32>
    %201 = vector.extract %200[0, 0] : f32 from vector<1x1xf32>
    %cst_57 = arith.constant 1.000000e+01 : f32
    %202 = arith.mulf %201, %cst_57 : f32
    %cst_58 = arith.constant 1.000000e+00 : f32
    %203 = arith.addf %cst_58, %202 : f32
    %204 = vector.broadcast %203 : f32 to vector<3x256xf32>
    %205 = arith.mulf %204, %94 : vector<3x256xf32>
    %206 = arith.addf %93, %205 : vector<3x256xf32>
    %cst_59 = arith.constant 0.000000e+00 : f32
    %cst_60 = arith.constant 1.000000e+00 : f32
    %207 = vector.broadcast %cst_59 : f32 to vector<3x256xf32>
    %208 = arith.maximumf %207, %206 : vector<3x256xf32>
    %209 = vector.broadcast %cst_60 : f32 to vector<3x256xf32>
    %210 = arith.minimumf %209, %208 : vector<3x256xf32>
    %211 = vector.broadcast %199 : f32 to vector<3x256xf32>
    %212 = arith.mulf %211, %210 : vector<3x256xf32>
    %213 = arith.addf %197, %212 : vector<3x256xf32>
    %214 = vector.extract_strided_slice %23 {offsets = [0, 5], sizes = [1, 1], strides = [1, 1]} : vector<1x50xf32> to vector<1x1xf32>
    %215 = vector.extract %214[0, 0] : f32 from vector<1x1xf32>
    %216 = vector.extract_strided_slice %13 {offsets = [0, 5], sizes = [1, 1], strides = [1, 1]} : vector<1x50xf32> to vector<1x1xf32>
    %217 = vector.extract %216[0, 0] : f32 from vector<1x1xf32>
    %cst_61 = arith.constant 6.000000e-01 : f32
    %218 = arith.mulf %217, %cst_61 : f32
    %219 = vector.broadcast %218 : f32 to vector<3x256xf32>
    %220 = arith.addf %59, %219 : vector<3x256xf32>
    %cst_62 = arith.constant 0.000000e+00 : f32
    %cst_63 = arith.constant 1.000000e+00 : f32
    %221 = vector.broadcast %cst_62 : f32 to vector<3x256xf32>
    %222 = arith.maximumf %221, %220 : vector<3x256xf32>
    %223 = vector.broadcast %cst_63 : f32 to vector<3x256xf32>
    %224 = arith.minimumf %223, %222 : vector<3x256xf32>
    %225 = vector.broadcast %215 : f32 to vector<3x256xf32>
    %226 = arith.mulf %225, %224 : vector<3x256xf32>
    %227 = arith.addf %213, %226 : vector<3x256xf32>
    %228 = vector.extract_strided_slice %23 {offsets = [0, 6], sizes = [1, 1], strides = [1, 1]} : vector<1x50xf32> to vector<1x1xf32>
    %229 = vector.extract %228[0, 0] : f32 from vector<1x1xf32>
    %cst_64 = arith.constant dense<0x7F800000> : vector<3xf32>
    %230 = vector.multi_reduction <minimumf>, %59, %cst_64 [1] : vector<3x256xf32> to vector<3xf32>
    %231 = vector.shape_cast %230 : vector<3xf32> to vector<3x1xf32>
    %cst_65 = arith.constant dense<0xFF800000> : vector<3xf32>
    %232 = vector.multi_reduction <maximumf>, %59, %cst_65 [1] : vector<3x256xf32> to vector<3xf32>
    %233 = vector.shape_cast %232 : vector<3xf32> to vector<3x1xf32>
    %234 = vector.broadcast %231 : vector<3x1xf32> to vector<3x256xf32>
    %235 = arith.subf %59, %234 : vector<3x256xf32>
    %236 = arith.subf %233, %231 : vector<3x1xf32>
    %cst_66 = arith.constant 9.99999997E-7 : f32
    %237 = vector.broadcast %cst_66 : f32 to vector<3x1xf32>
    %238 = arith.addf %236, %237 : vector<3x1xf32>
    %239 = vector.broadcast %238 : vector<3x1xf32> to vector<3x256xf32>
    %240 = arith.divf %235, %239 : vector<3x256xf32>
    %241 = vector.broadcast %229 : f32 to vector<3x256xf32>
    %242 = arith.mulf %241, %240 : vector<3x256xf32>
    %243 = arith.addf %227, %242 : vector<3x256xf32>
    %244 = vector.extract_strided_slice %23 {offsets = [0, 7], sizes = [1, 1], strides = [1, 1]} : vector<1x50xf32> to vector<1x1xf32>
    %245 = vector.extract %244[0, 0] : f32 from vector<1x1xf32>
    %246 = vector.extract_strided_slice %13 {offsets = [0, 7], sizes = [1, 1], strides = [1, 1]} : vector<1x50xf32> to vector<1x1xf32>
    %247 = vector.extract %246[0, 0] : f32 from vector<1x1xf32>
    %cst_67 = arith.constant 2.000000e+00 : f32
    %248 = arith.mulf %247, %cst_67 : f32
    %249 = vector.extract_strided_slice %59 {offsets = [0, 0], sizes = [1, 256], strides = [1, 1]} : vector<3x256xf32> to vector<1x256xf32>
    %250 = vector.extract_strided_slice %59 {offsets = [1, 0], sizes = [1, 256], strides = [1, 1]} : vector<3x256xf32> to vector<1x256xf32>
    %251 = vector.extract_strided_slice %59 {offsets = [2, 0], sizes = [1, 256], strides = [1, 1]} : vector<3x256xf32> to vector<1x256xf32>
    %cst_68 = arith.constant 2.990000e-01 : f32
    %252 = vector.broadcast %cst_68 : f32 to vector<1x256xf32>
    %253 = arith.mulf %252, %249 : vector<1x256xf32>
    %cst_69 = arith.constant 5.870000e-01 : f32
    %254 = vector.broadcast %cst_69 : f32 to vector<1x256xf32>
    %255 = arith.mulf %254, %250 : vector<1x256xf32>
    %256 = arith.addf %253, %255 : vector<1x256xf32>
    %cst_70 = arith.constant 1.140000e-01 : f32
    %257 = vector.broadcast %cst_70 : f32 to vector<1x256xf32>
    %258 = arith.mulf %257, %251 : vector<1x256xf32>
    %259 = arith.addf %256, %258 : vector<1x256xf32>
    %cst_71 = arith.constant 5.960000e-01 : f32
    %260 = vector.broadcast %cst_71 : f32 to vector<1x256xf32>
    %261 = arith.mulf %260, %249 : vector<1x256xf32>
    %cst_72 = arith.constant 2.740000e-01 : f32
    %262 = vector.broadcast %cst_72 : f32 to vector<1x256xf32>
    %263 = arith.mulf %262, %250 : vector<1x256xf32>
    %264 = arith.subf %261, %263 : vector<1x256xf32>
    %cst_73 = arith.constant 3.220000e-01 : f32
    %265 = vector.broadcast %cst_73 : f32 to vector<1x256xf32>
    %266 = arith.mulf %265, %251 : vector<1x256xf32>
    %267 = arith.subf %264, %266 : vector<1x256xf32>
    %cst_74 = arith.constant 2.110000e-01 : f32
    %268 = vector.broadcast %cst_74 : f32 to vector<1x256xf32>
    %269 = arith.mulf %268, %249 : vector<1x256xf32>
    %cst_75 = arith.constant 5.230000e-01 : f32
    %270 = vector.broadcast %cst_75 : f32 to vector<1x256xf32>
    %271 = arith.mulf %270, %250 : vector<1x256xf32>
    %272 = arith.subf %269, %271 : vector<1x256xf32>
    %cst_76 = arith.constant 3.120000e-01 : f32
    %273 = vector.broadcast %cst_76 : f32 to vector<1x256xf32>
    %274 = arith.mulf %273, %251 : vector<1x256xf32>
    %275 = arith.addf %272, %274 : vector<1x256xf32>
    %276 = arith.mulf %248, %248 : f32
    %cst_77 = arith.constant 1.000000e+00 : f32
    %277 = arith.addf %cst_77, %276 : f32
    %278 = arith.mulf %248, %248 : f32
    %cst_78 = arith.constant 1.000000e+00 : f32
    %279 = arith.subf %cst_78, %278 : f32
    %280 = arith.divf %279, %277 : f32
    %cst_79 = arith.constant 2.000000e+00 : f32
    %281 = arith.mulf %cst_79, %248 : f32
    %282 = arith.divf %281, %277 : f32
    %283 = vector.broadcast %280 : f32 to vector<1x256xf32>
    %284 = arith.mulf %283, %267 : vector<1x256xf32>
    %285 = vector.broadcast %282 : f32 to vector<1x256xf32>
    %286 = arith.mulf %285, %275 : vector<1x256xf32>
    %287 = arith.subf %284, %286 : vector<1x256xf32>
    %288 = vector.broadcast %282 : f32 to vector<1x256xf32>
    %289 = arith.mulf %288, %267 : vector<1x256xf32>
    %290 = vector.broadcast %280 : f32 to vector<1x256xf32>
    %291 = arith.mulf %290, %275 : vector<1x256xf32>
    %292 = arith.addf %289, %291 : vector<1x256xf32>
    %cst_80 = arith.constant 0.95599997 : f32
    %293 = vector.broadcast %cst_80 : f32 to vector<1x256xf32>
    %294 = arith.mulf %293, %287 : vector<1x256xf32>
    %295 = arith.addf %259, %294 : vector<1x256xf32>
    %cst_81 = arith.constant 0.620999991 : f32
    %296 = vector.broadcast %cst_81 : f32 to vector<1x256xf32>
    %297 = arith.mulf %296, %292 : vector<1x256xf32>
    %298 = arith.addf %295, %297 : vector<1x256xf32>
    %cst_82 = arith.constant 2.720000e-01 : f32
    %299 = vector.broadcast %cst_82 : f32 to vector<1x256xf32>
    %300 = arith.mulf %299, %287 : vector<1x256xf32>
    %301 = arith.subf %259, %300 : vector<1x256xf32>
    %cst_83 = arith.constant 6.470000e-01 : f32
    %302 = vector.broadcast %cst_83 : f32 to vector<1x256xf32>
    %303 = arith.mulf %302, %292 : vector<1x256xf32>
    %304 = arith.subf %301, %303 : vector<1x256xf32>
    %cst_84 = arith.constant 1.106000e+00 : f32
    %305 = vector.broadcast %cst_84 : f32 to vector<1x256xf32>
    %306 = arith.mulf %305, %287 : vector<1x256xf32>
    %307 = arith.subf %259, %306 : vector<1x256xf32>
    %cst_85 = arith.constant 1.703000e+00 : f32
    %308 = vector.broadcast %cst_85 : f32 to vector<1x256xf32>
    %309 = arith.mulf %308, %292 : vector<1x256xf32>
    %310 = arith.addf %307, %309 : vector<1x256xf32>
    %311 = tpu.concatenate %298, %304, %310 in 0 : vector<1x256xf32>, vector<1x256xf32>, vector<1x256xf32> -> vector<3x256xf32>
    %cst_86 = arith.constant 0.000000e+00 : f32
    %cst_87 = arith.constant 1.000000e+00 : f32
    %312 = vector.broadcast %cst_86 : f32 to vector<3x256xf32>
    %313 = arith.maximumf %312, %311 : vector<3x256xf32>
    %314 = vector.broadcast %cst_87 : f32 to vector<3x256xf32>
    %315 = arith.minimumf %314, %313 : vector<3x256xf32>
    %316 = vector.broadcast %245 : f32 to vector<3x256xf32>
    %317 = arith.mulf %316, %315 : vector<3x256xf32>
    %318 = arith.addf %243, %317 : vector<3x256xf32>
    %319 = vector.extract_strided_slice %23 {offsets = [0, 9], sizes = [1, 1], strides = [1, 1]} : vector<1x50xf32> to vector<1x1xf32>
    %320 = vector.extract %319[0, 0] : f32 from vector<1x1xf32>
    %cst_88 = arith.constant 1.000000e+00 : f32
    %321 = vector.broadcast %cst_88 : f32 to vector<3x256xf32>
    %322 = arith.subf %321, %59 : vector<3x256xf32>
    %323 = vector.broadcast %320 : f32 to vector<3x256xf32>
    %324 = arith.mulf %323, %322 : vector<3x256xf32>
    %325 = arith.addf %318, %324 : vector<3x256xf32>
    %326 = vector.extract_strided_slice %23 {offsets = [0, 10], sizes = [1, 1], strides = [1, 1]} : vector<1x50xf32> to vector<1x1xf32>
    %327 = vector.extract %326[0, 0] : f32 from vector<1x1xf32>
    %328 = vector.extract_strided_slice %13 {offsets = [0, 10], sizes = [1, 1], strides = [1, 1]} : vector<1x50xf32> to vector<1x1xf32>
    %329 = vector.extract %328[0, 0] : f32 from vector<1x1xf32>
    %cst_89 = arith.constant 1.09861231 : f32
    %330 = arith.mulf %329, %cst_89 : f32
    %331 = math.exp %330 : f32
    %cst_90 = arith.constant 9.99999997E-7 : f32
    %332 = vector.broadcast %cst_90 : f32 to vector<3x256xf32>
    %333 = arith.maximumf %59, %332 : vector<3x256xf32>
    %334 = math.log %333 : vector<3x256xf32>
    %335 = vector.broadcast %331 : f32 to vector<3x256xf32>
    %336 = arith.mulf %335, %334 : vector<3x256xf32>
    %337 = math.exp %336 : vector<3x256xf32>
    %cst_91 = arith.constant 0.000000e+00 : f32
    %cst_92 = arith.constant 1.000000e+00 : f32
    %338 = vector.broadcast %cst_91 : f32 to vector<3x256xf32>
    %339 = arith.maximumf %338, %337 : vector<3x256xf32>
    %340 = vector.broadcast %cst_92 : f32 to vector<3x256xf32>
    %341 = arith.minimumf %340, %339 : vector<3x256xf32>
    %342 = vector.broadcast %327 : f32 to vector<3x256xf32>
    %343 = arith.mulf %342, %341 : vector<3x256xf32>
    %344 = arith.addf %325, %343 : vector<3x256xf32>
    %cst_93 = arith.constant 0.949999988 : f32
    %345 = vector.broadcast %cst_93 : f32 to vector<3x256xf32>
    %346 = arith.mulf %94, %345 : vector<3x256xf32>
    %cst_94 = arith.constant 5.000000e-01 : f32
    %347 = vector.broadcast %cst_94 : f32 to vector<3x256xf32>
    %348 = arith.addf %346, %347 : vector<3x256xf32>
    %cst_95 = arith.constant 0.000000e+00 : f32
    %cst_96 = arith.constant 1.000000e+00 : f32
    %349 = vector.broadcast %cst_95 : f32 to vector<3x256xf32>
    %350 = arith.maximumf %349, %348 : vector<3x256xf32>
    %351 = vector.broadcast %cst_96 : f32 to vector<3x256xf32>
    %352 = arith.minimumf %351, %350 : vector<3x256xf32>
    %353 = vector.extract_strided_slice %23 {offsets = [0, 30], sizes = [1, 1], strides = [1, 1]} : vector<1x50xf32> to vector<1x1xf32>
    %354 = vector.extract %353[0, 0] : f32 from vector<1x1xf32>
    %355 = vector.broadcast %354 : f32 to vector<3x256xf32>
    %356 = arith.mulf %355, %352 : vector<3x256xf32>
    %357 = arith.addf %344, %356 : vector<3x256xf32>
    %cst_97 = arith.constant 0.899999976 : f32
    %358 = vector.broadcast %cst_97 : f32 to vector<3x256xf32>
    %359 = arith.mulf %94, %358 : vector<3x256xf32>
    %cst_98 = arith.constant 5.000000e-01 : f32
    %360 = vector.broadcast %cst_98 : f32 to vector<3x256xf32>
    %361 = arith.addf %359, %360 : vector<3x256xf32>
    %cst_99 = arith.constant 0.000000e+00 : f32
    %cst_100 = arith.constant 1.000000e+00 : f32
    %362 = vector.broadcast %cst_99 : f32 to vector<3x256xf32>
    %363 = arith.maximumf %362, %361 : vector<3x256xf32>
    %364 = vector.broadcast %cst_100 : f32 to vector<3x256xf32>
    %365 = arith.minimumf %364, %363 : vector<3x256xf32>
    %366 = vector.extract_strided_slice %23 {offsets = [0, 31], sizes = [1, 1], strides = [1, 1]} : vector<1x50xf32> to vector<1x1xf32>
    %367 = vector.extract %366[0, 0] : f32 from vector<1x1xf32>
    %368 = vector.broadcast %367 : f32 to vector<3x256xf32>
    %369 = arith.mulf %368, %365 : vector<3x256xf32>
    %370 = arith.addf %357, %369 : vector<3x256xf32>
    %cst_101 = arith.constant 8.500000e-01 : f32
    %371 = vector.broadcast %cst_101 : f32 to vector<3x256xf32>
    %372 = arith.mulf %94, %371 : vector<3x256xf32>
    %cst_102 = arith.constant 5.000000e-01 : f32
    %373 = vector.broadcast %cst_102 : f32 to vector<3x256xf32>
    %374 = arith.addf %372, %373 : vector<3x256xf32>
    %cst_103 = arith.constant 0.000000e+00 : f32
    %cst_104 = arith.constant 1.000000e+00 : f32
    %375 = vector.broadcast %cst_103 : f32 to vector<3x256xf32>
    %376 = arith.maximumf %375, %374 : vector<3x256xf32>
    %377 = vector.broadcast %cst_104 : f32 to vector<3x256xf32>
    %378 = arith.minimumf %377, %376 : vector<3x256xf32>
    %379 = vector.extract_strided_slice %23 {offsets = [0, 32], sizes = [1, 1], strides = [1, 1]} : vector<1x50xf32> to vector<1x1xf32>
    %380 = vector.extract %379[0, 0] : f32 from vector<1x1xf32>
    %381 = vector.broadcast %380 : f32 to vector<3x256xf32>
    %382 = arith.mulf %381, %378 : vector<3x256xf32>
    %383 = arith.addf %370, %382 : vector<3x256xf32>
    %cst_105 = arith.constant 8.000000e-01 : f32
    %384 = vector.broadcast %cst_105 : f32 to vector<3x256xf32>
    %385 = arith.mulf %94, %384 : vector<3x256xf32>
    %cst_106 = arith.constant 5.000000e-01 : f32
    %386 = vector.broadcast %cst_106 : f32 to vector<3x256xf32>
    %387 = arith.addf %385, %386 : vector<3x256xf32>
    %cst_107 = arith.constant 0.000000e+00 : f32
    %cst_108 = arith.constant 1.000000e+00 : f32
    %388 = vector.broadcast %cst_107 : f32 to vector<3x256xf32>
    %389 = arith.maximumf %388, %387 : vector<3x256xf32>
    %390 = vector.broadcast %cst_108 : f32 to vector<3x256xf32>
    %391 = arith.minimumf %390, %389 : vector<3x256xf32>
    %392 = vector.extract_strided_slice %23 {offsets = [0, 33], sizes = [1, 1], strides = [1, 1]} : vector<1x50xf32> to vector<1x1xf32>
    %393 = vector.extract %392[0, 0] : f32 from vector<1x1xf32>
    %394 = vector.broadcast %393 : f32 to vector<3x256xf32>
    %395 = arith.mulf %394, %391 : vector<3x256xf32>
    %396 = arith.addf %383, %395 : vector<3x256xf32>
    %cst_109 = arith.constant 7.500000e-01 : f32
    %397 = vector.broadcast %cst_109 : f32 to vector<3x256xf32>
    %398 = arith.mulf %94, %397 : vector<3x256xf32>
    %cst_110 = arith.constant 5.000000e-01 : f32
    %399 = vector.broadcast %cst_110 : f32 to vector<3x256xf32>
    %400 = arith.addf %398, %399 : vector<3x256xf32>
    %cst_111 = arith.constant 0.000000e+00 : f32
    %cst_112 = arith.constant 1.000000e+00 : f32
    %401 = vector.broadcast %cst_111 : f32 to vector<3x256xf32>
    %402 = arith.maximumf %401, %400 : vector<3x256xf32>
    %403 = vector.broadcast %cst_112 : f32 to vector<3x256xf32>
    %404 = arith.minimumf %403, %402 : vector<3x256xf32>
    %405 = vector.extract_strided_slice %23 {offsets = [0, 34], sizes = [1, 1], strides = [1, 1]} : vector<1x50xf32> to vector<1x1xf32>
    %406 = vector.extract %405[0, 0] : f32 from vector<1x1xf32>
    %407 = vector.broadcast %406 : f32 to vector<3x256xf32>
    %408 = arith.mulf %407, %404 : vector<3x256xf32>
    %409 = arith.addf %396, %408 : vector<3x256xf32>
    %cst_113 = arith.constant 0.699999988 : f32
    %410 = vector.broadcast %cst_113 : f32 to vector<3x256xf32>
    %411 = arith.mulf %94, %410 : vector<3x256xf32>
    %cst_114 = arith.constant 5.000000e-01 : f32
    %412 = vector.broadcast %cst_114 : f32 to vector<3x256xf32>
    %413 = arith.addf %411, %412 : vector<3x256xf32>
    %cst_115 = arith.constant 0.000000e+00 : f32
    %cst_116 = arith.constant 1.000000e+00 : f32
    %414 = vector.broadcast %cst_115 : f32 to vector<3x256xf32>
    %415 = arith.maximumf %414, %413 : vector<3x256xf32>
    %416 = vector.broadcast %cst_116 : f32 to vector<3x256xf32>
    %417 = arith.minimumf %416, %415 : vector<3x256xf32>
    %418 = vector.extract_strided_slice %23 {offsets = [0, 35], sizes = [1, 1], strides = [1, 1]} : vector<1x50xf32> to vector<1x1xf32>
    %419 = vector.extract %418[0, 0] : f32 from vector<1x1xf32>
    %420 = vector.broadcast %419 : f32 to vector<3x256xf32>
    %421 = arith.mulf %420, %417 : vector<3x256xf32>
    %422 = arith.addf %409, %421 : vector<3x256xf32>
    %cst_117 = arith.constant 6.500000e-01 : f32
    %423 = vector.broadcast %cst_117 : f32 to vector<3x256xf32>
    %424 = arith.mulf %94, %423 : vector<3x256xf32>
    %cst_118 = arith.constant 5.000000e-01 : f32
    %425 = vector.broadcast %cst_118 : f32 to vector<3x256xf32>
    %426 = arith.addf %424, %425 : vector<3x256xf32>
    %cst_119 = arith.constant 0.000000e+00 : f32
    %cst_120 = arith.constant 1.000000e+00 : f32
    %427 = vector.broadcast %cst_119 : f32 to vector<3x256xf32>
    %428 = arith.maximumf %427, %426 : vector<3x256xf32>
    %429 = vector.broadcast %cst_120 : f32 to vector<3x256xf32>
    %430 = arith.minimumf %429, %428 : vector<3x256xf32>
    %431 = vector.extract_strided_slice %23 {offsets = [0, 36], sizes = [1, 1], strides = [1, 1]} : vector<1x50xf32> to vector<1x1xf32>
    %432 = vector.extract %431[0, 0] : f32 from vector<1x1xf32>
    %433 = vector.broadcast %432 : f32 to vector<3x256xf32>
    %434 = arith.mulf %433, %430 : vector<3x256xf32>
    %435 = arith.addf %422, %434 : vector<3x256xf32>
    %cst_121 = arith.constant 6.000000e-01 : f32
    %436 = vector.broadcast %cst_121 : f32 to vector<3x256xf32>
    %437 = arith.mulf %94, %436 : vector<3x256xf32>
    %cst_122 = arith.constant 5.000000e-01 : f32
    %438 = vector.broadcast %cst_122 : f32 to vector<3x256xf32>
    %439 = arith.addf %437, %438 : vector<3x256xf32>
    %cst_123 = arith.constant 0.000000e+00 : f32
    %cst_124 = arith.constant 1.000000e+00 : f32
    %440 = vector.broadcast %cst_123 : f32 to vector<3x256xf32>
    %441 = arith.maximumf %440, %439 : vector<3x256xf32>
    %442 = vector.broadcast %cst_124 : f32 to vector<3x256xf32>
    %443 = arith.minimumf %442, %441 : vector<3x256xf32>
    %444 = vector.extract_strided_slice %23 {offsets = [0, 37], sizes = [1, 1], strides = [1, 1]} : vector<1x50xf32> to vector<1x1xf32>
    %445 = vector.extract %444[0, 0] : f32 from vector<1x1xf32>
    %446 = vector.broadcast %445 : f32 to vector<3x256xf32>
    %447 = arith.mulf %446, %443 : vector<3x256xf32>
    %448 = arith.addf %435, %447 : vector<3x256xf32>
    %cst_125 = arith.constant 5.500000e-01 : f32
    %449 = vector.broadcast %cst_125 : f32 to vector<3x256xf32>
    %450 = arith.mulf %94, %449 : vector<3x256xf32>
    %cst_126 = arith.constant 5.000000e-01 : f32
    %451 = vector.broadcast %cst_126 : f32 to vector<3x256xf32>
    %452 = arith.addf %450, %451 : vector<3x256xf32>
    %cst_127 = arith.constant 0.000000e+00 : f32
    %cst_128 = arith.constant 1.000000e+00 : f32
    %453 = vector.broadcast %cst_127 : f32 to vector<3x256xf32>
    %454 = arith.maximumf %453, %452 : vector<3x256xf32>
    %455 = vector.broadcast %cst_128 : f32 to vector<3x256xf32>
    %456 = arith.minimumf %455, %454 : vector<3x256xf32>
    %457 = vector.extract_strided_slice %23 {offsets = [0, 38], sizes = [1, 1], strides = [1, 1]} : vector<1x50xf32> to vector<1x1xf32>
    %458 = vector.extract %457[0, 0] : f32 from vector<1x1xf32>
    %459 = vector.broadcast %458 : f32 to vector<3x256xf32>
    %460 = arith.mulf %459, %456 : vector<3x256xf32>
    %461 = arith.addf %448, %460 : vector<3x256xf32>
    %cst_129 = arith.constant 5.000000e-01 : f32
    %462 = vector.broadcast %cst_129 : f32 to vector<3x256xf32>
    %463 = arith.mulf %94, %462 : vector<3x256xf32>
    %cst_130 = arith.constant 5.000000e-01 : f32
    %464 = vector.broadcast %cst_130 : f32 to vector<3x256xf32>
    %465 = arith.addf %463, %464 : vector<3x256xf32>
    %cst_131 = arith.constant 0.000000e+00 : f32
    %cst_132 = arith.constant 1.000000e+00 : f32
    %466 = vector.broadcast %cst_131 : f32 to vector<3x256xf32>
    %467 = arith.maximumf %466, %465 : vector<3x256xf32>
    %468 = vector.broadcast %cst_132 : f32 to vector<3x256xf32>
    %469 = arith.minimumf %468, %467 : vector<3x256xf32>
    %470 = vector.extract_strided_slice %23 {offsets = [0, 39], sizes = [1, 1], strides = [1, 1]} : vector<1x50xf32> to vector<1x1xf32>
    %471 = vector.extract %470[0, 0] : f32 from vector<1x1xf32>
    %472 = vector.broadcast %471 : f32 to vector<3x256xf32>
    %473 = arith.mulf %472, %469 : vector<3x256xf32>
    %474 = arith.addf %461, %473 : vector<3x256xf32>
    %cst_133 = arith.constant 4.500000e-01 : f32
    %475 = vector.broadcast %cst_133 : f32 to vector<3x256xf32>
    %476 = arith.mulf %94, %475 : vector<3x256xf32>
    %cst_134 = arith.constant 5.000000e-01 : f32
    %477 = vector.broadcast %cst_134 : f32 to vector<3x256xf32>
    %478 = arith.addf %476, %477 : vector<3x256xf32>
    %cst_135 = arith.constant 0.000000e+00 : f32
    %cst_136 = arith.constant 1.000000e+00 : f32
    %479 = vector.broadcast %cst_135 : f32 to vector<3x256xf32>
    %480 = arith.maximumf %479, %478 : vector<3x256xf32>
    %481 = vector.broadcast %cst_136 : f32 to vector<3x256xf32>
    %482 = arith.minimumf %481, %480 : vector<3x256xf32>
    %483 = vector.extract_strided_slice %23 {offsets = [0, 40], sizes = [1, 1], strides = [1, 1]} : vector<1x50xf32> to vector<1x1xf32>
    %484 = vector.extract %483[0, 0] : f32 from vector<1x1xf32>
    %485 = vector.broadcast %484 : f32 to vector<3x256xf32>
    %486 = arith.mulf %485, %482 : vector<3x256xf32>
    %487 = arith.addf %474, %486 : vector<3x256xf32>
    %cst_137 = arith.constant 4.000000e-01 : f32
    %488 = vector.broadcast %cst_137 : f32 to vector<3x256xf32>
    %489 = arith.mulf %94, %488 : vector<3x256xf32>
    %cst_138 = arith.constant 5.000000e-01 : f32
    %490 = vector.broadcast %cst_138 : f32 to vector<3x256xf32>
    %491 = arith.addf %489, %490 : vector<3x256xf32>
    %cst_139 = arith.constant 0.000000e+00 : f32
    %cst_140 = arith.constant 1.000000e+00 : f32
    %492 = vector.broadcast %cst_139 : f32 to vector<3x256xf32>
    %493 = arith.maximumf %492, %491 : vector<3x256xf32>
    %494 = vector.broadcast %cst_140 : f32 to vector<3x256xf32>
    %495 = arith.minimumf %494, %493 : vector<3x256xf32>
    %496 = vector.extract_strided_slice %23 {offsets = [0, 41], sizes = [1, 1], strides = [1, 1]} : vector<1x50xf32> to vector<1x1xf32>
    %497 = vector.extract %496[0, 0] : f32 from vector<1x1xf32>
    %498 = vector.broadcast %497 : f32 to vector<3x256xf32>
    %499 = arith.mulf %498, %495 : vector<3x256xf32>
    %500 = arith.addf %487, %499 : vector<3x256xf32>
    %cst_141 = arith.constant 3.500000e-01 : f32
    %501 = vector.broadcast %cst_141 : f32 to vector<3x256xf32>
    %502 = arith.mulf %94, %501 : vector<3x256xf32>
    %cst_142 = arith.constant 5.000000e-01 : f32
    %503 = vector.broadcast %cst_142 : f32 to vector<3x256xf32>
    %504 = arith.addf %502, %503 : vector<3x256xf32>
    %cst_143 = arith.constant 0.000000e+00 : f32
    %cst_144 = arith.constant 1.000000e+00 : f32
    %505 = vector.broadcast %cst_143 : f32 to vector<3x256xf32>
    %506 = arith.maximumf %505, %504 : vector<3x256xf32>
    %507 = vector.broadcast %cst_144 : f32 to vector<3x256xf32>
    %508 = arith.minimumf %507, %506 : vector<3x256xf32>
    %509 = vector.extract_strided_slice %23 {offsets = [0, 42], sizes = [1, 1], strides = [1, 1]} : vector<1x50xf32> to vector<1x1xf32>
    %510 = vector.extract %509[0, 0] : f32 from vector<1x1xf32>
    %511 = vector.broadcast %510 : f32 to vector<3x256xf32>
    %512 = arith.mulf %511, %508 : vector<3x256xf32>
    %513 = arith.addf %500, %512 : vector<3x256xf32>
    %cst_145 = arith.constant 3.000000e-01 : f32
    %514 = vector.broadcast %cst_145 : f32 to vector<3x256xf32>
    %515 = arith.mulf %94, %514 : vector<3x256xf32>
    %cst_146 = arith.constant 5.000000e-01 : f32
    %516 = vector.broadcast %cst_146 : f32 to vector<3x256xf32>
    %517 = arith.addf %515, %516 : vector<3x256xf32>
    %cst_147 = arith.constant 0.000000e+00 : f32
    %cst_148 = arith.constant 1.000000e+00 : f32
    %518 = vector.broadcast %cst_147 : f32 to vector<3x256xf32>
    %519 = arith.maximumf %518, %517 : vector<3x256xf32>
    %520 = vector.broadcast %cst_148 : f32 to vector<3x256xf32>
    %521 = arith.minimumf %520, %519 : vector<3x256xf32>
    %522 = vector.extract_strided_slice %23 {offsets = [0, 43], sizes = [1, 1], strides = [1, 1]} : vector<1x50xf32> to vector<1x1xf32>
    %523 = vector.extract %522[0, 0] : f32 from vector<1x1xf32>
    %524 = vector.broadcast %523 : f32 to vector<3x256xf32>
    %525 = arith.mulf %524, %521 : vector<3x256xf32>
    %526 = arith.addf %513, %525 : vector<3x256xf32>
    %cst_149 = arith.constant 2.500000e-01 : f32
    %527 = vector.broadcast %cst_149 : f32 to vector<3x256xf32>
    %528 = arith.mulf %94, %527 : vector<3x256xf32>
    %cst_150 = arith.constant 5.000000e-01 : f32
    %529 = vector.broadcast %cst_150 : f32 to vector<3x256xf32>
    %530 = arith.addf %528, %529 : vector<3x256xf32>
    %cst_151 = arith.constant 0.000000e+00 : f32
    %cst_152 = arith.constant 1.000000e+00 : f32
    %531 = vector.broadcast %cst_151 : f32 to vector<3x256xf32>
    %532 = arith.maximumf %531, %530 : vector<3x256xf32>
    %533 = vector.broadcast %cst_152 : f32 to vector<3x256xf32>
    %534 = arith.minimumf %533, %532 : vector<3x256xf32>
    %535 = vector.extract_strided_slice %23 {offsets = [0, 44], sizes = [1, 1], strides = [1, 1]} : vector<1x50xf32> to vector<1x1xf32>
    %536 = vector.extract %535[0, 0] : f32 from vector<1x1xf32>
    %537 = vector.broadcast %536 : f32 to vector<3x256xf32>
    %538 = arith.mulf %537, %534 : vector<3x256xf32>
    %539 = arith.addf %526, %538 : vector<3x256xf32>
    %cst_153 = arith.constant 2.000000e-01 : f32
    %540 = vector.broadcast %cst_153 : f32 to vector<3x256xf32>
    %541 = arith.mulf %94, %540 : vector<3x256xf32>
    %cst_154 = arith.constant 5.000000e-01 : f32
    %542 = vector.broadcast %cst_154 : f32 to vector<3x256xf32>
    %543 = arith.addf %541, %542 : vector<3x256xf32>
    %cst_155 = arith.constant 0.000000e+00 : f32
    %cst_156 = arith.constant 1.000000e+00 : f32
    %544 = vector.broadcast %cst_155 : f32 to vector<3x256xf32>
    %545 = arith.maximumf %544, %543 : vector<3x256xf32>
    %546 = vector.broadcast %cst_156 : f32 to vector<3x256xf32>
    %547 = arith.minimumf %546, %545 : vector<3x256xf32>
    %548 = vector.extract_strided_slice %23 {offsets = [0, 45], sizes = [1, 1], strides = [1, 1]} : vector<1x50xf32> to vector<1x1xf32>
    %549 = vector.extract %548[0, 0] : f32 from vector<1x1xf32>
    %550 = vector.broadcast %549 : f32 to vector<3x256xf32>
    %551 = arith.mulf %550, %547 : vector<3x256xf32>
    %552 = arith.addf %539, %551 : vector<3x256xf32>
    %cst_157 = arith.constant 1.500000e-01 : f32
    %553 = vector.broadcast %cst_157 : f32 to vector<3x256xf32>
    %554 = arith.mulf %94, %553 : vector<3x256xf32>
    %cst_158 = arith.constant 5.000000e-01 : f32
    %555 = vector.broadcast %cst_158 : f32 to vector<3x256xf32>
    %556 = arith.addf %554, %555 : vector<3x256xf32>
    %cst_159 = arith.constant 0.000000e+00 : f32
    %cst_160 = arith.constant 1.000000e+00 : f32
    %557 = vector.broadcast %cst_159 : f32 to vector<3x256xf32>
    %558 = arith.maximumf %557, %556 : vector<3x256xf32>
    %559 = vector.broadcast %cst_160 : f32 to vector<3x256xf32>
    %560 = arith.minimumf %559, %558 : vector<3x256xf32>
    %561 = vector.extract_strided_slice %23 {offsets = [0, 46], sizes = [1, 1], strides = [1, 1]} : vector<1x50xf32> to vector<1x1xf32>
    %562 = vector.extract %561[0, 0] : f32 from vector<1x1xf32>
    %563 = vector.broadcast %562 : f32 to vector<3x256xf32>
    %564 = arith.mulf %563, %560 : vector<3x256xf32>
    %565 = arith.addf %552, %564 : vector<3x256xf32>
    %cst_161 = arith.constant 1.000000e-01 : f32
    %566 = vector.broadcast %cst_161 : f32 to vector<3x256xf32>
    %567 = arith.mulf %94, %566 : vector<3x256xf32>
    %cst_162 = arith.constant 5.000000e-01 : f32
    %568 = vector.broadcast %cst_162 : f32 to vector<3x256xf32>
    %569 = arith.addf %567, %568 : vector<3x256xf32>
    %cst_163 = arith.constant 0.000000e+00 : f32
    %cst_164 = arith.constant 1.000000e+00 : f32
    %570 = vector.broadcast %cst_163 : f32 to vector<3x256xf32>
    %571 = arith.maximumf %570, %569 : vector<3x256xf32>
    %572 = vector.broadcast %cst_164 : f32 to vector<3x256xf32>
    %573 = arith.minimumf %572, %571 : vector<3x256xf32>
    %574 = vector.extract_strided_slice %23 {offsets = [0, 47], sizes = [1, 1], strides = [1, 1]} : vector<1x50xf32> to vector<1x1xf32>
    %575 = vector.extract %574[0, 0] : f32 from vector<1x1xf32>
    %576 = vector.broadcast %575 : f32 to vector<3x256xf32>
    %577 = arith.mulf %576, %573 : vector<3x256xf32>
    %578 = arith.addf %565, %577 : vector<3x256xf32>
    %cst_165 = arith.constant 5.000000e-02 : f32
    %579 = vector.broadcast %cst_165 : f32 to vector<3x256xf32>
    %580 = arith.mulf %94, %579 : vector<3x256xf32>
    %cst_166 = arith.constant 5.000000e-01 : f32
    %581 = vector.broadcast %cst_166 : f32 to vector<3x256xf32>
    %582 = arith.addf %580, %581 : vector<3x256xf32>
    %cst_167 = arith.constant 0.000000e+00 : f32
    %cst_168 = arith.constant 1.000000e+00 : f32
    %583 = vector.broadcast %cst_167 : f32 to vector<3x256xf32>
    %584 = arith.maximumf %583, %582 : vector<3x256xf32>
    %585 = vector.broadcast %cst_168 : f32 to vector<3x256xf32>
    %586 = arith.minimumf %585, %584 : vector<3x256xf32>
    %587 = vector.extract_strided_slice %23 {offsets = [0, 48], sizes = [1, 1], strides = [1, 1]} : vector<1x50xf32> to vector<1x1xf32>
    %588 = vector.extract %587[0, 0] : f32 from vector<1x1xf32>
    %589 = vector.broadcast %588 : f32 to vector<3x256xf32>
    %590 = arith.mulf %589, %586 : vector<3x256xf32>
    %591 = arith.addf %578, %590 : vector<3x256xf32>
    %cst_169 = arith.constant 0.000000e+00 : f32
    %cst_170 = arith.constant 1.000000e+00 : f32
    %592 = vector.broadcast %cst_169 : f32 to vector<3x256xf32>
    %593 = arith.maximumf %592, %591 : vector<3x256xf32>
    %594 = vector.broadcast %cst_170 : f32 to vector<3x256xf32>
    %595 = arith.minimumf %594, %593 : vector<3x256xf32>
    %596 = vector.extract_strided_slice %595 {offsets = [0, 0], sizes = [1, 256], strides = [1, 1]} : vector<3x256xf32> to vector<1x256xf32>
    %cst_171 = arith.constant 4.850000e-01 : f32
    %597 = vector.broadcast %cst_171 : f32 to vector<1x256xf32>
    %598 = arith.subf %596, %597 : vector<1x256xf32>
    %cst_172 = arith.constant 4.36681223 : f32
    %599 = vector.broadcast %cst_172 : f32 to vector<1x256xf32>
    %600 = arith.mulf %598, %599 : vector<1x256xf32>
    %601 = vector.extract_strided_slice %595 {offsets = [1, 0], sizes = [1, 256], strides = [1, 1]} : vector<3x256xf32> to vector<1x256xf32>
    %cst_173 = arith.constant 4.560000e-01 : f32
    %602 = vector.broadcast %cst_173 : f32 to vector<1x256xf32>
    %603 = arith.subf %601, %602 : vector<1x256xf32>
    %cst_174 = arith.constant 4.46428585 : f32
    %604 = vector.broadcast %cst_174 : f32 to vector<1x256xf32>
    %605 = arith.mulf %603, %604 : vector<1x256xf32>
    %606 = vector.extract_strided_slice %595 {offsets = [2, 0], sizes = [1, 256], strides = [1, 1]} : vector<3x256xf32> to vector<1x256xf32>
    %cst_175 = arith.constant 4.060000e-01 : f32
    %607 = vector.broadcast %cst_175 : f32 to vector<1x256xf32>
    %608 = arith.subf %606, %607 : vector<1x256xf32>
    %cst_176 = arith.constant 4.44444466 : f32
    %609 = vector.broadcast %cst_176 : f32 to vector<1x256xf32>
    %610 = arith.mulf %608, %609 : vector<1x256xf32>
    %611 = tpu.concatenate %600, %605, %610 in 0 : vector<1x256xf32>, vector<1x256xf32>, vector<1x256xf32> -> vector<3x256xf32>
    %c0_177 = arith.constant 0 : index
    %c0_178 = arith.constant 0 : index
    %c0_179 = arith.constant 0 : index
    %612 = vector.load %arg7[%c0_177, %c0_178, %c0_179] : memref<1x3x256xf32, #tpu.memory_space<vmem>>, vector<1x3x256xf32>
    %613 = vector.shape_cast %612 : vector<1x3x256xf32> to vector<3x256xf32>
    %614 = vector.shape_cast %611 : vector<3x256xf32> to vector<1x3x256xf32>
    tpu.vector_store %arg7[%c0_177, %c0_178, %c0_179], %614 {strides = array<i32>} : memref<1x3x256xf32, #tpu.memory_space<vmem>>, vector<1x3x256xf32>,
    return
  }
  func.func @transform_0(%arg0: i32) -> (i32, i32, i32) {
    %c0_i32 = arith.constant 0 : i32
    %c0_i32_0 = arith.constant 0 : i32
    %c0_i32_1 = arith.constant 0 : i32
    return %arg0, %c0_i32, %c0_i32_0 : i32, i32, i32
  }
  func.func @transform_1(%arg0: i32) -> (i32, i32, i32) {
    %c0_i32 = arith.constant 0 : i32
    %c0_i32_0 = arith.constant 0 : i32
    %c0_i32_1 = arith.constant 0 : i32
    return %arg0, %c0_i32, %c0_i32_0 : i32, i32, i32
  }
  func.func @transform_2(%arg0: i32) -> (i32, i32) {
    %c0_i32 = arith.constant 0 : i32
    %c0_i32_0 = arith.constant 0 : i32
    %c0_i32_1 = arith.constant 0 : i32
    return %c0_i32, %c0_i32_0 : i32, i32
  }
  func.func @transform_3(%arg0: i32) -> (i32, i32) {
    %c0_i32 = arith.constant 0 : i32
    %c0_i32_0 = arith.constant 0 : i32
    %c0_i32_1 = arith.constant 0 : i32
    return %c0_i32, %c0_i32_0 : i32, i32
  }
  func.func @transform_4(%arg0: i32) -> (i32, i32) {
    %c0_i32 = arith.constant 0 : i32
    %c0_i32_0 = arith.constant 0 : i32
    %c0_i32_1 = arith.constant 0 : i32
    return %c0_i32, %c0_i32_0 : i32, i32
  }
  func.func @transform_5(%arg0: i32) -> (i32, i32) {
    %c0_i32 = arith.constant 0 : i32
    %c0_i32_0 = arith.constant 0 : i32
    %c0_i32_1 = arith.constant 0 : i32
    return %c0_i32, %c0_i32_0 : i32, i32
  }
  func.func @transform_6(%arg0: i32) -> (i32, i32, i32) {
    %c0_i32 = arith.constant 0 : i32
    %c0_i32_0 = arith.constant 0 : i32
    %c0_i32_1 = arith.constant 0 : i32
    return %arg0, %c0_i32, %c0_i32_0 : i32, i32, i32
  }
  func.func @transform_7(%arg0: i32) -> (i32, i32, i32) {
    %c0_i32 = arith.constant 0 : i32
    %c0_i32_0 = arith.constant 0 : i32
    %c0_i32_1 = arith.constant 0 : i32
    return %arg0, %c0_i32, %c0_i32_0 : i32, i32, i32
  }
  func.func @transform_8(%arg0: i32) -> (i32, i32, i32) {
    %c0_i32 = arith.constant 0 : i32
    %c0_i32_0 = arith.constant 0 : i32
    %c0_i32_1 = arith.constant 0 : i32
    return %arg0, %c0_i32, %c0_i32_0 : i32, i32, i32
  }
}

</mosaic_0001>

<bundles_post_ra>
// kernel: dyntta_forward.1
= control target key start
LH: loop header
LB: loop body
LE: loop exit
PB: predicated region body
PF: predicated region fallthrough
CT: control target
= control target key end

     0   :  { %s5117_s0 = inlined_call_operand.vmem [shape: bf16[2,1,768], index: 0, kind: input, shape index: {}]   ;;  %s5118_s1 = inlined_call_operand.vmem [shape: f32[2,3,256], index: 1, kind: input, shape index: {}]   ;;  %s5119_s2 = inlined_call_operand.hbm [shape: bf16[768,512], index: 2, kind: input, shape index: {}]   ;;  %s5120_s3 = inlined_call_operand.vmem [shape: f32[1,512], index: 3, kind: input, shape index: {}]   ;;  %s5121_s4 = inlined_call_operand.vmem [shape: bf16[512,100], index: 4, kind: input, shape index: {}]   ;;  %s5122_s5 = inlined_call_operand.vmem [shape: f32[1,100], index: 5, kind: input, shape index: {}]   ;;  %s5123_s6 = inlined_call_operand.vmem [shape: f32[2,3,256], index: 6, kind: output, shape index: {0}]   ;;  %s5124_s7 = inlined_call_operand.hbm [shape: f32[2,1,50], index: 7, kind: output, shape index: {1}]   ;;  %s5125_s8 = inlined_call_operand.hbm [shape: f32[2,1,50], index: 8, kind: output, shape index: {2}]  }
   0x1   :  { %5133 = sst [smem:[#allocation11_spill]] %s5117_s0 }
   0x2   :  { %5134 = sst [smem:[#allocation12_spill]] %s5118_s1 }
   0x3   :  { %5135 = sst [smem:[#allocation13_spill]] %s5119_s2 }
   0x4   :  { %14 = vsyncpa [#allocation3], 0 }
   0x5   :  { %15 = vsyncpa [#allocation4], 0 }
   0x6   :  { %17 = vsyncpa [#allocation4 + $0x1], 0 }
   0x7   :  { %18 = vsyncpa [#allocation7], 0 }
   0x8   :  { %20 = vsyncpa [#allocation7 + $0x1], 0  ;;  %s4294_s27 = smov 0   ;;  %s4296_s28 = smov 0  }
   0x9   :  { %s4298_s29 = smov 0   ;;  %s4300_s30 = smov 0  }
   0xa LB: > { %s4315_s9 = sadd.s32 4294967295, %s4204_s30   ;;  %s3254_s10 = sadd.s32 4294967294, %s4204_s30   ;;  %s4204_s30 = sphi %s4300_s30, %s5155_s30   ;;  %s4200_s29 = sphi %s4298_s29, %s5154_s29   ;;  %s4196_s28 = sphi %s4296_s28, %s5153_s28   ;;  %s4192_s27 = sphi %s4294_s27, %s5152_s27  }
   0xb   : > { %s4319_s11 = sadd.s32 1, %s4204_s30   ;;  %s195_s12 = sadd.s32 1, %s4200_s29 }
   0xc   : > { %s192_s13 = ssub.s32 %s4204_s30, %s4319_s11  ;;  %p205_p0 = scmp.ne.s32.totalorder %s4200_s29, %s4196_s28 }
   0xd   : > { %p193_p1 = scmp.eq.s32.totalorder %s192_s13, 0  ;;  %p206_p2 = scmp.eq.s32.totalorder %s4315_s9, 1 }
   0xe   : > { %p211_p3 = scmp.ne.s32.totalorder %s4196_s28, %s4192_s27  ;;  %p212_p4 = scmp.eq.s32.totalorder %s3254_s10, 1 }
   0xf   : > { %s4330_s14 = scalar_select %p193_p1, %s4200_s29, %s195_s12  }
  0x10   : > { %p4332_p5 = por %p206_p2, %p205_p0  ;;  %p4336_p6 = por %p212_p4, %p211_p3 }
  0x11   : > { %p3255_p7 = scmp.ge.s32.totalorder %s4204_s30, 1  ;;  %p245_p8 = scmp.lt.s32.totalorder %s4204_s30, 3 }
  0x12   : > { %s5136_s15 = scalar_select %p4332_p5, 1, 0 }
  0x13   : > { %s5137_s16 = scalar_select %p4336_p6, 1, 0 }
  0x14   : > { %p5126_p9 = scmp.eq.s32.totalorder %s4315_s9, 0  ;;  %p4343_p10 = pnand %p3255_p7, %p245_p8 }
  0x15   : > { %s4206_s18 = smov [#allocation2]   ;;  %s5140_s2 = sld [smem:[#allocation13_spill]] }
  0x16   : > { %s5138_s17 = scalar_select %p4343_p10, 1, 0 }
  0x17   : > { %s257_s19 = sshll.u32 %s4206_s18, 4  ;;  %p3652_p11 = pneg %p4343_p10  ;;  %s258_s19 = int_to_ptr.vmem [resolvable:$true] %s257_s19 }
  0x19   : > { %p4351_p12 = pnand %p5126_p9, %p3652_p11 }
  0x1b   : > { %s4078_s23 = scalar_lea.hbm %s5140_s2, 24576  ;;  %p4080_p0 = pneg %p4351_p12 }
  0x1c   : > { %p4079_p13 = scmp.ne.s32.totalorder %s5140_s2, %s4078_s23  ;;  %p4085_p3 = scmp.lt.u32.totalorder %s4078_s23, %s5140_s2 }
  0x1e   : > { %p4081_p1 = pnand %p4080_p0, %p4079_p13 }
  0x20   : > { %p4082_p2 = pneg %p4081_p1 }
  0x22   : > { %p4087_p4 = pnand %p4085_p3, %p4082_p2 }
  0x24   : > { %4090 = shalt.err (!%p4087_p4)
}
  0x25   : > { %s4091_s12 = scalar_lea.vmem %s258_s19, 24576  ;;  %p4099_p9 = scmp.lt.s32.totalorder %s258_s19, %s258_s19 }
  0x26   : > { %p4092_p7 = scmp.ne.s32.totalorder %s258_s19, %s4091_s12  ;;  %p4100_p6 = scmp.lt.s32.totalorder %s4091_s12, %s4091_s12 }
  0x28   : > { %p4094_p8 = pnand %p4092_p7, %p4080_p0  ;;  %p4101_p5 = por %p4100_p6, %p4099_p9 }
  0x2a   : > { %p4095_p11 = pneg %p4094_p8 }
  0x2c   : > { %p4102_p10 = pnand %p4101_p5, %p4095_p11 }
  0x2e   : > { %4105 = shalt.err (!%p4102_p10)
}
  0x2f   : > { %s4207_s13 = smov 256   ;;  %s4208_s18 = smov 16  }
  0x30   : > { %3655 = dma.hbm_to_vmem [thread:$0]  (!%p4351_p12), %s5140_s2, 24576, %s258_s19, [#allocation3], %s4207_s13, %s4207_s13, %s4208_s18  }
  0x31   : > { %p5141_p13 = scmp.ne.s32.totalorder %s5138_s17, 0 }
  0x32   : > { %p5142_p1 = scmp.eq.s32.totalorder (!%p5141_p13), %s4315_s9, 0 }
  0x33   : > { %297 = sbr.rel (%p5141_p13) target bundleno = 1724 (0x6bc), region = 44 }
  0x3a   : > { %4179 = dma.done.wait (%p5142_p1), [#allocation3], 24576   ;;  %p5143_p0 = pmov %p5142_p1 }
  0x3b   : > { %v3739_v0 = vld [vmem:[#allocation2 + $0x4] ss:$16 sps:$4 sm:$0xff]   ;;  %v3741_v1 = vld [vmem:[#allocation2 + $0xc] ss:$16 sps:$4 sm:$0xff]   ;;  %v3743_v2 = vld [vmem:[#allocation2] ss:$16 sps:$4 sm:$0xff]   ;;  %v557_v38 = vlaneseq }
  0x3c   : > { %4181 = vsyncadd (%p5143_p0), [#allocation3], 4294942720  ;;  %1587 = vmatprep.subr.bf16.mxu0 %v3739_v0  ;;  %v3744_v3 = vld [vmem:[#allocation2 + $0x8] ss:$16 sps:$4 sm:$0xff]   ;;  %1710 = vmatprep.subr.bf16.mxu1 %v3741_v1  ;;  %v3745_v4 = vld [vmem:[#allocation2 + $0x24] ss:$16 sps:$4 sm:$0xff]  }
  0x3d   : > { %1588 = vmatpush1.bf16.msra.mxu0 %v3743_v2  ;;  %1711 = vmatpush1.bf16.msra.mxu1 %v3744_v3  ;;  %v3747_v5 = vld [vmem:[#allocation2 + $0x2c] ss:$16 sps:$4 sm:$0xff]   ;;  %v3749_v6 = vld [vmem:[#allocation2 + $0x20] ss:$16 sps:$4 sm:$0xff]   ;;  %v3750_v7 = vld [vmem:[#allocation2 + $0x28] ss:$16 sps:$4 sm:$0xff]  }
  0x3e   : > { %1589 = vmatprep.subr.bf16.mxu0 %v3745_v4  ;;  %1712 = vmatprep.subr.bf16.mxu1 %v3747_v5  ;;  %v3751_v8 = vld [vmem:[#allocation2 + $0x44] ss:$16 sps:$4 sm:$0xff]   ;;  %v3753_v9 = vld [vmem:[#allocation2 + $0x4c] ss:$16 sps:$4 sm:$0xff]   ;;  %v3755_v10 = vld [vmem:[#allocation2 + $0x40] ss:$16 sps:$4 sm:$0xff]  }
  0x3f   : > { %v3756_v11 = vld [vmem:[#allocation2 + $0x48] ss:$16 sps:$4 sm:$0xff]   ;;  %v3757_v12 = vld [vmem:[#allocation2 + $0x64] ss:$16 sps:$4 sm:$0xff]   ;;  %v3759_v13 = vld [vmem:[#allocation2 + $0x6c] ss:$16 sps:$4 sm:$0xff]  }
  0x40   : > { %v3761_v14 = vld [vmem:[#allocation2 + $0x60] ss:$16 sps:$4 sm:$0xff]   ;;  %v3762_v15 = vld [vmem:[#allocation2 + $0x68] ss:$16 sps:$4 sm:$0xff]   ;;  %v3763_v16 = vld [vmem:[#allocation2 + $0x84] ss:$16 sps:$4 sm:$0xff]  }
  0x41   : > { %1590 = vmatpush1.bf16.msra.mxu0 %v3749_v6  ;;  %1713 = vmatpush1.bf16.msra.mxu1 %v3750_v7  ;;  %v3765_v17 = vld [vmem:[#allocation2 + $0x8c] ss:$16 sps:$4 sm:$0xff]   ;;  %v3767_v18 = vld [vmem:[#allocation2 + $0x80] ss:$16 sps:$4 sm:$0xff]   ;;  %v3768_v19 = vld [vmem:[#allocation2 + $0x88] ss:$16 sps:$4 sm:$0xff]  }
  0x42   : > { %1591 = vmatprep.subr.bf16.mxu0 %v3751_v8  ;;  %1714 = vmatprep.subr.bf16.mxu1 %v3753_v9  ;;  %v3769_v20 = vld [vmem:[#allocation2 + $0xa4] ss:$16 sps:$4 sm:$0xff]   ;;  %v3771_v21 = vld [vmem:[#allocation2 + $0xac] ss:$16 sps:$4 sm:$0xff]   ;;  %v3773_v22 = vld [vmem:[#allocation2 + $0xa0] ss:$16 sps:$4 sm:$0xff]  }
  0x43   : > { %v3774_v23 = vld [vmem:[#allocation2 + $0xa8] ss:$16 sps:$4 sm:$0xff]   ;;  %v3775_v24 = vld [vmem:[#allocation2 + $0xc4] ss:$16 sps:$4 sm:$0xff]   ;;  %v3777_v25 = vld [vmem:[#allocation2 + $0xcc] ss:$16 sps:$4 sm:$0xff]  }
  0x44   : > { %v3779_v26 = vld [vmem:[#allocation2 + $0xc0] ss:$16 sps:$4 sm:$0xff]   ;;  %v3780_v27 = vld [vmem:[#allocation2 + $0xc8] ss:$16 sps:$4 sm:$0xff]   ;;  %v3781_v28 = vld [vmem:[#allocation2 + $0xe4] ss:$16 sps:$4 sm:$0xff]  }
  0x45   : > { %1592 = vmatpush1.bf16.msra.mxu0 %v3755_v10  ;;  %1715 = vmatpush1.bf16.msra.mxu1 %v3756_v11  ;;  %v3783_v29 = vld [vmem:[#allocation2 + $0xec] ss:$16 sps:$4 sm:$0xff]   ;;  %p343_p5 = scmp.lt.s32.totalorder %s4315_s9, 1  ;;  %v3785_v30 = vld [vmem:[#allocation2 + $0xe0] ss:$16 sps:$4 sm:$0xff]   ;;  %v4383_v43 = vshrl.u32 %v557_v38, 7 }
  0x46   : > { %1593 = vmatprep.subr.bf16.mxu0 %v3757_v12  ;;  %1716 = vmatprep.subr.bf16.mxu1 %v3759_v13  ;;  %v3786_v31 = vld [vmem:[#allocation2 + $0xe8] ss:$16 sps:$4 sm:$0xff]   ;;  %v3787_v32 = vld [vmem:[#allocation2 + $0x104] ss:$16 sps:$4 sm:$0xff]   ;;  %v3789_v33 = vld [vmem:[#allocation2 + $0x10c] ss:$16 sps:$4 sm:$0xff]  }
  0x47   : > { %v3791_v34 = vld [vmem:[#allocation2 + $0x100] ss:$16 sps:$4 sm:$0xff]   ;;  %v3792_v35 = vld [vmem:[#allocation2 + $0x108] ss:$16 sps:$4 sm:$0xff]   ;;  %s4379_s17 = scalar_select %p343_p5, %s4315_s9, 1  ;;  %vm2247_vm0 = vcmask 1040384  }
  0x48   : > { %v4209_v36 = vmov 1966171168   ;;  %v3793_v39 = vld [vmem:[#allocation2 + $0x124] ss:$16 sps:$4 sm:$0xff]   ;;  %v3795_v40 = vld [vmem:[#allocation2 + $0x12c] ss:$16 sps:$4 sm:$0xff]  }
  0x49   : > { %1594 = vmatpush1.bf16.msra.mxu0 %v3761_v14  ;;  %1717 = vmatpush1.bf16.msra.mxu1 %v3762_v15  ;;  %v555_v37 = vunpack.c.l.s4 %v4209_v36  ;;  %v3797_v41 = vld [vmem:[#allocation2 + $0x120] ss:$16 sps:$4 sm:$0xff]   ;;  %s3565_s19 = smul.u32 6, %s4379_s17  ;;  %v3798_v44 = vld [vmem:[#allocation2 + $0x128] ss:$16 sps:$4 sm:$0xff]   ;;  %s5144_s0 = sld [smem:[#allocation11_spill]] }
  0x4a   : > { %1595 = vmatprep.subr.bf16.mxu0 %v3763_v16  ;;  %1718 = vmatprep.subr.bf16.mxu1 %v3765_v17  ;;  %v3799_v45 = vld [vmem:[#allocation2 + $0x144] ss:$16 sps:$4 sm:$0xff]   ;;  %v3801_v46 = vld [vmem:[#allocation2 + $0x14c] ss:$16 sps:$4 sm:$0xff]   ;;  %v3803_v47 = vld [vmem:[#allocation2 + $0x140] ss:$16 sps:$4 sm:$0xff]  }
  0x4b   : > { %v556_v42 = vunpack.c.0.s8 %v555_v37  ;;  %v3804_v48 = vld [vmem:[#allocation2 + $0x148] ss:$16 sps:$4 sm:$0xff]   ;;  %v3805_v50 = vld [vmem:[#allocation2 + $0x164] ss:$16 sps:$4 sm:$0xff]   ;;  %v3807_v51 = vld [vmem:[#allocation2 + $0x16c] ss:$16 sps:$4 sm:$0xff]  }
  0x4c   : > { %v3809_v53 = vld [vmem:[#allocation2 + $0x160] ss:$16 sps:$4 sm:$0xff]   ;;  %v3810_v55 = vld [vmem:[#allocation2 + $0x168] ss:$16 sps:$4 sm:$0xff]   ;;  %v3811_v56 = vld [vmem:[#allocation2 + $0x184] ss:$16 sps:$4 sm:$0xff]  }
  0x4d   : > { %1596 = vmatpush1.bf16.msra.mxu0 %v3767_v18  ;;  %1719 = vmatpush1.bf16.msra.mxu1 %v3768_v19  ;;  %v559_v49 = vsub.s32 %v556_v42, %v4383_v43  ;;  %v3813_v57 = vld [vmem:[#allocation2 + $0x18c] ss:$16 sps:$4 sm:$0xff]   ;;  %v3815_v59 = vld [vmem:[#allocation2 + $0x180] ss:$16 sps:$4 sm:$0xff]   ;;  %v3816_v61 = vld [vmem:[#allocation2 + $0x188] ss:$16 sps:$4 sm:$0xff]  }
  0x4e   : > { %1597 = vmatprep.subr.bf16.mxu0 %v3769_v20  ;;  %1720 = vmatprep.subr.bf16.mxu1 %v3771_v21  ;;  %v3817_v62 = vld [vmem:[#allocation2 + $0x1a4] ss:$16 sps:$4 sm:$0xff]   ;;  %v3819_v63 = vld [vmem:[#allocation2 + $0x1ac] ss:$16 sps:$4 sm:$0xff]   ;;  %v3821_v0 = vld [vmem:[#allocation2 + $0x1a0] ss:$16 sps:$4 sm:$0xff]  }
  0x4f   : > { %s346_s24 = scalar_lea.vmem %s5144_s0, %s3565_s19  ;;  %v3822_v1 = vld [vmem:[#allocation2 + $0x1a8] ss:$16 sps:$4 sm:$0xff]   ;;  %v3823_v2 = vld [vmem:[#allocation2 + $0x1c4] ss:$16 sps:$4 sm:$0xff]   ;;  %v3825_v3 = vld [vmem:[#allocation2 + $0x1cc] ss:$16 sps:$4 sm:$0xff]  }
  0x50   : > { %v358_v52 = vld [vmem:[%s346_s24] sm:$0x3f]  ;;  %v3828_v5 = vld [vmem:[#allocation2 + $0x1c8] ss:$16 sps:$4 sm:$0xff]   ;;  %v3831_v7 = vld [vmem:[#allocation2 + $0x1ec] ss:$16 sps:$4 sm:$0xff]  }
  0x51   : > { %1598 = vmatpush1.bf16.msra.mxu0 %v3773_v22  ;;  %1721 = vmatpush1.bf16.msra.mxu1 %v3774_v23  ;;  %v560_v54 = vrot.slane %v358_v52, %v559_v49  ;;  %v3827_v4 = vld [vmem:[#allocation2 + $0x1c0] ss:$16 sps:$4 sm:$0xff]   ;;  %v3829_v6 = vld [vmem:[#allocation2 + $0x1e4] ss:$16 sps:$4 sm:$0xff]   ;;  %v553_v8 = vcombine.high %v358_v52, %v358_v52  ;;  %v3834_v10 = vld [vmem:[#allocation2 + $0x1e8] ss:$16 sps:$4 sm:$0xff]  }
  0x52   : > { %1599 = vmatprep.subr.bf16.mxu0 %v3775_v24  ;;  %1722 = vmatprep.subr.bf16.mxu1 %v3777_v25  ;;  %v3833_v9 = vld [vmem:[#allocation2 + $0x1e0] ss:$16 sps:$4 sm:$0xff]   ;;  %v3837_v12 = vld [vmem:[#allocation2 + $0x204] ss:$16 sps:$4 sm:$0xff]   ;;  %v3840_v13 = vld [vmem:[#allocation2 + $0x20c] ss:$16 sps:$4 sm:$0xff]  }
  0x53   : > { %v568_v58 = vcombine.high %v560_v54, %v560_v54  ;;  %v567_v11 = vrot.slane %v553_v8, %v559_v49  ;;  %v3835_v15 = vld [vmem:[#allocation2 + $0x200] ss:$16 sps:$4 sm:$0xff]   ;;  %v4389_v16 = vrot.slane %v560_v54, %v559_v49  ;;  %v3838_v17 = vld [vmem:[#allocation2 + $0x208] ss:$16 sps:$4 sm:$0xff]   ;;  %v3843_v20 = vld [vmem:[#allocation2 + $0x224] ss:$16 sps:$4 sm:$0xff]  }
  0x54   : > { %v3846_v21 = vld [vmem:[#allocation2 + $0x22c] ss:$16 sps:$4 sm:$0xff]   ;;  %v3841_v23 = vld [vmem:[#allocation2 + $0x220] ss:$16 sps:$4 sm:$0xff]   ;;  %v3844_v24 = vld [vmem:[#allocation2 + $0x228] ss:$16 sps:$4 sm:$0xff]  }
  0x55   : > { %1600 = vmatpush1.bf16.msra.mxu0 %v3779_v26  ;;  %1723 = vmatpush1.bf16.msra.mxu1 %v3780_v27  ;;  %v590_v60 = vrot.slane %v568_v58, %v559_v49  ;;  %v569_v14 = vcombine.high %v567_v11, %v567_v11  ;;  %v4393_v19 = vrot.slane %v567_v11, %v559_v49  ;;  %v3849_v25 = vld [vmem:[#allocation2 + $0x244] ss:$16 sps:$4 sm:$0xff]   ;;  %v3852_v26 = vld [vmem:[#allocation2 + $0x24c] ss:$16 sps:$4 sm:$0xff]   ;;  %v3847_v27 = vld [vmem:[#allocation2 + $0x240] ss:$16 sps:$4 sm:$0xff]  }
  0x56   : > { %1601 = vmatprep.subr.bf16.mxu0 %v3781_v28  ;;  %1724 = vmatprep.subr.bf16.mxu1 %v3783_v29  ;;  %v3850_v28 = vld [vmem:[#allocation2 + $0x248] ss:$16 sps:$4 sm:$0xff]   ;;  %v3855_v29 = vld [vmem:[#allocation2 + $0x264] ss:$16 sps:$4 sm:$0xff]   ;;  %v3888_v52 = vld [vmem:[#allocation2 + $0x30c] ss:$16 sps:$4 sm:$0xff]  }
  0x57   : > { %1619 = vmatprep.mubr.bf16.mxu0 %v590_v60  ;;  %1742 = vmatprep.mubr.bf16.mxu1 %v590_v60  ;;  %v4391_v18 = vrot.slane %v569_v14, %v559_v49  ;;  %v599_v22 = vcombine.high %v590_v60, %v590_v60  ;;  %v3862_v36 = vld [vmem:[#allocation2 + $0x288] ss:$16 sps:$4 sm:$0xff]   ;;  %v3867_v37 = vld [vmem:[#allocation2 + $0x2a4] ss:$16 sps:$4 sm:$0xff]   ;;  %v3877_v49 = vld [vmem:[#allocation2 + $0x2e0] ss:$16 sps:$4 sm:$0xff]  }
  0x58   : > { %v3873_v42 = vld [vmem:[#allocation2 + $0x2c4] ss:$16 sps:$4 sm:$0xff]   ;;  %v3886_v54 = vld [vmem:[#allocation2 + $0x308] ss:$16 sps:$4 sm:$0xff]   ;;  %v3900_v60 = vld [vmem:[#allocation2 + $0x34c] ss:$16 sps:$4 sm:$0xff]  }
  0x59   : > { %1602 = vmatpush1.bf16.msra.mxu0 %v3785_v30  ;;  %1725 = vmatpush1.bf16.msra.mxu1 %v3786_v31  ;;  %v3858_v30 = vld [vmem:[#allocation2 + $0x26c] ss:$16 sps:$4 sm:$0xff]   ;;  %v3853_v31 = vld [vmem:[#allocation2 + $0x260] ss:$16 sps:$4 sm:$0xff]   ;;  %v3892_v58 = vld [vmem:[#allocation2 + $0x328] ss:$16 sps:$4 sm:$0xff]  }
  0x5a   : > { %1603 = vmatprep.subr.bf16.mxu0 %v3787_v32  ;;  %1726 = vmatprep.subr.bf16.mxu1 %v3789_v33  ;;  %v3856_v32 = vld [vmem:[#allocation2 + $0x268] ss:$16 sps:$4 sm:$0xff]   ;;  %v3861_v33 = vld [vmem:[#allocation2 + $0x284] ss:$16 sps:$4 sm:$0xff]   ;;  %v3918_v8 = vld [vmem:[#allocation2 + $0x3ac] ss:$16 sps:$4 sm:$0xff]  }
  0x5b   : > { %v3921_v11 = vld [vmem:[#allocation2 + $0x3c4] ss:$16 sps:$4 sm:$0xff]   ;;  %v3922_v14 = vld [vmem:[#allocation2 + $0x3c8] ss:$16 sps:$4 sm:$0xff]   ;;  %s5129_s13 = sshll.u32 %s4379_s17, 3  ;;  %s5145_s1 = sld [smem:[#allocation12_spill]] }
  0x5c   : > { %vm2250_vm1 = vcmask 1041408   ;;  %s4533_s25 = sand.u32 1, %s4196_s28   ;;  %vm2178_vm2 = vcmask 811408   ;;  %vm2189_vm3 = vcmask 401408   ;;  %s4210_s10 = smov 78   ;;  %vm2485_vm4 = vcmask 1042432  }
  0x5d   : > { %1604 = vmatpush1.bf16.msra.mxu0 %v3791_v34  ;;  %1727 = vmatpush1.bf16.msra.mxu1 %v3792_v35  ;;  %v3864_v34 = vld [vmem:[#allocation2 + $0x28c] ss:$16 sps:$4 sm:$0xff]   ;;  %v3859_v35 = vld [vmem:[#allocation2 + $0x280] ss:$16 sps:$4 sm:$0xff]   ;;  %s5131_s26 = scalar_lea.vmem [#allocation5], %s4533_s25  ;;  %s4211_s12 = smov 50  }
  0x5e   : > { %1605 = vmatprep.subr.bf16.mxu0 %v3793_v39  ;;  %1728 = vmatprep.subr.bf16.mxu1 %v3795_v40  ;;  %v3870_v39 = vld [vmem:[#allocation2 + $0x2ac] ss:$16 sps:$4 sm:$0xff]   ;;  %v3865_v40 = vld [vmem:[#allocation2 + $0x2a0] ss:$16 sps:$4 sm:$0xff]   ;;  %s4212_s18 = smov 126   ;;  %s4213_s21 = smov 125  }
  0x5f   : > { %s4215_s19 = smov 123   ;;  %s5130_s20 = scalar_lea.vmem [#allocation6], %s4533_s25  ;;  %vm2259_vm15 = vcmask 908288  }
  0x60   : > { %s4216_s23 = smov 122   ;;  %s4217_s24 = smov 121  }
  0x61   : > { %1606 = vmatpush1.bf16.msra.mxu0 %v3797_v41  ;;  %1729 = vmatpush1.bf16.msra.mxu1 %v3798_v44  ;;  %v3868_v41 = vld [vmem:[#allocation2 + $0x2a8] ss:$16 sps:$4 sm:$0xff]   ;;  %v3876_v44 = vld [vmem:[#allocation2 + $0x2cc] ss:$16 sps:$4 sm:$0xff]   ;;  %s351_s22 = scalar_lea.vmem %s5145_s1, %s5129_s13  ;;  %p5147_p9 = scmp.ne.s32.totalorder %s5136_s15, 0 }
  0x62   : > { %1607 = vmatprep.subr.bf16.mxu0 %v3799_v45  ;;  %1730 = vmatprep.subr.bf16.mxu1 %v3801_v46  ;;  %v3871_v45 = vld [vmem:[#allocation2 + $0x2c0] ss:$16 sps:$4 sm:$0xff]   ;;  %v3874_v46 = vld [vmem:[#allocation2 + $0x2c8] ss:$16 sps:$4 sm:$0xff]  }
  0x65   : > { %1608 = vmatpush1.bf16.msra.mxu0 %v3803_v47  ;;  %1731 = vmatpush1.bf16.msra.mxu1 %v3804_v48  ;;  %v3879_v47 = vld [vmem:[#allocation2 + $0x2e4] ss:$16 sps:$4 sm:$0xff]   ;;  %v3882_v48 = vld [vmem:[#allocation2 + $0x2ec] ss:$16 sps:$4 sm:$0xff]  }
  0x66   : > { %1609 = vmatprep.subr.bf16.mxu0 %v3805_v50  ;;  %1732 = vmatprep.subr.bf16.mxu1 %v3807_v51  ;;  %v3880_v50 = vld [vmem:[#allocation2 + $0x2e8] ss:$16 sps:$4 sm:$0xff]   ;;  %v3885_v51 = vld [vmem:[#allocation2 + $0x304] ss:$16 sps:$4 sm:$0xff]  }
  0x69   : > { %1610 = vmatpush1.bf16.msra.mxu0 %v3809_v53  ;;  %1733 = vmatpush1.bf16.msra.mxu1 %v3810_v55  ;;  %v3883_v53 = vld [vmem:[#allocation2 + $0x300] ss:$16 sps:$4 sm:$0xff]   ;;  %v3891_v55 = vld [vmem:[#allocation2 + $0x324] ss:$16 sps:$4 sm:$0xff]  }
  0x6a   : > { %1611 = vmatprep.subr.bf16.mxu0 %v3811_v56  ;;  %1734 = vmatprep.subr.bf16.mxu1 %v3813_v57  ;;  %v3894_v56 = vld [vmem:[#allocation2 + $0x32c] ss:$16 sps:$4 sm:$0xff]   ;;  %v3889_v57 = vld [vmem:[#allocation2 + $0x320] ss:$16 sps:$4 sm:$0xff]  }
  0x6d   : > { %1612 = vmatpush1.bf16.msra.mxu0 %v3815_v59  ;;  %1735 = vmatpush1.bf16.msra.mxu1 %v3816_v61  ;;  %v3897_v59 = vld [vmem:[#allocation2 + $0x344] ss:$16 sps:$4 sm:$0xff]   ;;  %v3895_v61 = vld [vmem:[#allocation2 + $0x340] ss:$16 sps:$4 sm:$0xff]  }
  0x6e   : > { %1613 = vmatprep.subr.bf16.mxu0 %v3817_v62  ;;  %1736 = vmatprep.subr.bf16.mxu1 %v3819_v63  ;;  %v3898_v62 = vld [vmem:[#allocation2 + $0x348] ss:$16 sps:$4 sm:$0xff]   ;;  %v3903_v63 = vld [vmem:[#allocation2 + $0x364] ss:$16 sps:$4 sm:$0xff]  }
  0x71   : > { %1614 = vmatpush1.bf16.msra.mxu0 %v3821_v0  ;;  %1737 = vmatpush1.bf16.msra.mxu1 %v3822_v1  ;;  %v3906_v0 = vld [vmem:[#allocation2 + $0x36c] ss:$16 sps:$4 sm:$0xff]   ;;  %v3901_v1 = vld [vmem:[#allocation2 + $0x360] ss:$16 sps:$4 sm:$0xff]  }
  0x72   : > { %1615 = vmatprep.subr.bf16.mxu0 %v3823_v2  ;;  %1738 = vmatprep.subr.bf16.mxu1 %v3825_v3  ;;  %v3904_v2 = vld [vmem:[#allocation2 + $0x368] ss:$16 sps:$4 sm:$0xff]   ;;  %v3909_v3 = vld [vmem:[#allocation2 + $0x384] ss:$16 sps:$4 sm:$0xff]  }
  0x75   : > { %1616 = vmatpush1.bf16.msra.mxu0 %v3827_v4  ;;  %1739 = vmatpush1.bf16.msra.mxu1 %v3828_v5  ;;  %v3912_v4 = vld [vmem:[#allocation2 + $0x38c] ss:$16 sps:$4 sm:$0xff]   ;;  %v3907_v5 = vld [vmem:[#allocation2 + $0x380] ss:$16 sps:$4 sm:$0xff]  }
  0x76   : > { %1617 = vmatprep.subr.bf16.mxu0 %v3829_v6  ;;  %1740 = vmatprep.subr.bf16.mxu1 %v3831_v7  ;;  %v3910_v6 = vld [vmem:[#allocation2 + $0x388] ss:$16 sps:$4 sm:$0xff]   ;;  %v3915_v7 = vld [vmem:[#allocation2 + $0x3a4] ss:$16 sps:$4 sm:$0xff]  }
  0x79   : > { %1618 = vmatpush1.bf16.msra.mxu0 %v3833_v9  ;;  %1741 = vmatpush1.bf16.msra.mxu1 %v3834_v10  ;;  %v3913_v9 = vld [vmem:[#allocation2 + $0x3a0] ss:$16 sps:$4 sm:$0xff]   ;;  %v3916_v10 = vld [vmem:[#allocation2 + $0x3a8] ss:$16 sps:$4 sm:$0xff]  }
  0x7a   : > { %1628 = vmatprep.subr.bf16.mxu0 %v3837_v12  ;;  %1751 = vmatprep.subr.bf16.mxu1 %v3840_v13  ;;  %v3924_v12 = vld [vmem:[#allocation2 + $0x3cc] ss:$16 sps:$4 sm:$0xff]   ;;  %v3919_v13 = vld [vmem:[#allocation2 + $0x3c0] ss:$16 sps:$4 sm:$0xff]  }
  0x7c   : > { %1620 = vmatmul.mubr.bf16.vlgmr.msra.gmra.mrb[0].mxu0 %v4389_v16  ;;  %1743 = vmatmul.mubr.bf16.vlgmr.msra.gmra.mrb[0].mxu1 %v4389_v16 }
  0x7d   : > { %1629 = vmatpush1.bf16.msra.mxu0 %v3835_v15  ;;  %1752 = vmatpush1.bf16.msra.mxu1 %v3838_v17  ;;  %v3927_v15 = vld [vmem:[#allocation2 + $0x3e4] ss:$16 sps:$4 sm:$0xff]   ;;  %v3930_v17 = vld [vmem:[#allocation2 + $0x3ec] ss:$16 sps:$4 sm:$0xff]  }
  0x7e   : > { %1630 = vmatprep.subr.bf16.mxu0 %v3843_v20  ;;  %1753 = vmatprep.subr.bf16.mxu1 %v3846_v21  ;;  %v3925_v20 = vld [vmem:[#allocation2 + $0x3e0] ss:$16 sps:$4 sm:$0xff]   ;;  %v3928_v21 = vld [vmem:[#allocation2 + $0x3e8] ss:$16 sps:$4 sm:$0xff]  }
  0x7f   : > { %1660 = vmatprep.mubr.bf16.mxu0 %v599_v22  ;;  %1783 = vmatprep.mubr.bf16.mxu1 %v599_v22  ;;  %v3933_v22 = vld [vmem:[#allocation2 + $0x404] ss:$16 sps:$4 sm:$0xff]  }
  0x81   : > { %1631 = vmatpush1.bf16.msra.mxu0 %v3841_v23  ;;  %1754 = vmatpush1.bf16.msra.mxu1 %v3844_v24  ;;  %v3936_v23 = vld [vmem:[#allocation2 + $0x40c] ss:$16 sps:$4 sm:$0xff]   ;;  %v3931_v24 = vld [vmem:[#allocation2 + $0x400] ss:$16 sps:$4 sm:$0xff]  }
  0x82   : > { %1632 = vmatprep.subr.bf16.mxu0 %v3849_v25  ;;  %1755 = vmatprep.subr.bf16.mxu1 %v3852_v26  ;;  %v3934_v25 = vld [vmem:[#allocation2 + $0x408] ss:$16 sps:$4 sm:$0xff]   ;;  %v598_v26 = vcombine.high %v4389_v16, %v4389_v16 }
  0x83   : > { %v3946_v16 = vld [vmem:[#allocation2 + $0x448] ss:$16 sps:$4 sm:$0xff]  }
  0x85   : > { %1633 = vmatpush1.bf16.msra.mxu0 %v3847_v27  ;;  %1756 = vmatpush1.bf16.msra.mxu1 %v3850_v28  ;;  %v3939_v27 = vld [vmem:[#allocation2 + $0x424] ss:$16 sps:$4 sm:$0xff]   ;;  %v3942_v28 = vld [vmem:[#allocation2 + $0x42c] ss:$16 sps:$4 sm:$0xff]  }
  0x86   : > { %1634 = vmatprep.subr.bf16.mxu0 %v3855_v29  ;;  %1757 = vmatprep.subr.bf16.mxu1 %v3858_v30  ;;  %v3937_v29 = vld [vmem:[#allocation2 + $0x420] ss:$16 sps:$4 sm:$0xff]   ;;  %v3940_v30 = vld [vmem:[#allocation2 + $0x428] ss:$16 sps:$4 sm:$0xff]  }
  0x89   : > { %1635 = vmatpush1.bf16.msra.mxu0 %v3853_v31  ;;  %1758 = vmatpush1.bf16.msra.mxu1 %v3856_v32  ;;  %v3945_v31 = vld [vmem:[#allocation2 + $0x444] ss:$16 sps:$4 sm:$0xff]   ;;  %v3948_v32 = vld [vmem:[#allocation2 + $0x44c] ss:$16 sps:$4 sm:$0xff]  }
  0x8a   : > { %1636 = vmatprep.subr.bf16.mxu0 %v3861_v33  ;;  %1759 = vmatprep.subr.bf16.mxu1 %v3864_v34  ;;  %v3943_v33 = vld [vmem:[#allocation2 + $0x440] ss:$16 sps:$4 sm:$0xff]   ;;  %v3951_v34 = vld [vmem:[#allocation2 + $0x464] ss:$16 sps:$4 sm:$0xff]  }
  0x8d   : > { %1637 = vmatpush1.bf16.msra.mxu0 %v3859_v35  ;;  %1760 = vmatpush1.bf16.msra.mxu1 %v3862_v36  ;;  %v3954_v35 = vld [vmem:[#allocation2 + $0x46c] ss:$16 sps:$4 sm:$0xff]   ;;  %v3949_v36 = vld [vmem:[#allocation2 + $0x460] ss:$16 sps:$4 sm:$0xff]  }
  0x8e   : > { %1638 = vmatprep.subr.bf16.mxu0 %v3867_v37  ;;  %1761 = vmatprep.subr.bf16.mxu1 %v3870_v39  ;;  %v3952_v37 = vld [vmem:[#allocation2 + $0x468] ss:$16 sps:$4 sm:$0xff]   ;;  %v3957_v39 = vld [vmem:[#allocation2 + $0x484] ss:$16 sps:$4 sm:$0xff]  }
  0x91   : > { %1639 = vmatpush1.bf16.msra.mxu0 %v3865_v40  ;;  %1762 = vmatpush1.bf16.msra.mxu1 %v3868_v41  ;;  %v3960_v40 = vld [vmem:[#allocation2 + $0x48c] ss:$16 sps:$4 sm:$0xff]   ;;  %v3955_v41 = vld [vmem:[#allocation2 + $0x480] ss:$16 sps:$4 sm:$0xff]  }
  0x92   : > { %1640 = vmatprep.subr.bf16.mxu0 %v3873_v42  ;;  %1763 = vmatprep.subr.bf16.mxu1 %v3876_v44  ;;  %v3958_v42 = vld [vmem:[#allocation2 + $0x488] ss:$16 sps:$4 sm:$0xff]   ;;  %v3966_v44 = vld [vmem:[#allocation2 + $0x4ac] ss:$16 sps:$4 sm:$0xff]  }
  0x95   : > { %1641 = vmatpush1.bf16.msra.mxu0 %v3871_v45  ;;  %1764 = vmatpush1.bf16.msra.mxu1 %v3874_v46  ;;  %v3961_v45 = vld [vmem:[#allocation2 + $0x4a0] ss:$16 sps:$4 sm:$0xff]   ;;  %v3964_v46 = vld [vmem:[#allocation2 + $0x4a8] ss:$16 sps:$4 sm:$0xff]  }
  0x96   : > { %1642 = vmatprep.subr.bf16.mxu0 %v3879_v47  ;;  %1765 = vmatprep.subr.bf16.mxu1 %v3882_v48  ;;  %v3969_v47 = vld [vmem:[#allocation2 + $0x4c4] ss:$16 sps:$4 sm:$0xff]   ;;  %v3972_v48 = vld [vmem:[#allocation2 + $0x4cc] ss:$16 sps:$4 sm:$0xff]  }
  0x99   : > { %1643 = vmatpush1.bf16.msra.mxu0 %v3877_v49  ;;  %1766 = vmatpush1.bf16.msra.mxu1 %v3880_v50  ;;  %v3967_v49 = vld [vmem:[#allocation2 + $0x4c0] ss:$16 sps:$4 sm:$0xff]   ;;  %v3970_v50 = vld [vmem:[#allocation2 + $0x4c8] ss:$16 sps:$4 sm:$0xff]  }
  0x9a   : > { %1644 = vmatprep.subr.bf16.mxu0 %v3885_v51  ;;  %1767 = vmatprep.subr.bf16.mxu1 %v3888_v52  ;;  %v3975_v51 = vld [vmem:[#allocation2 + $0x4e4] ss:$16 sps:$4 sm:$0xff]   ;;  %v3978_v52 = vld [vmem:[#allocation2 + $0x4ec] ss:$16 sps:$4 sm:$0xff]  }
  0x9d   : > { %1645 = vmatpush1.bf16.msra.mxu0 %v3883_v53  ;;  %1768 = vmatpush1.bf16.msra.mxu1 %v3886_v54  ;;  %v3973_v53 = vld [vmem:[#allocation2 + $0x4e0] ss:$16 sps:$4 sm:$0xff]   ;;  %v3976_v54 = vld [vmem:[#allocation2 + $0x4e8] ss:$16 sps:$4 sm:$0xff]  }
  0x9e   : > { %1646 = vmatprep.subr.bf16.mxu0 %v3891_v55  ;;  %1769 = vmatprep.subr.bf16.mxu1 %v3894_v56  ;;  %v3981_v55 = vld [vmem:[#allocation2 + $0x504] ss:$16 sps:$4 sm:$0xff]   ;;  %v3984_v56 = vld [vmem:[#allocation2 + $0x50c] ss:$16 sps:$4 sm:$0xff]  }
  0xa1   : > { %1647 = vmatpush1.bf16.msra.mxu0 %v3889_v57  ;;  %1770 = vmatpush1.bf16.msra.mxu1 %v3892_v58  ;;  %v3979_v57 = vld [vmem:[#allocation2 + $0x500] ss:$16 sps:$4 sm:$0xff]   ;;  %v3982_v58 = vld [vmem:[#allocation2 + $0x508] ss:$16 sps:$4 sm:$0xff]  }
  0xa2   : > { %1648 = vmatprep.subr.bf16.mxu0 %v3897_v59  ;;  %1771 = vmatprep.subr.bf16.mxu1 %v3900_v60  ;;  %v3987_v59 = vld [vmem:[#allocation2 + $0x524] ss:$16 sps:$4 sm:$0xff]   ;;  %v3990_v60 = vld [vmem:[#allocation2 + $0x52c] ss:$16 sps:$4 sm:$0xff]  }
  0xa5   : > { %1649 = vmatpush1.bf16.msra.mxu0 %v3895_v61  ;;  %1772 = vmatpush1.bf16.msra.mxu1 %v3898_v62  ;;  %v3985_v61 = vld [vmem:[#allocation2 + $0x520] ss:$16 sps:$4 sm:$0xff]   ;;  %v3988_v62 = vld [vmem:[#allocation2 + $0x528] ss:$16 sps:$4 sm:$0xff]  }
  0xa6   : > { %1650 = vmatprep.subr.bf16.mxu0 %v3903_v63  ;;  %1773 = vmatprep.subr.bf16.mxu1 %v3906_v0  ;;  %v3993_v63 = vld [vmem:[#allocation2 + $0x544] ss:$16 sps:$4 sm:$0xff]   ;;  %v3996_v0 = vld [vmem:[#allocation2 + $0x54c] ss:$16 sps:$4 sm:$0xff]  }
  0xa9   : > { %1651 = vmatpush1.bf16.msra.mxu0 %v3901_v1  ;;  %1774 = vmatpush1.bf16.msra.mxu1 %v3904_v2  ;;  %v3991_v1 = vld [vmem:[#allocation2 + $0x540] ss:$16 sps:$4 sm:$0xff]   ;;  %v3994_v2 = vld [vmem:[#allocation2 + $0x548] ss:$16 sps:$4 sm:$0xff]  }
  0xaa   : > { %1652 = vmatprep.subr.bf16.mxu0 %v3909_v3  ;;  %1775 = vmatprep.subr.bf16.mxu1 %v3912_v4  ;;  %v3999_v3 = vld [vmem:[#allocation2 + $0x564] ss:$16 sps:$4 sm:$0xff]   ;;  %v4002_v4 = vld [vmem:[#allocation2 + $0x56c] ss:$16 sps:$4 sm:$0xff]  }
  0xad   : > { %1653 = vmatpush1.bf16.msra.mxu0 %v3907_v5  ;;  %1776 = vmatpush1.bf16.msra.mxu1 %v3910_v6  ;;  %v3997_v5 = vld [vmem:[#allocation2 + $0x560] ss:$16 sps:$4 sm:$0xff]   ;;  %v4000_v6 = vld [vmem:[#allocation2 + $0x568] ss:$16 sps:$4 sm:$0xff]  }
  0xae   : > { %1654 = vmatprep.subr.bf16.mxu0 %v3915_v7  ;;  %1777 = vmatprep.subr.bf16.mxu1 %v3918_v8  ;;  %v4005_v7 = vld [vmem:[#allocation2 + $0x584] ss:$16 sps:$4 sm:$0xff]   ;;  %v4008_v8 = vld [vmem:[#allocation2 + $0x58c] ss:$16 sps:$4 sm:$0xff]  }
  0xb1   : > { %1655 = vmatpush1.bf16.msra.mxu0 %v3913_v9  ;;  %1778 = vmatpush1.bf16.msra.mxu1 %v3916_v10  ;;  %v4003_v9 = vld [vmem:[#allocation2 + $0x580] ss:$16 sps:$4 sm:$0xff]   ;;  %v4006_v10 = vld [vmem:[#allocation2 + $0x588] ss:$16 sps:$4 sm:$0xff]  }
  0xb2   : > { %1656 = vmatprep.subr.bf16.mxu0 %v3921_v11  ;;  %1779 = vmatprep.subr.bf16.mxu1 %v3924_v12  ;;  %v4011_v11 = vld [vmem:[#allocation2 + $0x5a4] ss:$16 sps:$4 sm:$0xff]   ;;  %v4014_v12 = vld [vmem:[#allocation2 + $0x5ac] ss:$16 sps:$4 sm:$0xff]  }
  0xb5   : > { %1657 = vmatpush1.bf16.msra.mxu0 %v3919_v13  ;;  %1780 = vmatpush1.bf16.msra.mxu1 %v3922_v14  ;;  %v4009_v13 = vld [vmem:[#allocation2 + $0x5a0] ss:$16 sps:$4 sm:$0xff]   ;;  %v4012_v14 = vld [vmem:[#allocation2 + $0x5a8] ss:$16 sps:$4 sm:$0xff]  }
  0xb6   : > { %1658 = vmatprep.subr.bf16.mxu0 %v3927_v15  ;;  %1781 = vmatprep.subr.bf16.mxu1 %v3930_v17  ;;  %v4017_v15 = vld [vmem:[#allocation2 + $0x5c4] ss:$16 sps:$4 sm:$0xff]   ;;  %v4020_v17 = vld [vmem:[#allocation2 + $0x5cc] ss:$16 sps:$4 sm:$0xff]  }
  0xb9   : > { %1659 = vmatpush1.bf16.msra.mxu0 %v3925_v20  ;;  %1782 = vmatpush1.bf16.msra.mxu1 %v3928_v21  ;;  %v4015_v20 = vld [vmem:[#allocation2 + $0x5c0] ss:$16 sps:$4 sm:$0xff]   ;;  %v4018_v21 = vld [vmem:[#allocation2 + $0x5c8] ss:$16 sps:$4 sm:$0xff]  }
  0xba   : > { %1669 = vmatprep.subr.bf16.mxu0 %v3933_v22  ;;  %1792 = vmatprep.subr.bf16.mxu1 %v3936_v23  ;;  %v4023_v22 = vld [vmem:[#allocation2 + $0x5e4] ss:$16 sps:$4 sm:$0xff]   ;;  %v4026_v23 = vld [vmem:[#allocation2 + $0x5ec] ss:$16 sps:$4 sm:$0xff]  }
  0xbc   : > { %1661 = vmatmul.mubr.bf16.vlgmr.msra.gmra.mrb[0].mxu0 %v598_v26  ;;  %1784 = vmatmul.mubr.bf16.vlgmr.msra.gmra.mrb[0].mxu1 %v598_v26  ;;  %v4028_v26 = vld [vmem:[%s5121_s4 + $0x40] sm:$0xff]  }
  0xbd   : > { %1670 = vmatpush1.bf16.msra.mxu0 %v3931_v24  ;;  %1793 = vmatpush1.bf16.msra.mxu1 %v3934_v25  ;;  %v4021_v24 = vld [vmem:[#allocation2 + $0x5e0] ss:$16 sps:$4 sm:$0xff]   ;;  %v4024_v25 = vld [vmem:[#allocation2 + $0x5e8] ss:$16 sps:$4 sm:$0xff]  }
  0xbe   : > { %1671 = vmatprep.subr.bf16.mxu0 %v3939_v27  ;;  %1794 = vmatprep.subr.bf16.mxu1 %v3942_v28  ;;  %v4029_v27 = vld [vmem:[%s5121_s4 + $0xc0] sm:$0xff]  }
  0xbf   : > { %1701 = vmatprep.mubr.bf16.mxu0 %v4391_v18  ;;  %1824 = vmatprep.mubr.bf16.mxu1 %v4391_v18  ;;  %v3963_v18 = vld [vmem:[#allocation2 + $0x4a4] ss:$16 sps:$4 sm:$0xff]  }
  0xc0   : > { %v4030_v28 = vld [vmem:[%s5121_s4] sm:$0xff]  }
  0xc1   : > { %1672 = vmatpush1.bf16.msra.mxu0 %v3937_v29  ;;  %1795 = vmatpush1.bf16.msra.mxu1 %v3940_v30  ;;  %v4031_v29 = vld [vmem:[%s5121_s4 + $0x80] sm:$0xff]   ;;  %v4032_v30 = vld [vmem:[%s5121_s4 + $0x48] sm:$0xff]  }
  0xc2   : > { %1673 = vmatprep.subr.bf16.mxu0 %v3945_v31  ;;  %1796 = vmatprep.subr.bf16.mxu1 %v3948_v32  ;;  %v4033_v31 = vld [vmem:[%s5121_s4 + $0xc8] sm:$0xff]  }
  0xc3   : > { %v4034_v32 = vld [vmem:[%s5121_s4 + $0x8] sm:$0xff]  }
  0xc5   : > { %1674 = vmatpush1.bf16.msra.mxu0 %v3943_v33  ;;  %1797 = vmatpush1.bf16.msra.mxu1 %v3946_v16  ;;  %v4035_v33 = vld [vmem:[%s5121_s4 + $0x88] sm:$0xff]   ;;  %v4036_v16 = vld [vmem:[%s5121_s4 + $0x50] sm:$0xff]  }
  0xc6   : > { %1675 = vmatprep.subr.bf16.mxu0 %v3951_v34  ;;  %1798 = vmatprep.subr.bf16.mxu1 %v3954_v35  ;;  %v4038_v34 = vld [vmem:[%s5121_s4 + $0x10] sm:$0xff]  }
  0xc7   : > { %v4039_v35 = vld [vmem:[%s5121_s4 + $0x90] sm:$0xff]  }
  0xc9   : > { %1676 = vmatpush1.bf16.msra.mxu0 %v3949_v36  ;;  %1799 = vmatpush1.bf16.msra.mxu1 %v3952_v37  ;;  %v4040_v36 = vld [vmem:[%s5121_s4 + $0x58] sm:$0xff]  }
  0xca   : > { %1677 = vmatprep.subr.bf16.mxu0 %v3957_v39  ;;  %1800 = vmatprep.subr.bf16.mxu1 %v3960_v40  ;;  %v4041_v37 = vld [vmem:[%s5121_s4 + $0xd8] sm:$0xff]  }
  0xcb   : > { %v4042_v39 = vld [vmem:[%s5121_s4 + $0x18] sm:$0xff]  }
  0xcc   : > { %v4043_v40 = vld [vmem:[%s5121_s4 + $0x98] sm:$0xff]  }
  0xcd   : > { %1678 = vmatpush1.bf16.msra.mxu0 %v3955_v41  ;;  %1801 = vmatpush1.bf16.msra.mxu1 %v3958_v42  ;;  %v4044_v41 = vld [vmem:[%s5121_s4 + $0x60] sm:$0xff]  }
  0xce   : > { %1679 = vmatprep.subr.bf16.mxu0 %v3963_v18  ;;  %1802 = vmatprep.subr.bf16.mxu1 %v3966_v44  ;;  %v4045_v42 = vld [vmem:[%s5121_s4 + $0xe0] sm:$0xff]  }
  0xcf   : > { %v4046_v18 = vld [vmem:[%s5121_s4 + $0x20] sm:$0xff]  }
  0xd0   : > { %v4047_v44 = vld [vmem:[%s5121_s4 + $0xa0] sm:$0xff]  }
  0xd1   : > { %1680 = vmatpush1.bf16.msra.mxu0 %v3961_v45  ;;  %1803 = vmatpush1.bf16.msra.mxu1 %v3964_v46  ;;  %v4048_v45 = vld [vmem:[%s5121_s4 + $0x68] sm:$0xff]  }
  0xd2   : > { %1681 = vmatprep.subr.bf16.mxu0 %v3969_v47  ;;  %1804 = vmatprep.subr.bf16.mxu1 %v3972_v48  ;;  %v4049_v46 = vld [vmem:[%s5121_s4 + $0xe8] sm:$0xff]  }
  0xd3   : > { %v4050_v47 = vld [vmem:[%s5121_s4 + $0x28] sm:$0xff]  }
  0xd4   : > { %v4051_v48 = vld [vmem:[%s5121_s4 + $0xa8] sm:$0xff]  }
  0xd5   : > { %1682 = vmatpush1.bf16.msra.mxu0 %v3967_v49  ;;  %1805 = vmatpush1.bf16.msra.mxu1 %v3970_v50  ;;  %v4052_v49 = vld [vmem:[%s5121_s4 + $0x70] sm:$0xff]  }
  0xd6   : > { %1683 = vmatprep.subr.bf16.mxu0 %v3975_v51  ;;  %1806 = vmatprep.subr.bf16.mxu1 %v3978_v52  ;;  %v4053_v50 = vld [vmem:[%s5121_s4 + $0xf0] sm:$0xff]  }
  0xd7   : > { %v4054_v51 = vld [vmem:[%s5121_s4 + $0x30] sm:$0xff]  }
  0xd8   : > { %v4055_v52 = vld [vmem:[%s5121_s4 + $0xb0] sm:$0xff]  }
  0xd9   : > { %1684 = vmatpush1.bf16.msra.mxu0 %v3973_v53  ;;  %1807 = vmatpush1.bf16.msra.mxu1 %v3976_v54  ;;  %v4056_v53 = vld [vmem:[%s5121_s4 + $0x78] sm:$0xff]  }
  0xda   : > { %1685 = vmatprep.subr.bf16.mxu0 %v3981_v55  ;;  %1808 = vmatprep.subr.bf16.mxu1 %v3984_v56  ;;  %v4057_v54 = vld [vmem:[%s5121_s4 + $0xf8] sm:$0xff]  }
  0xdb   : > { %v4058_v55 = vld [vmem:[%s5121_s4 + $0x38] sm:$0xff]  }
  0xdc   : > { %v4059_v56 = vld [vmem:[%s5121_s4 + $0xb8] sm:$0xff]  }
  0xdd   : > { %1686 = vmatpush1.bf16.msra.mxu0 %v3979_v57  ;;  %1809 = vmatpush1.bf16.msra.mxu1 %v3982_v58  ;;  %v2201_v57 = vld [vmem:[%s351_s22] sm:$0x77]  ;;  %s4214_s22 = smov 124  }
  0xde   : > { %1687 = vmatprep.subr.bf16.mxu0 %v3987_v59  ;;  %1810 = vmatprep.subr.bf16.mxu1 %v3990_v60  ;;  %v2202_v58 = vmul.f32 0.229, %v2201_v57  ;;  %v2210_v59 = vmul.f32 0.225, %v2201_v57  ;;  %v2206_v60 = vmul.f32 0.224, %v2201_v57 }
  0xe1   : > { %1688 = vmatpush1.bf16.msra.mxu0 %v3985_v61  ;;  %1811 = vmatpush1.bf16.msra.mxu1 %v3988_v62  ;;  %v2203_v61 = vadd.f32 0.485, %v2202_v58  ;;  %v2211_v62 = vadd.f32 0.406, %v2210_v59 }
  0xe2   : > { %1689 = vmatprep.subr.bf16.mxu0 %v3993_v63  ;;  %1812 = vmatprep.subr.bf16.mxu1 %v3996_v0  ;;  %v2207_v63 = vadd.f32 0.456, %v2206_v60 }
  0xe3   : > { %v2204_v0 = vmax.f32 %v2203_v61, 0.0 }
  0xe5   : > { %1690 = vmatpush1.bf16.msra.mxu0 %v3991_v1  ;;  %1813 = vmatpush1.bf16.msra.mxu1 %v3994_v2  ;;  %v2212_v1 = vmax.f32 %v2211_v62, 0.0  ;;  %v2208_v2 = vmax.f32 %v2207_v63, 0.0  ;;  %v2356_v62 = vand.u32 127, %v557_v38 }
  0xe6   : > { %1691 = vmatprep.subr.bf16.mxu0 %v3999_v3  ;;  %1814 = vmatprep.subr.bf16.mxu1 %v4002_v4  ;;  %v4506_v3 = vsub.s32 0, %v4383_v43  ;;  %v1577_v4 = vsub.s32 2, %v4383_v43 }
  0xe7   : > { %v2357_v63 = vcvt.s32.f32 %v2356_v62  ;;  %vm2365_vm5 = vcmp.ge.s32.totalorder %v2356_v62, 11  ;;  %vm2366_vm6 = vcmp.le.s32.totalorder %v2356_v62, 29  ;;  %vm2358_vm7 = vcmp.eq.s32.totalorder %v2356_v62, 0 }
  0xe8   : > { %vm2359_vm8 = vcmp.eq.s32.totalorder %v2356_v62, 1  ;;  %vm2367_vm9 = vmand %vm2365_vm5, %vm2366_vm6  ;;  %vm2361_vm11 = vcmp.eq.s32.totalorder %v2356_v62, 8  ;;  %vm2363_vm13 = vcmp.eq.s32.totalorder %v2356_v62, 49  ;;  %vm2308_vm5 = vcmask 7168  }
  0xe9   : > { %1692 = vmatpush1.bf16.msra.mxu0 %v3997_v5  ;;  %1815 = vmatpush1.bf16.msra.mxu1 %v4000_v6  ;;  %v4509_v5 = vmin.f32 %v2204_v0, 1.0  ;;  %v4511_v6 = vmin.f32 %v2212_v1, 1.0  ;;  %v3488_v0 = vadd.f32 -10.0, %v2357_v63  ;;  %vm2360_vm10 = vmor %vm2358_vm7, %vm2359_vm8  ;;  %vm2320_vm6 = vcmask 121856  }
  0xea   : > { %1693 = vmatprep.subr.bf16.mxu0 %v4005_v7  ;;  %1816 = vmatprep.subr.bf16.mxu1 %v4008_v8  ;;  %v4513_v7 = vmin.f32 %v2208_v2, 1.0  ;;  %v1573_v8 = vsub.s32 1, %v4383_v43  ;;  %v2221_v2 = vsub.s32 4, %v4383_v43  ;;  %vm2362_vm12 = vmor %vm2360_vm10, %vm2361_vm11  ;;  %vm2332_vm7 = vcmask 130048  }
  0xeb   : > { %v2391_v1 = vmul.f32 0.05, %v3488_v0  ;;  %vm2364_vm14 = vmor %vm2362_vm12, %vm2363_vm13  ;;  %vm2344_vm8 = vcmask 138240  }
  0xed   : > { %1694 = vmatpush1.bf16.msra.mxu0 %v4003_v9  ;;  %1817 = vmatpush1.bf16.msra.mxu1 %v4006_v10  ;;  %v2240_v9 = vrot.slane %v4511_v6, %v1577_v4  ;;  %v2218_v10 = vrot.slane %v4509_v5, %v4506_v3 }
  0xee   : > { %1695 = vmatprep.subr.bf16.mxu0 %v4011_v11  ;;  %1818 = vmatprep.subr.bf16.mxu1 %v4014_v12  ;;  %v2229_v11 = vrot.slane %v4513_v7, %v1573_v8 }
  0xf0   : > { %v2248_v12 = vsel %vm2247_vm0, %v2218_v10, %v2229_v11 }
  0xf1   : > { %1696 = vmatpush1.bf16.msra.mxu0 %v4009_v13  ;;  %1819 = vmatpush1.bf16.msra.mxu1 %v4012_v14  ;;  %v4522_v13 = vsel %vm2250_vm1, %v2248_v12, %v2240_v9  ;;  %v551_v14 = vld [vmem:[%s5120_s3] sm:$0xf]  ;;  %v2222_v9 = vrot.slane %v4509_v5, %v2221_v2 }
  0xf2   : > { %1697 = vmatprep.subr.bf16.mxu0 %v4017_v15  ;;  %1820 = vmatprep.subr.bf16.mxu1 %v4020_v17  ;;  %v1581_v15 = vsub.s32 3, %v4383_v43  ;;  %v1570_v17 = vrot.slane %v551_v14, %v4506_v3 }
  0xf5   : > { %1698 = vmatpush1.bf16.msra.mxu0 %v4015_v20  ;;  %1821 = vmatpush1.bf16.msra.mxu1 %v4018_v21  ;;  %v1578_v20 = vrot.slane %v551_v14, %v1577_v4  ;;  %v1574_v21 = vrot.slane %v551_v14, %v1573_v8  ;;  %v2232_v4 = vsub.s32 5, %v4383_v43  ;;  %v2243_v8 = vsub.s32 6, %v4383_v43 }
  0xf6   : > { %1699 = vmatprep.subr.bf16.mxu0 %v4023_v22  ;;  %1822 = vmatprep.subr.bf16.mxu1 %v4026_v23  ;;  %v1582_v22 = vrot.slane %v551_v14, %v1581_v15  ;;  %v2486_v14 = vsel %vm2485_vm4, %v4522_v13, 0.0 }
  0xf7   : > { %v2233_v10 = vrot.slane %v4513_v7, %v2232_v4  ;;  %v2244_v11 = vrot.slane %v4511_v6, %v2243_v8 }
  0xf9   : > { %1700 = vmatpush1.bf16.msra.mxu0 %v4021_v24  ;;  %1823 = vmatpush1.bf16.msra.mxu1 %v4024_v25  ;;  %v2249_v12 = vsel %vm2247_vm0, %v2222_v9, %v2233_v10 }
  0xfa   : > { %3501 = vmatprep.subr.bf16.mxu0 %v4028_v26  ;;  %3523 = vmatprep.subr.bf16.mxu1 %v4029_v27  ;;  %v4555_v38 = vsel %vm2250_vm1, %v2249_v12, %v2244_v11 }
  0xfb   : > { %v2487_v15 = vsel %vm2485_vm4, %v4555_v38, 0.0 }
  0xfc   : > { %1702 = vmatmul.mubr.bf16.vlgmr.msra.gmra.mrb[0].mxu0 %v4393_v19  ;;  %1825 = vmatmul.mubr.bf16.vlgmr.msra.gmra.mrb[0].mxu1 %v4393_v19  ;;  %v4037_v19 = vld [vmem:[%s5121_s4 + $0xd0] sm:$0xff]  }
  0xfd   : > { %3502 = vmatpush3.bf16.msra.mxu0 %v4030_v28  ;;  %3524 = vmatpush3.bf16.msra.mxu1 %v4031_v29 }
  0xfe   : > { %3503 = vmatprep.subr.bf16.mxu0 %v4032_v30  ;;  %3525 = vmatprep.subr.bf16.mxu1 %v4033_v31 }
 0x101   : > { %3504 = vmatpush3.bf16.msra.mxu0 %v4034_v32  ;;  %3526 = vmatpush3.bf16.msra.mxu1 %v4035_v33 }
 0x102   : > { %3505 = vmatprep.subr.bf16.mxu0 %v4036_v16  ;;  %3527 = vmatprep.subr.bf16.mxu1 %v4037_v19 }
 0x105   : > { %3506 = vmatpush3.bf16.msra.mxu0 %v4038_v34  ;;  %3528 = vmatpush3.bf16.msra.mxu1 %v4039_v35 }
 0x106   : > { %3507 = vmatprep.subr.bf16.mxu0 %v4040_v36  ;;  %3529 = vmatprep.subr.bf16.mxu1 %v4041_v37 }
 0x109   : > { %3508 = vmatpush3.bf16.msra.mxu0 %v4042_v39  ;;  %3530 = vmatpush3.bf16.msra.mxu1 %v4043_v40 }
 0x10a   : > { %3509 = vmatprep.subr.bf16.mxu0 %v4044_v41  ;;  %3531 = vmatprep.subr.bf16.mxu1 %v4045_v42 }
 0x10d   : > { %3510 = vmatpush3.bf16.msra.mxu0 %v4046_v18  ;;  %3532 = vmatpush3.bf16.msra.mxu1 %v4047_v44  ;;  %v1905_v44 = vld [vmem:[%s5122_s5] sm:$0x1] }
 0x10e   : > { %3511 = vmatprep.subr.bf16.mxu0 %v4048_v45  ;;  %3533 = vmatprep.subr.bf16.mxu1 %v4049_v46 }
 0x111   : > { %3512 = vmatpush3.bf16.msra.mxu0 %v4050_v47  ;;  %3534 = vmatpush3.bf16.msra.mxu1 %v4051_v48 }
 0x112   : > { %3513 = vmatprep.subr.bf16.mxu0 %v4052_v49  ;;  %3535 = vmatprep.subr.bf16.mxu1 %v4053_v50 }
 0x115   : > { %3514 = vmatpush3.bf16.msra.mxu0 %v4054_v51  ;;  %3536 = vmatpush3.bf16.msra.mxu1 %v4055_v52 }
 0x116   : > { %3515 = vmatprep.subr.bf16.mxu0 %v4056_v53  ;;  %3537 = vmatprep.subr.bf16.mxu1 %v4057_v54 }
 0x119   : > { %3516 = vmatpush3.bf16.msra.mxu0 %v4058_v55  ;;  %3538 = vmatpush3.bf16.msra.mxu1 %v4059_v56 }
 0x1cf   : > { %v1703_v23 = vpop.f32.mrb[0].mxu0  ;;  %v1826_v24 = vpop.f32.mrb[0].mxu1 }
 0x1d0   : > { %v3545_v25 = vadd.f32 %v1703_v23, %v1570_v17  ;;  %v3547_v26 = vadd.f32 %v1826_v24, %v1578_v20  ;;  %v1705_v27 = vpop.f32.mrb[1].mxu0  ;;  %v1828_v28 = vpop.f32.mrb[1].mxu1  ;;  %v2488_v17 = vadd.f32 %v2487_v15, %v2486_v14 }
 0x1d1   : > { %v3546_v29 = vadd.f32 %v1705_v27, %v1574_v21  ;;  %v3548_v30 = vadd.f32 %v1828_v28, %v1582_v22  ;;  %v1707_v31 = vpop.f32.mrb[2].mxu0  ;;  %v1830_v32 = vpop.f32.mrb[2].mxu1 }
 0x1d2   : > { %v1833_v33 = vmax.f32 %v3545_v25, 0.0  ;;  %v1835_v16 = vmax.f32 %v3547_v26, 0.0  ;;  %v1708_v19 = vpop.f32.mrb[3].mxu0  ;;  %v1831_v34 = vpop.f32.mrb[3].mxu1  ;;  %v2564_v32 = vsel %vm2485_vm4, %v4522_v13, inf }
 0x1d3   : > { %v1834_v35 = vmax.f32 %v3546_v29, 0.0  ;;  %v1836_v36 = vmax.f32 %v3548_v30, 0.0  ;;  %v2569_v29 = vsel %vm2485_vm4, %v4522_v13, -inf  ;;  %v2570_v30 = vsel %vm2485_vm4, %v4555_v38, -inf }
 0x1d4   : > { %v1837_v40 = vpack.c.bf16 %v1833_v33, %v1833_v33  ;;  %v1839_v41 = vpack.c.bf16 %v1835_v16, %v1835_v16  ;;  %v2571_v31 = vmax.f32 %v2569_v29, %v2570_v30  ;;  %v2565_v33 = vsel %vm2485_vm4, %v4555_v38, inf }
 0x1d5   : > { %v1838_v37 = vpack.c.bf16 %v1834_v35, %v1834_v35  ;;  %v1840_v39 = vpack.c.bf16 %v1836_v36, %v1836_v36  ;;  %v2566_v16 = vmin.f32 %v2564_v32, %v2565_v33  ;;  %vm2295_vm4 = vcmask 1039360  }
 0x1d7   : > { %2130 = vmatprep.mubr.bf16.mxu0 %v1838_v37  ;;  %2170 = vmatprep.mubr.bf16.mxu1 %v1840_v39 }
 0x1d8   : > { %2131 = vmatmul.mubr.bf16.vlgmr.msra.gmra.mrb[4].mxu0 %v1837_v40  ;;  %2171 = vmatmul.mubr.bf16.vlgmr.msra.gmra.mrb[4].mxu1 %v1839_v41 }
 0x2ab   : > { %v3517_v42 = vpop.f32.mrb[4].mxu0  ;;  %v3539_v18 = vpop.f32.mrb[4].mxu1 }
 0x2ac   : > { %v3518_v45 = vpop.f32.mrb[5].mxu0  ;;  %v3540_v46 = vpop.f32.mrb[5].mxu1 }
 0x2ad   : > { %v3519_v47 = vadd.f32 %v3518_v45, %v3517_v42  ;;  %v3541_v48 = vadd.f32 %v3540_v46, %v3539_v18  ;;  %v3520_v49 = vpop.f32.mrb[6].mxu0  ;;  %v3542_v50 = vpop.f32.mrb[6].mxu1 }
 0x2ae   : > { %v3521_v51 = vpop.f32.mrb[7].mxu0  ;;  %v3543_v52 = vpop.f32.mrb[7].mxu1 }
 0x2af   : > { %v2133_v53 = vadd.f32 %v3519_v47, %v1905_v44 }
 0x2b1   : > { %v4535_v54 = vadd.f32 %v3541_v48, %v2133_v53 }
 0x2b3   : > { %v2179_v55 = vsel %vm2178_vm2, %v4535_v54, -inf  ;;  %2195 = vst.msk [vmem:[%s5131_s26] sm:$0x1] %vm2189_vm3, %v4535_v54  ;;  %vm2271_vm2 = vcmask 916480  }
 0x2b4   : > { %2180 = vmax.xlane.f32.xlu0 %v2179_v55 }
 0x341   : > { %v2181_v56 = vpop.xlane.xlu0 %2180 }
 0x342   : > { %v2182_v57 = vsub.f32 %v4535_v54, %v2181_v56 }
 0x344   : > { %v2183_v58 = vmul.f32 1.442695, %v2182_v57 }
 0x346   : > { %4060 = vpow2.f32 %v2183_v58 }
 0x350   : > { %v4061_v59 = vpop.eup %4060 }
 0x351   : > { %2186 = vrot.lane.b32.xlu0 %v4061_v59, %s4210_s10 }
 0x370   : > { %2489 = vadd.xlane.f32.xlu0 %v2488_v17 }
 0x3c3   : > { %v2187_v60 = vpop.permute.xlu0 %2186 }
 0x3c4   : > { %v2190_v61 = vsel %vm2189_vm3, %v2187_v60, 0.0 }
 0x3c5   : > { %2191 = vadd.xlane.f32.xlu1 %v2190_v61 }
 0x3d6   : > { %2393 = vrot.lane.b32.xlu1 %v2391_v1, %s4211_s12  ;;  %s4219_s12 = smov 118  }
 0x3fd   : > { %v2490_v34 = vpop.xlane.xlu0 %2489 }
 0x3fe   : > { %v2491_v48 = vrot.slane %v2490_v34, 4 }
 0x452   : > { %v2192_v43 = vpop.xlane.xlu1 %2191 }
 0x453   : > { %4062 = vrcp.f32 %v2192_v43 }
 0x456   : > { %v2394_v6 = vpop.permute.xlu1 %2393 }
 0x45d   : > { %v4063_v5 = vpop.eup %4062 }
 0x45e   : > { %v2194_v7 = vmul.f32 %v4063_v5, %v4061_v59 }
 0x460   : > { %2197 = vrot.lane.b32.xlu1 %v2194_v7, %s4210_s10  ;;  %v2396_v20 = vmul.f32 %v2394_v6, %v2194_v7 }
 0x464   : > { %2398 = vrot.lane.b32.xlu1 %v2396_v20, %s4210_s10  ;;  %s4218_s10 = smov 119  }
 0x468   : > { %2428 = vrot.lane.b32.xlu1 %v4535_v54, %s4212_s18 }
 0x46c   : > { %2482 = vrot.lane.b32.xlu1 %v4535_v54, %s4213_s21 }
 0x470   : > { %2523 = vrot.lane.b32.xlu1 %v4535_v54, %s4214_s22 }
 0x474   : > { %2545 = vrot.lane.b32.xlu1 %v4535_v54, %s4215_s19 }
 0x4d2   : > { %v4567_v21 = vpop.permute.xlu1 %2197 }
 0x4d3   : > { %2479 = vrot.lane.b32.xlu1 %v4567_v21, %s4213_s21  ;;  %2425 = vrot.lane.b32.xlu0 %v4567_v21, %s4212_s18  ;;  %2200 = vst.msk [vmem:[%s5130_s20] sm:$0x1] %vm2189_vm3, %v4567_v21  ;;  %v2379_v22 = vsel %vm2367_vm9, %v4567_v21, 0.0  ;;  %v2368_v24 = vsel %vm2364_vm14, %v4567_v21, 0.0  ;;  %s4220_s18 = smov 97   ;;  %s4221_s21 = smov 95  }
 0x4d4   : > { %v2380_v23 = vsel %vm2189_vm3, %v2379_v22, 0.0  ;;  %v2369_v26 = vsel %vm2189_vm3, %v2368_v24, 0.0 }
 0x4d6   : > { %v2399_v25 = vpop.permute.xlu1 %2398 }
 0x4d7   : > { %2520 = vrot.lane.b32.xlu0 %v4567_v21, %s4214_s22  ;;  %v2401_v27 = vsel %vm2367_vm9, %v2399_v25, 0.0  ;;  %s4222_s22 = smov 111  }
 0x4d8   : > { %v2402_v28 = vsel %vm2189_vm3, %v2401_v27, 0.0  ;;  %vm2283_vm3 = vcmask 924672  }
 0x4da   : > { %v4614_v19 = vpop.permute.xlu1 %2428 }
 0x4db   : > { %2542 = vrot.lane.b32.xlu0 %v4567_v21, %s4215_s19  ;;  %s4223_s19 = smov 93  }
 0x4de   : > { %v4618_v35 = vpop.permute.xlu1 %2482 }
 0x4df   : > { %2561 = vrot.lane.b32.xlu0 %v4567_v21, %s4216_s23  ;;  %s4224_s23 = smov 98  }
 0x4e2   : > { %v4626_v37 = vpop.permute.xlu1 %2523 }
 0x4e6   : > { %v4632_v40 = vpop.permute.xlu1 %2545 }
 0x4f7   : > { %2381 = vadd.xlane.f32.xlu1 %v2380_v23 }
 0x4fe   : > { %2370 = vadd.xlane.f32.xlu0 %v2369_v26 }
 0x502   : > { %2403 = vadd.xlane.f32.xlu0 %v2402_v28 }
 0x508   : > { %2586 = vrot.lane.b32.xlu1 %v4567_v21, %s4217_s24 }
 0x50c   : > { %2712 = vrot.lane.b32.xlu1 %v4567_v21, %s4218_s10  ;;  %s4225_s10 = smov 112  }
 0x510   : > { %2725 = vrot.lane.b32.xlu1 %v4535_v54, %s4219_s12 }
 0x514   : > { %2779 = vrot.lane.b32.xlu1 %v4567_v21, %s4220_s18  ;;  %s4226_s18 = smov 96  }
 0x518   : > { %2811 = vrot.lane.b32.xlu1 %v4567_v21, %s4221_s21  ;;  %2589 = vrot.lane.b32.xlu0 %v4535_v54, %s4217_s24  ;;  %s4227_s21 = smov 94   ;;  %s4228_s24 = smov 113   ;;  %v2492_v54 = vadd.f32 %v2491_v48, %v2490_v34  ;;  %v2431_v34 = vmul.f32 0.299, %v4522_v13 }
 0x51a   : > { %v2493_v62 = vrot.slane %v2492_v54, 2 }
 0x51c   : > { %2255 = vrot.lane.b32.xlu1 %v4522_v13, %s4222_s22  ;;  %2722 = vrot.lane.b32.xlu0 %v4567_v21, %s4219_s12  ;;  %s4229_s12 = smov 91   ;;  %v2494_v12 = vadd.f32 %v2493_v62, %v2492_v54 }
 0x51e   : > { %v2495_v5 = vrot.slane %v2494_v12, 1 }
 0x520   : > { %2843 = vrot.lane.b32.xlu1 %v4567_v21, %s4223_s19  ;;  %2763 = vrot.lane.b32.xlu0 %v4567_v21, %s4224_s23  ;;  %s4231_s19 = smov 1   ;;  %s4232_s23 = smov 92   ;;  %v2496_v7 = vadd.f32 %v2495_v5, %v2494_v12 }
 0x524   : > { %2269 = vrot.lane.b32.xlu1 %v4555_v38, %s4225_s10  ;;  %2795 = vrot.lane.b32.xlu0 %v4567_v21, %s4226_s18  ;;  %s4234_s18 = smov 15  }
 0x528   : > { %2827 = vrot.lane.b32.xlu0 %v4567_v21, %s4227_s21  ;;  %s4235_s21 = smov 16  }
 0x52c   : > { %2257 = vrot.lane.b32.xlu0 %v4555_v38, %s4222_s22  ;;  %s4230_s22 = smov 127  }
 0x530   : > { %2267 = vrot.lane.b32.xlu0 %v4522_v13, %s4225_s10  ;;  %s4233_s10 = smov 89  }
 0x545   : > { %v4622_v36 = vpop.permute.xlu0 %2425  ;;  %v2480_v41 = vpop.permute.xlu1 %2479 }
 0x548   : > { %2572 = vmax.xlane.f32.xlu1 %v2571_v31 }
 0x549   : > { %v4630_v39 = vpop.permute.xlu0 %2520 }
 0x54d   : > { %v4636_v42 = vpop.permute.xlu0 %2542 }
 0x54f   : > { %2567 = vmin.xlane.f32.xlu0 %v2566_v16  ;;  %v2433_v16 = vmul.f32 0.587, %v4522_v13 }
 0x551   : > { %v2562_v45 = vpop.permute.xlu0 %2561 }
 0x559   : > { %2279 = vrot.lane.b32.xlu1 %v4522_v13, %s4228_s24 }
 0x55d   : > { %2875 = vrot.lane.b32.xlu1 %v4567_v21, %s4229_s12  ;;  %s4236_s12 = smov 90  }
 0x561   : > { %2293 = vrot.lane.b32.xlu1 %v4555_v38, %s4230_s22 }
 0x565   : > { %2303 = vrot.lane.b32.xlu1 %v4555_v38, %s4231_s19  ;;  %2859 = vrot.lane.b32.xlu0 %v4567_v21, %s4232_s23  ;;  %s4237_s23 = smov 87  }
 0x569   : > { %2907 = vrot.lane.b32.xlu1 %v4567_v21, %s4233_s10  ;;  %2281 = vrot.lane.b32.xlu0 %v4555_v38, %s4228_s24  ;;  %s4238_s24 = smov 17   ;;  %s4240_s10 = smov 88  }
 0x56d   : > { %2318 = vrot.lane.b32.xlu1 %v4522_v13, %s4234_s18  ;;  %2291 = vrot.lane.b32.xlu0 %v4522_v13, %s4230_s22  ;;  %s4239_s22 = smov 85  }
 0x571   : > { %2327 = vrot.lane.b32.xlu1 %v4555_v38, %s4235_s21  ;;  %2891 = vrot.lane.b32.xlu0 %v4567_v21, %s4236_s12  ;;  %s4243_s12 = smov 86  }
 0x575   : > { %2939 = vrot.lane.b32.xlu1 %v4567_v21, %s4237_s23  ;;  %2306 = vrot.lane.b32.xlu0 %v4522_v13, %s4231_s19  ;;  %s4241_s19 = smov 83   ;;  %s4245_s23 = smov 82  }
 0x579   : > { %2342 = vrot.lane.b32.xlu1 %v4522_v13, %s4238_s24  ;;  %2315 = vrot.lane.b32.xlu0 %v4555_v38, %s4234_s18  ;;  %s4242_s18 = smov 81  }
 0x57d   : > { %2971 = vrot.lane.b32.xlu1 %v4567_v21, %s4239_s22  ;;  %2923 = vrot.lane.b32.xlu0 %v4567_v21, %s4240_s10 }
 0x581   : > { %3003 = vrot.lane.b32.xlu1 %v4567_v21, %s4241_s19  ;;  %2330 = vrot.lane.b32.xlu0 %v4522_v13, %s4235_s21  ;;  %s4244_s21 = smov 84  }
 0x584   : > { %v2382_v18 = vpop.xlane.xlu1 %2381 }
 0x585   : > { %v2383_v44 = vrot.slane %v2382_v18, 4  ;;  %3035 = vrot.lane.b32.xlu1 %v4567_v21, %s4242_s18  ;;  %2339 = vrot.lane.b32.xlu0 %v4555_v38, %s4238_s24  ;;  %s4246_s24 = smov 80  }
 0x587   : > { %v2384_v46 = vadd.f32 %v2383_v44, %v2382_v18 }
 0x588   : > { %v2587_v47 = vpop.permute.xlu1 %2586 }
 0x589   : > { %2955 = vrot.lane.b32.xlu0 %v4567_v21, %s4243_s12  ;;  %v2385_v49 = vrot.slane %v2384_v46, 2 }
 0x58b   : > { %v2371_v50 = vpop.xlane.xlu0 %2370  ;;  %v2386_v56 = vadd.f32 %v2385_v49, %v2384_v46 }
 0x58c   : > { %v2372_v51 = vrot.slane %v2371_v50, 4  ;;  %v4643_v52 = vpop.permute.xlu1 %2712 }
 0x58d   : > { %2987 = vrot.lane.b32.xlu0 %v4567_v21, %s4244_s21  ;;  %v2387_v0 = vrot.slane %v2386_v56, 1 }
 0x58e   : > { %v2373_v53 = vadd.f32 %v2372_v51, %v2371_v50 }
 0x58f   : > { %v2404_v55 = vpop.xlane.xlu0 %2403  ;;  %v2388_v11 = vadd.f32 %v2387_v0, %v2386_v56 }
 0x590   : > { %v2374_v57 = vrot.slane %v2373_v53, 2  ;;  %v2405_v58 = vrot.slane %v2404_v55, 4  ;;  %v4646_v59 = vpop.permute.xlu1 %2725 }
 0x591   : > { %3019 = vrot.lane.b32.xlu0 %v4567_v21, %s4245_s23 }
 0x592   : > { %v2406_v60 = vadd.f32 %v2405_v58, %v2404_v55  ;;  %v2375_v61 = vadd.f32 %v2374_v57, %v2373_v53 }
 0x593   : > { %v2590_v63 = vpop.permute.xlu0 %2589 }
 0x594   : > { %v2407_v1 = vrot.slane %v2406_v60, 2  ;;  %v2376_v2 = vrot.slane %v2375_v61, 1  ;;  %v4649_v4 = vpop.permute.xlu1 %2779 }
 0x595   : > { %3051 = vrot.lane.b32.xlu0 %v4567_v21, %s4246_s24 }
 0x596   : > { %v2377_v8 = vadd.f32 %v2376_v2, %v2375_v61  ;;  %v2408_v9 = vadd.f32 %v2407_v1, %v2406_v60 }
 0x597   : > { %v4652_v10 = vpop.permute.xlu0 %2722 }
 0x598   : > { %3566 = vpush %v2377_v8  ;;  %v2409_v14 = vrot.slane %v2408_v9, 1  ;;  %v4654_v17 = vpop.permute.xlu1 %2811 }
 0x599   : > { %3568 = vpush %v2388_v11 }
 0x59a   : > { %v2410_v15 = vadd.f32 %v2409_v14, %v2408_v9 }
 0x59b   : > { %v4656_v43 = vpop.permute.xlu0 %2763 }
 0x59c   : > { %3570 = vpush %v2410_v15  ;;  %v2256_v20 = vpop.permute.xlu1 %2255 }
 0x59d   : > { %3572 = vpush %v4622_v36  ;;  %v2437_v36 = vrot.slane %v2433_v16, 1 }
 0x59e   : > { %3574 = vpush %v4614_v19  ;;  %v2434_v19 = vmul.f32 0.587, %v4555_v38 }
 0x59f   : > { %3576 = vpush %v2480_v41  ;;  %v4660_v6 = vpop.permute.xlu0 %2795  ;;  %v2441_v41 = vadd.f32 %v2437_v36, %v2431_v34 }
 0x5a0   : > { %3578 = vpush %v4618_v35  ;;  %v4669_v22 = vpop.permute.xlu1 %2843  ;;  %v2432_v35 = vmul.f32 0.299, %v4555_v38 }
 0x5a1   : > { %3580 = vpush %v2496_v7 }
 0x5a2   : > { %3582 = vpush %v4630_v39  ;;  %v2443_v39 = vmul.f32 0.114, %v4522_v13 }
 0x5a3   : > { %3584 = vpush %v4626_v37  ;;  %v4665_v21 = vpop.permute.xlu0 %2827  ;;  %v2438_v37 = vrot.slane %v2434_v19, 1 }
 0x5a4   : > { %3586 = vpush %v4636_v42  ;;  %v2270_v28 = vpop.permute.xlu1 %2269  ;;  %v2447_v18 = vrot.slane %v2443_v39, 2 }
 0x5a5   : > { %3588 = vpush %v4632_v40  ;;  %v2444_v40 = vmul.f32 0.114, %v4555_v38  ;;  %v2442_v42 = vadd.f32 %v2438_v37, %v2432_v35 }
 0x5a6   : > { %3590 = vpush %v2562_v45  ;;  %v4683_v45 = vadd.f32 %v2447_v18, %v2441_v41 }
 0x5a7   : > { %3592 = vpush %v2587_v47  ;;  %v2258_v23 = vpop.permute.xlu0 %2257  ;;  %v2448_v44 = vrot.slane %v2444_v40, 2 }
 0x5a8   : > { %3594 = vpush %v2590_v63  ;;  %v2260_v24 = vsel %vm2259_vm15, %v2256_v20, %v2258_v23  ;;  %v2264_v25 = vsel %vm2259_vm15, %v2258_v23, %v2256_v20  ;;  %v2456_v47 = vrot.slane %v4683_v45, %v4506_v3 }
 0x5a9   : > { %v2265_v26 = vadd.f32 %v2260_v24, %v4522_v13  ;;  %v2266_v27 = vadd.f32 %v2264_v25, %v4555_v38  ;;  %v4685_v46 = vadd.f32 %v2448_v44, %v2442_v42 }
 0x5aa   : > { %v2463_v49 = vsub.f32 %v4522_v13, %v2456_v47 }
 0x5ab   : > { %v2268_v29 = vpop.permute.xlu0 %2267  ;;  %v2460_v48 = vrot.slane %v4685_v46, %v4506_v3 }
 0x5ac   : > { %v2272_v30 = vsel %vm2271_vm2, %v2268_v29, %v2270_v28  ;;  %v2276_v31 = vsel %vm2271_vm2, %v2270_v28, %v2268_v29 }
 0x5ad   : > { %v4673_v32 = vadd.f32 %v2272_v30, %v2265_v26  ;;  %v4675_v33 = vadd.f32 %v2276_v31, %v2266_v27  ;;  %v2464_v50 = vsub.f32 %v4555_v38, %v2460_v48 }
 0x5c9   : > { %s4687_s22 = spop %3566 }
 0x5ca   : > { %s4689_s10 = spop %3568 }
 0x5cd   : > { %s4691_s19 = spop %3570 }
 0x5ce   : > { %s4697_s18 = spop %3572 }
 0x5cf   : > { %s3575_s12 = spop %3574  ;;  %v2474_v14 = vstv %s4697_s18 }
 0x5d0   : > { %s2461_s21 = smul.f32 5.0, %s3575_s12  ;;  %s4699_s23 = spop %3576 }
 0x5d1   : > { %s3579_s24 = spop %3578  ;;  %v2515_v31 = vstv %s4699_s23 }
 0x5d2   : > { %s2462_s13 = sadd.f32 1.0, %s2461_s21  ;;  %s2501_s20 = smul.f32 3.0, %s3579_s24 }
 0x5d3   : > { %s3581_s26 = spop %3580 }
 0x5d4   : > { %v2465_v51 = vstv %s2462_s13  ;;  %s2502_s0 = sadd.f32 1.0, %s2501_s20  ;;  %s2500_s1 = smul.f32 0.0013020834, %s3581_s26 }
 0x5d5   : > { %v2466_v53 = vmul.f32 %v2465_v51, %v2463_v49  ;;  %v2467_v54 = vmul.f32 %v2465_v51, %v2464_v50  ;;  %s4703_s2 = spop %3582  ;;  %v2573_v3 = vpop.xlane.xlu1 %2572 }
 0x5d6   : > { %v2506_v55 = vstv %s2502_s0  ;;  %v2503_v56 = vstv %s2500_s1  ;;  %s4705_s12 = spop %3584 }
 0x5d7   : > { %v2468_v57 = vadd.f32 %v2466_v53, %v2456_v47  ;;  %v2469_v58 = vadd.f32 %v2467_v54, %v2460_v48  ;;  %v2504_v60 = vsub.f32 %v4522_v13, %v2503_v56  ;;  %v2505_v61 = vsub.f32 %v4555_v38, %v2503_v56  ;;  %s4709_s21 = spop %3586  ;;  %s2526_s23 = smul.f32 10.0, %s4705_s12 }
 0x5d8   : > { %s3589_s13 = spop %3588  ;;  %v2556_v42 = vstv %s4709_s21 }
 0x5d9   : > { %v2470_v62 = vmax.f32 %v2468_v57, 0.0  ;;  %v2471_v63 = vmax.f32 %v2469_v58, 0.0  ;;  %v2507_v0 = vmul.f32 %v2506_v55, %v2504_v60  ;;  %v2508_v1 = vmul.f32 %v2506_v55, %v2505_v61  ;;  %s2548_s26 = smul.f32 0.6, %s3589_s13  ;;  %v4711_v2 = vpop.permute.xlu1 %2279  ;;  %s4713_s0 = spop %3590 }
 0x5da   : > { %s4715_s1 = spop %3592  ;;  %v2581_v61 = vstv %s4713_s0  ;;  %s2527_s21 = sadd.f32 1.0, %s2526_s23 }
 0x5db   : > { %v2472_v8 = vmin.f32 %v2470_v62, 1.0  ;;  %v2473_v9 = vmin.f32 %v2471_v63, 1.0  ;;  %v2509_v11 = vadd.f32 %v2507_v0, %v2503_v56  ;;  %v2510_v12 = vadd.f32 %v2508_v1, %v2503_v56  ;;  %s3595_s20 = spop %3594 }
 0x5dc   : > { %v2549_v15 = vstv %s2548_s26  ;;  %v2568_v5 = vpop.xlane.xlu0 %2567  ;;  %s4722_s24 = smul.f32 2.0, %s3595_s20 }
 0x5dd   : > { %v4718_v7 = vmul.f32 %v2474_v14, %v2472_v8  ;;  %v4720_v20 = vmul.f32 %v2474_v14, %v2473_v9  ;;  %v2511_v23 = vmax.f32 %v2509_v11, 0.0  ;;  %v2512_v24 = vmax.f32 %v2510_v12, 0.0  ;;  %v4724_v25 = vpop.permute.xlu1 %2875 }
 0x5de   : > { %v2550_v26 = vadd.f32 %v2549_v15, %v4522_v13  ;;  %v2551_v27 = vadd.f32 %v2549_v15, %v4555_v38  ;;  %s4730_s18 = smul.f32 %s4722_s24, %s4722_s24  ;;  %v2576_v30 = vsub.f32 %v2573_v3, %v2568_v5  ;;  %v2574_v53 = vsub.f32 %v4522_v13, %v2568_v5 }
 0x5df   : > { %v2513_v28 = vmin.f32 %v2511_v23, 1.0  ;;  %v2514_v29 = vmin.f32 %v2512_v24, 1.0  ;;  %v2575_v54 = vsub.f32 %v4555_v38, %v2568_v5 }
 0x5e0   : > { %v2552_v16 = vmax.f32 %v2550_v26, 0.0  ;;  %v2553_v19 = vmax.f32 %v2551_v27, 0.0  ;;  %v4733_v34 = vpop.permute.xlu0 %2859  ;;  %s2638_s13 = sadd.f32 1.0, %s4730_s18  ;;  %v2577_v37 = vadd.f32 1e-06, %v2576_v30 }
 0x5e1   : > { %v4735_v35 = vmul.f32 %v2515_v31, %v2513_v28  ;;  %v4737_v36 = vmul.f32 %v2515_v31, %v2514_v29  ;;  %v2294_v39 = vpop.permute.xlu1 %2293 }
 0x5e2   : > { %v2554_v40 = vmin.f32 %v2552_v16, 1.0  ;;  %v2555_v41 = vmin.f32 %v2553_v19, 1.0  ;;  %v2640_v18 = vstv %s2638_s13  ;;  %4064 = vrcp.f32 %v2577_v37 }
 0x5e3   : > { %4066 = vrcp.f32 %v2640_v18  ;;  %v2412_v18 = vstv %s4687_s22  ;;  %s2644_s22 = smul.f32 2.0, %s4722_s24  ;;  %s5132_s24 = sshll.u32 %s4315_s9, 4 }
 0x5e4   : > { %v4741_v44 = vmul.f32 %v2556_v42, %v2554_v40  ;;  %v4743_v47 = vmul.f32 %v2556_v42, %v2555_v41  ;;  %v2282_v48 = vpop.permute.xlu0 %2281 }
 0x5e5   : > { %v2304_v49 = vpop.permute.xlu1 %2303  ;;  %v2284_v1 = vsel %vm2283_vm3, %v4711_v2, %v2282_v48  ;;  %v2288_v8 = vsel %vm2283_vm3, %v2282_v48, %v4711_v2 }
 0x5e6   : > { %v2289_v12 = vadd.f32 %v2284_v1, %v4673_v32  ;;  %v2290_v14 = vadd.f32 %v2288_v8, %v4675_v33  ;;  %v2528_v1 = vstv %s2527_s21  ;;  %s4828_s21 = scalar_lea.hbm %s5124_s7, %s5132_s24 }
 0x5e8   : > { %v2292_v50 = vpop.permute.xlu0 %2291 }
 0x5e9   : > { %v4745_v51 = vpop.permute.xlu1 %2907  ;;  %v2296_v15 = vsel %vm2295_vm4, %v2292_v50, %v2294_v39 }
 0x5ea   : > { %v2301_v23 = vadd.f32 %v2296_v15, %v2289_v12 }
 0x5ec   : > { %v4749_v3 = vpop.permute.xlu0 %2891  ;;  %v4065_v55 = vpop.eup %4064 }
 0x5ed   : > { %v4067_v56 = vpop.eup %4066  ;;  %v2579_v57 = vmul.f32 %v4065_v55, %v2574_v53  ;;  %v2580_v58 = vmul.f32 %v4065_v55, %v2575_v54  ;;  %v2319_v60 = vpop.permute.xlu1 %2318  ;;  %v2413_v54 = vmul.f32 %v2412_v18, %v4522_v13  ;;  %v2414_v55 = vmul.f32 %v2412_v18, %v4555_v38 }
 0x5ee   : > { %3596 = vpush %v4067_v56  ;;  %v2415_v56 = vstv %s4689_s10  ;;  %v2594_v18 = vmul.f32 0.596, %v4555_v38 }
 0x5ef   : > { %v4752_v62 = vmul.f32 %v2581_v61, %v2579_v57  ;;  %v4754_v63 = vmul.f32 %v2581_v61, %v2580_v58  ;;  %3598 = vpush %v4643_v52  ;;  %v2300_v52 = vsel %vm2295_vm4, %v2294_v39, %v2292_v50 }
 0x5f0   : > { %v2307_v0 = vpop.permute.xlu0 %2306  ;;  %3600 = vpush %v4652_v10  ;;  %v2302_v24 = vadd.f32 %v2300_v52, %v2290_v14 }
 0x5f1   : > { %3602 = vpush %v4646_v59  ;;  %v2328_v9 = vpop.permute.xlu1 %2327  ;;  %v2309_v10 = vsel %vm2308_vm5, %v2307_v0, %v2304_v49  ;;  %v2312_v59 = vsel %vm2308_vm5, %v2304_v49, %v2307_v0  ;;  %v2420_v0 = vstv %s4691_s19 }
 0x5f2   : > { %v2313_v32 = vadd.f32 %v2312_v59, %v2301_v23  ;;  %v2314_v28 = vadd.f32 %v2309_v10, %v2302_v24 }
 0x5f4   : > { %v2316_v11 = vpop.permute.xlu0 %2315 }
 0x5f5   : > { %v4765_v26 = vpop.permute.xlu1 %2939  ;;  %v2321_v2 = vsel %vm2320_vm6, %v2319_v60, %v2316_v11  ;;  %v2324_v27 = vsel %vm2320_vm6, %v2316_v11, %v2319_v60 }
 0x5f6   : > { %v2325_v31 = vadd.f32 %v2324_v27, %v2313_v32  ;;  %v2326_v16 = vadd.f32 %v2321_v2, %v2314_v28 }
 0x5f8   : > { %v4763_v5 = vpop.permute.xlu0 %2923 }
 0x5f9   : > { %v2343_v19 = vpop.permute.xlu1 %2342 }
 0x5fc   : > { %v2331_v33 = vpop.permute.xlu0 %2330 }
 0x5fd   : > { %v2333_v29 = vsel %vm2332_vm7, %v2331_v33, %v2328_v9  ;;  %v2336_v30 = vsel %vm2332_vm7, %v2328_v9, %v2331_v33 }
 0x5fe   : > { %v2337_v37 = vadd.f32 %v2336_v30, %v2325_v31  ;;  %v2338_v39 = vadd.f32 %v2333_v29, %v2326_v16  ;;  %v2537_v31 = vstv %s4703_s2  ;;  %s2639_s2 = ssub.f32 1.0, %s4730_s18 }
 0x600   : > { %v2340_v40 = vpop.permute.xlu0 %2339 }
 0x601   : > { %v2345_v41 = vsel %vm2344_vm8, %v2343_v19, %v2340_v40  ;;  %v2348_v42 = vsel %vm2344_vm8, %v2340_v40, %v2343_v19 }
 0x602   : > { %v2349_v48 = vadd.f32 %v2348_v42, %v2337_v37  ;;  %v2350_v49 = vadd.f32 %v2345_v41, %v2338_v39  ;;  %v2595_v37 = vmul.f32 0.274, %v4522_v13  ;;  %v2596_v41 = vmul.f32 0.274, %v4555_v38 }
 0x604   : > { %v2351_v50 = vmul.f32 0.11111111, %v2349_v48  ;;  %v2352_v53 = vmul.f32 0.11111111, %v2350_v49  ;;  %v2605_v48 = vmul.f32 0.322, %v4522_v13 }
 0x605   : > { %v2599_v49 = vrot.slane %v2595_v37, 1 }
 0x606   : > { %v4773_v57 = vsub.f32 %v4522_v13, %v2351_v50  ;;  %v4776_v58 = vsub.f32 %v4555_v38, %v2352_v53  ;;  %v2416_v60 = vmul.f32 %v2415_v56, %v2351_v50  ;;  %v2417_v61 = vmul.f32 %v2415_v56, %v2352_v53 }
 0x607   : > { %v2627_v56 = vmul.f32 0.312, %v4522_v13 }
 0x608   : > { %v2418_v8 = vadd.f32 %v2416_v60, %v2413_v54  ;;  %v2419_v9 = vadd.f32 %v2417_v61, %v2414_v55  ;;  %v2421_v11 = vmul.f32 %v2420_v0, %v4773_v57  ;;  %v2422_v12 = vmul.f32 %v2420_v0, %v4776_v58 }
 0x609   : > { %v2529_v14 = vmul.f32 %v2528_v1, %v4773_v57  ;;  %v2530_v15 = vmul.f32 %v2528_v1, %v4776_v58  ;;  %v2600_v55 = vrot.slane %v2596_v41, 1  ;;  %v2616_v60 = vmul.f32 0.211, %v4555_v38 }
 0x60a   : > { %v2423_v52 = vadd.f32 %v2421_v11, %v2418_v8  ;;  %v2424_v10 = vadd.f32 %v2422_v12, %v2419_v9  ;;  %v2628_v0 = vmul.f32 0.312, %v4555_v38  ;;  %v2609_v8 = vrot.slane %v2605_v48, 2 }
 0x60b   : > { %v2531_v59 = vadd.f32 %v2529_v14, %v2351_v50  ;;  %v2532_v23 = vadd.f32 %v2530_v15, %v2352_v53  ;;  %v2606_v50 = vmul.f32 0.322, %v4555_v38 }
 0x60c   : > { %v2477_v24 = vadd.f32 %v4718_v7, %v2423_v52  ;;  %v2478_v2 = vadd.f32 %v4720_v20, %v2424_v10  ;;  %v2617_v7 = vmul.f32 0.523, %v4522_v13  ;;  %v2618_v20 = vmul.f32 0.523, %v4555_v38 }
 0x60d   : > { %v2533_v27 = vmax.f32 %v2531_v59, 0.0  ;;  %v2534_v32 = vmax.f32 %v2532_v23, 0.0  ;;  %v2610_v9 = vrot.slane %v2606_v50, 2  ;;  %v2632_v14 = vrot.slane %v2628_v0, 2 }
 0x60e   : > { %v2518_v28 = vadd.f32 %v4735_v35, %v2477_v24  ;;  %v2519_v33 = vadd.f32 %v4737_v36, %v2478_v2  ;;  %v2593_v36 = vmul.f32 0.596, %v4522_v13  ;;  %v2622_v61 = vrot.slane %v2618_v20, 1 }
 0x60f   : > { %v2535_v29 = vmin.f32 %v2533_v27, 1.0  ;;  %v2536_v30 = vmin.f32 %v2534_v32, 1.0 }
 0x610   : > { %v2603_v1 = vsub.f32 %v2593_v36, %v2599_v49  ;;  %v2626_v12 = vsub.f32 %v2616_v60, %v2622_v61 }
 0x611   : > { %v2538_v16 = vmul.f32 %v2537_v31, %v2535_v29  ;;  %v2539_v19 = vmul.f32 %v2537_v31, %v2536_v30 }
 0x612   : > { %v2613_v15 = vsub.f32 %v2603_v1, %v2609_v8  ;;  %v2636_v59 = vadd.f32 %v2632_v14, %v2626_v12 }
 0x613   : > { %v2540_v39 = vadd.f32 %v2538_v16, %v2518_v28  ;;  %v2541_v40 = vadd.f32 %v2539_v19, %v2519_v33 }
 0x615   : > { %v2559_v42 = vadd.f32 %v4741_v44, %v2540_v39  ;;  %v2560_v35 = vadd.f32 %v4743_v47, %v2541_v40  ;;  %v2615_v44 = vmul.f32 0.211, %v4522_v13  ;;  %v2621_v47 = vrot.slane %v2617_v7, 1 }
 0x617   : > { %v4799_v53 = vadd.f32 %v4752_v62, %v2559_v42  ;;  %v4802_v54 = vadd.f32 %v4754_v63, %v2560_v35  ;;  %v2604_v62 = vsub.f32 %v2594_v18, %v2600_v55  ;;  %v2625_v11 = vsub.f32 %v2615_v44, %v2621_v47 }
 0x618   : > { %v2631_v63 = vrot.slane %v2627_v56, 2 }
 0x619   : > { %v2614_v52 = vsub.f32 %v2604_v62, %v2610_v9 }
 0x61a   : > { %v2635_v10 = vadd.f32 %v2631_v63, %v2625_v11 }
 0x61f   : > { %s3597_s10 = spop %3596 }
 0x620   : > { %s2643_s19 = smul.f32 %s3597_s10, %s2639_s2  ;;  %s4810_s12 = spop %3598 }
 0x621   : > { %s2648_s26 = smul.f32 %s3597_s10, %s2644_s22  ;;  %s4812_s0 = spop %3600 }
 0x622   : > { %v2649_v23 = vstv %s2643_s19  ;;  %s3603_s20 = spop %3602  ;;  %s5146_s2 = scalar_lea.vmem [#allocation5], %s4533_s25 }
 0x623   : > { %v2650_v24 = vmul.f32 %v2649_v23, %v2613_v15  ;;  %v2651_v2 = vmul.f32 %v2649_v23, %v2614_v52  ;;  %v2652_v27 = vstv %s2648_s26  ;;  %v2659_v32 = vmul.f32 %v2649_v23, %v2635_v10  ;;  %s2728_s13 = smul.f32 1.0986123, %s3603_s20  ;;  %s3109_s22 = sshll.u32 %s5146_s2, 4  ;;  %s4832_s22 = int_to_ptr.vmem [resolvable:$true] %s3109_s22 }
 0x624   : > { %v2653_v28 = vmul.f32 %v2652_v27, %v2635_v10  ;;  %v2654_v33 = vmul.f32 %v2652_v27, %v2636_v59  ;;  %v2657_v29 = vmul.f32 %v2652_v27, %v2613_v15  ;;  %v2658_v30 = vmul.f32 %v2652_v27, %v2614_v52  ;;  %s3090_s10 = scalar_lea.sflag [#allocation4], %s4533_s25  ;;  %s4106_s19 = scalar_lea.vmem %s4832_s22, 16 }
 0x625   : > { %v2660_v31 = vmul.f32 %v2649_v23, %v2636_v59  ;;  %v2729_v16 = vstv %s2728_s13  ;;  %p4107_p6 = scmp.ne.s32.totalorder %s4832_s22, %s4106_s19  ;;  %s4247_s26 = smov [#allocation5]  }
 0x626   : > { %v2655_v19 = vsub.f32 %v2650_v24, %v2653_v28  ;;  %v2656_v37 = vsub.f32 %v2651_v2, %v2654_v33  ;;  %v2661_v39 = vadd.f32 %v2659_v32, %v2657_v29  ;;  %v2730_v40 = vmul.f32 1.442695, %v2729_v16  ;;  %s4110_s20 = sshll.u32 %s4247_s26, 4  ;;  %s4111_s20 = int_to_ptr.vmem [resolvable:$false] %s4110_s20 }
 0x627   : > { %v2662_v41 = vadd.f32 %v2660_v31, %v2658_v30  ;;  %p4108_p10 = pnand %p4107_p6, %p5147_p9  ;;  %s4112_s13 = scalar_lea.vmem %s4111_s20, 32 }
 0x628   : > { %v2663_v7 = vmul.f32 0.956, %v2655_v19  ;;  %v2664_v20 = vmul.f32 0.956, %v2656_v37  ;;  %v2667_v42 = vmul.f32 0.621, %v2661_v39  ;;  %4068 = vpow2.f32 %v2730_v40  ;;  %p4113_p2 = scmp.lt.s32.totalorder %s4832_s22, %s4111_s20  ;;  %p4114_p3 = scmp.lt.s32.totalorder %s4112_s13, %s4106_s19 }
 0x629   : > { %v2668_v35 = vmul.f32 0.621, %v2662_v41  ;;  %v2671_v36 = vmul.f32 0.272, %v2655_v19  ;;  %v2672_v18 = vmul.f32 0.272, %v2656_v37  ;;  %p4109_p12 = pneg %p4108_p10 }
 0x62a   : > { %v2665_v48 = vadd.f32 %v2663_v7, %v4683_v45  ;;  %v2666_v49 = vadd.f32 %v2664_v20, %v4685_v46  ;;  %v2675_v50 = vmul.f32 0.647, %v2661_v39  ;;  %v2676_v55 = vmul.f32 0.647, %v2662_v41  ;;  %p4115_p4 = por %p4114_p3, %p4113_p2 }
 0x62b   : > { %v2673_v44 = vsub.f32 %v4683_v45, %v2671_v36  ;;  %v2674_v47 = vsub.f32 %v4685_v46, %v2672_v18  ;;  %v2679_v56 = vmul.f32 1.106, %v2655_v19  ;;  %v2680_v60 = vmul.f32 1.106, %v2656_v37 }
 0x62c   : > { %v2669_v61 = vadd.f32 %v2667_v42, %v2665_v48  ;;  %v2670_v0 = vadd.f32 %v2668_v35, %v2666_v49  ;;  %v2683_v1 = vmul.f32 1.703, %v2661_v39  ;;  %v2684_v8 = vmul.f32 1.703, %v2662_v41  ;;  %p4116_p7 = pnand %p4115_p4, %p4109_p12 }
 0x62d   : > { %v2677_v62 = vsub.f32 %v2673_v44, %v2675_v50  ;;  %v2678_v9 = vsub.f32 %v2674_v47, %v2676_v55  ;;  %v2681_v11 = vsub.f32 %v4683_v45, %v2679_v56  ;;  %v2682_v63 = vsub.f32 %v4685_v46, %v2680_v60  ;;  %v4834_v46 = vpop.permute.xlu0 %2955 }
 0x62f   : > { %v2685_v12 = vadd.f32 %v2683_v1, %v2681_v11  ;;  %v2686_v14 = vadd.f32 %v2684_v8, %v2682_v63  ;;  %v2689_v15 = vrot.slane %v2677_v62, 7  ;;  %v2690_v52 = vrot.slane %v2678_v9, 7 }
 0x631   : > { %v2695_v10 = vrot.slane %v2685_v12, 6  ;;  %v2696_v59 = vrot.slane %v2686_v14, 6  ;;  %v2699_v23 = vsel %vm2247_vm0, %v2669_v61, %v2689_v15  ;;  %v2700_v24 = vsel %vm2247_vm0, %v2670_v0, %v2690_v52 }
 0x632   : > { %v4069_v45 = vpop.eup %4068 }
 0x633   : > { %v2701_v2 = vsel %vm2250_vm1, %v2699_v23, %v2695_v10  ;;  %v2702_v27 = vsel %vm2250_vm1, %v2700_v24, %v2696_v59  ;;  %3604 = vpush %v4069_v45 }
 0x634   : > { %4119 = shalt.err (!%p4116_p7)
}
 0x635   : > { %s4120_s18 = scalar_lea.hbm %s4828_s21, 16  ;;  %s4124_s26 = scalar_lea.hbm %s5124_s7, 32 }
 0x636   : > { %p4121_p8 = scmp.ne.s32.totalorder %s4828_s21, %s4120_s18  ;;  %p4125_p1 = scmp.lt.u32.totalorder %s4828_s21, %s5124_s7 }
 0x637   : > { %p4126_p0 = scmp.lt.u32.totalorder %s4124_s26, %s4120_s18  ;;  %p4128_p6 = scmp.lt.u32.totalorder %s4120_s18, %s4828_s21 }
 0x638   : > { %p4122_p11 = pnand %p4121_p8, %p5147_p9 }
 0x639   : > { %p4127_p5 = por %p4126_p0, %p4125_p1 }
 0x63a   : > { %p4123_p13 = pneg %p4122_p11 }
 0x63b   : > { %p4129_p10 = por %p4128_p6, %p4127_p5 }
 0x63d   : > { %p4130_p12 = pnand %p4129_p10, %p4123_p13 }
 0x63f   : > { %4133 = shalt.err (!%p4130_p12)
}
 0x640   : > { %3648 = dma.vmem_to_hbm [thread:$0]  (%p5147_p9), %s4832_s22, 16, %s4828_s21, %s3090_s10   ;;  %v2703_v32 = vmax.f32 %v2701_v2, 0.0  ;;  %v2704_v28 = vmax.f32 %v2702_v27, 0.0  ;;  %3606 = vpush %v4656_v43  ;;  %v2715_v30 = vsub.f32 1.0, %v4522_v13  ;;  %v2716_v43 = vsub.f32 1.0, %v4555_v38 }
 0x641   : > { %s5148_s24 = sshll.u32 %s4315_s9, 4  ;;  %s5149_s23 = scalar_lea.vmem [#allocation6], %s4533_s25  ;;  %3608 = vpush %v4649_v4 }
 0x642   : > { %s4866_s18 = scalar_lea.hbm %s5125_s8, %s5148_s24  ;;  %s3122_s2 = sshll.u32 %s5149_s23, 4  ;;  %v2705_v33 = vmin.f32 %v2703_v32, 1.0  ;;  %v2706_v29 = vmin.f32 %v2704_v28, 1.0  ;;  %3610 = vpush %v4660_v6  ;;  %s4871_s2 = int_to_ptr.vmem [resolvable:$true] %s3122_s2 }
 0x643   : > { %s3094_s9 = scalar_lea.sflag [#allocation7], %s4533_s25  ;;  %s4134_s21 = scalar_lea.vmem %s4871_s2, 16 }
 0x644   : > { %p4135_p2 = scmp.ne.s32.totalorder %s4871_s2, %s4134_s21  ;;  %s4248_s22 = smov [#allocation6]  }
 0x645   : > { %s4138_s10 = sshll.u32 %s4248_s22, 4  ;;  %s4139_s10 = int_to_ptr.vmem [resolvable:$false] %s4138_s10 }
 0x646   : > { %p4136_p3 = pnand %p4135_p2, %p5147_p9  ;;  %s4140_s26 = scalar_lea.vmem %s4139_s10, 32 }
 0x647   : > { %p4141_p7 = scmp.lt.s32.totalorder %s4871_s2, %s4139_s10  ;;  %p4142_p8 = scmp.lt.s32.totalorder %s4140_s26, %s4134_s21 }
 0x648   : > { %p4137_p4 = pneg %p4136_p3 }
 0x649   : > { %p4143_p11 = por %p4142_p8, %p4141_p7 }
 0x64b   : > { %p4144_p13 = pnand %p4143_p11, %p4137_p4 }
 0x64d   : > { %4147 = shalt.err (!%p4144_p13)
}
 0x64e   : > { %s4148_s25 = scalar_lea.hbm %s4866_s18, 16  ;;  %s4152_s19 = scalar_lea.hbm %s5125_s8, 32 }
 0x64f   : > { %p4149_p1 = scmp.ne.s32.totalorder %s4866_s18, %s4148_s25  ;;  %p4153_p6 = scmp.lt.u32.totalorder %s4866_s18, %s5125_s8 }
 0x650   : > { %p4154_p10 = scmp.lt.u32.totalorder %s4152_s19, %s4148_s25  ;;  %p4156_p2 = scmp.lt.u32.totalorder %s4148_s25, %s4866_s18 }
 0x651   : > { %p4150_p0 = pnand %p4149_p1, %p5147_p9 }
 0x652   : > { %p4155_p12 = por %p4154_p10, %p4153_p6 }
 0x653   : > { %p4151_p5 = pneg %p4150_p0 }
 0x654   : > { %p4157_p3 = por %p4156_p2, %p4155_p12 }
 0x656   : > { %p4158_p4 = pnand %p4157_p3, %p4151_p5 }
 0x658   : > { %4161 = shalt.err (!%p4158_p4)
}
 0x659   : > { %3649 = dma.vmem_to_hbm [thread:$0]  (%p5147_p9), %s4871_s2, 16, %s4866_s18, %s3094_s9   ;;  %v2707_v4 = vstv %s4715_s1  ;;  %v2717_v6 = vstv %s4810_s12  ;;  %3612 = vpush %v4654_v17  ;;  %v2972_v31 = vpop.permute.xlu1 %2971  ;;  %v2988_v37 = vpop.permute.xlu0 %2987  ;;  %v2787_v48 = vmul.f32 0.85, %v4773_v57  ;;  %v2804_v49 = vmul.f32 0.8, %v4776_v58 }
 0x65a   : > { %v2708_v16 = vmul.f32 %v2707_v4, %v2705_v33  ;;  %v2709_v19 = vmul.f32 %v2707_v4, %v2706_v29  ;;  %3614 = vpush %v4665_v21  ;;  %v2718_v41 = vmul.f32 %v2717_v6, %v2715_v30  ;;  %v2719_v7 = vmul.f32 %v2717_v6, %v2716_v43 }
 0x65b   : > { %3616 = vpush %v4669_v22  ;;  %v2789_v61 = vadd.f32 0.5, %v2787_v48  ;;  %v2819_v1 = vmul.f32 0.75, %v4773_v57  ;;  %v2820_v8 = vmul.f32 0.75, %v4776_v58  ;;  %v2806_v9 = vadd.f32 0.5, %v2804_v49 }
 0x65c   : > { %v2710_v39 = vadd.f32 %v2708_v16, %v4799_v53  ;;  %v2711_v40 = vadd.f32 %v2709_v19, %v4802_v54  ;;  %3618 = vpush %v4733_v34  ;;  %v2771_v53 = vmul.f32 0.9, %v4773_v57  ;;  %v2772_v54 = vmul.f32 0.9, %v4776_v58 }
 0x65d   : > { %3620 = vpush %v4724_v25  ;;  %v3004_v21 = vpop.permute.xlu1 %3003  ;;  %v3020_v22 = vpop.permute.xlu0 %3019  ;;  %v2791_v10 = vmax.f32 %v2789_v61, 0.0  ;;  %v2821_v23 = vadd.f32 0.5, %v2819_v1  ;;  %v2822_v24 = vadd.f32 0.5, %v2820_v8  ;;  %v2808_v2 = vmax.f32 %v2806_v9, 0.0 }
 0x65e   : > { %v4907_v20 = vadd.f32 %v2718_v41, %v2710_v39  ;;  %v4909_v17 = vadd.f32 %v2719_v7, %v2711_v40  ;;  %3622 = vpush %v4749_v3  ;;  %v2733_v3 = vmax.f32 %v4522_v13, 1e-06  ;;  %v2773_v36 = vadd.f32 0.5, %v2771_v53 }
 0x65f   : > { %3624 = vpush %v4745_v51  ;;  %v2734_v51 = vmax.f32 %v4555_v38, 1e-06  ;;  %v2774_v18 = vadd.f32 0.5, %v2772_v54  ;;  %v2788_v13 = vmul.f32 0.85, %v4776_v58  ;;  %v4943_v19 = vmin.f32 %v2791_v10, 1.0 }
 0x660   : > { %3626 = vpush %v4763_v5  ;;  %4070 = vlog2.f32 %v2733_v3  ;;  %v2755_v5 = vmul.f32 0.95, %v4773_v57  ;;  %v2803_v38 = vmul.f32 0.8, %v4773_v57  ;;  %v2775_v56 = vmax.f32 %v2773_v36, 0.0 }
 0x661   : > { %3628 = vpush %v4765_v26  ;;  %v3036_v25 = vpop.permute.xlu1 %3035  ;;  %v3052_v34 = vpop.permute.xlu0 %3051  ;;  %4072 = vlog2.f32 %v2734_v51  ;;  %v2756_v26 = vmul.f32 0.95, %v4776_v58  ;;  %v2776_v60 = vmax.f32 %v2774_v18, 0.0  ;;  %v2790_v0 = vadd.f32 0.5, %v2788_v13 }
 0x662   : > { %3630 = vpush %v4834_v46  ;;  %v2757_v42 = vadd.f32 0.5, %v2755_v5  ;;  %v2805_v62 = vadd.f32 0.5, %v2803_v38  ;;  %v4932_v15 = vmin.f32 %v2775_v56, 1.0  ;;  %v2835_v27 = vmul.f32 0.7, %v4773_v57 }
 0x663   : > { %3632 = vpush %v2972_v31  ;;  %v2758_v35 = vadd.f32 0.5, %v2756_v26  ;;  %v4934_v52 = vmin.f32 %v2776_v60, 1.0  ;;  %v2792_v59 = vmax.f32 %v2790_v0, 0.0  ;;  %v2836_v33 = vmul.f32 0.7, %v4776_v58 }
 0x664   : > { %3634 = vpush %v2988_v37  ;;  %v2759_v44 = vmax.f32 %v2757_v42, 0.0  ;;  %s3605_s15 = spop %3604  ;;  %v2807_v46 = vmax.f32 %v2805_v62, 0.0  ;;  %v2851_v29 = vmul.f32 0.65, %v4773_v57  ;;  %v2852_v30 = vmul.f32 0.65, %v4776_v58 }
 0x665   : > { %3636 = vpush %v3004_v21  ;;  %v2760_v47 = vmax.f32 %v2758_v35, 0.0  ;;  %v2739_v45 = vstv %s3605_s15  ;;  %v2867_v43 = vmul.f32 0.6, %v4773_v57  ;;  %v2868_v4 = vmul.f32 0.6, %v4776_v58 }
 0x666   : > { %3638 = vpush %v3020_v22  ;;  %v4928_v12 = vmin.f32 %v2759_v44, 1.0  ;;  %v2883_v16 = vmul.f32 0.55, %v4773_v57  ;;  %v4945_v37 = vmin.f32 %v2792_v59, 1.0  ;;  %v2823_v39 = vmax.f32 %v2821_v23, 0.0 }
 0x667   : > { %3640 = vpush %v3036_v25  ;;  %v4930_v14 = vmin.f32 %v2760_v47, 1.0  ;;  %v2884_v40 = vmul.f32 0.55, %v4776_v58  ;;  %v2824_v41 = vmax.f32 %v2822_v24, 0.0  ;;  %v2837_v7 = vadd.f32 0.5, %v2835_v27 }
 0x668   : > { %3642 = vpush %v3052_v34  ;;  %v2838_v21 = vadd.f32 0.5, %v2836_v33  ;;  %v2853_v22 = vadd.f32 0.5, %v2851_v29  ;;  %v2854_v25 = vadd.f32 0.5, %v2852_v30  ;;  %v2869_v34 = vadd.f32 0.5, %v2867_v43 }
 0x669   : > { %v2870_v3 = vadd.f32 0.5, %v2868_v4  ;;  %v2885_v51 = vadd.f32 0.5, %v2883_v16  ;;  %v2899_v5 = vmul.f32 0.5, %v4773_v57  ;;  %v2900_v26 = vmul.f32 0.5, %v4776_v58 }
 0x66a   : > { %v4071_v50 = vpop.eup %4070  ;;  %v4950_v53 = vmin.f32 %v2807_v46, 1.0  ;;  %v2886_v54 = vadd.f32 0.5, %v2884_v40  ;;  %v2915_v42 = vmul.f32 0.45, %v4773_v57  ;;  %v2916_v35 = vmul.f32 0.45, %v4776_v58 }
 0x66b   : > { %v4073_v55 = vpop.eup %4072  ;;  %v2736_v11 = vmul.f32 0.6931472, %v4071_v50  ;;  %v4954_v36 = vmin.f32 %v2808_v2, 1.0  ;;  %v2839_v18 = vmax.f32 %v2837_v7, 0.0  ;;  %v2840_v48 = vmax.f32 %v2838_v21, 0.0 }
 0x66c   : > { %v2738_v63 = vmul.f32 0.6931472, %v4073_v55  ;;  %v2931_v13 = vmul.f32 0.4, %v4773_v57  ;;  %v2855_v38 = vmax.f32 %v2853_v22, 0.0  ;;  %v2856_v49 = vmax.f32 %v2854_v25, 0.0 }
 0x66d   : > { %v2740_v32 = vmul.f32 %v2739_v45, %v2736_v11  ;;  %v2871_v50 = vmax.f32 %v2869_v34, 0.0  ;;  %v2932_v55 = vmul.f32 0.4, %v4776_v58  ;;  %v2872_v44 = vmax.f32 %v2870_v3, 0.0 }
 0x66e   : > { %v2741_v28 = vmul.f32 %v2739_v45, %v2738_v63  ;;  %v2887_v47 = vmax.f32 %v2885_v51, 0.0  ;;  %v2901_v56 = vadd.f32 0.5, %v2899_v5  ;;  %v2902_v60 = vadd.f32 0.5, %v2900_v26 }
 0x66f   : > { %v2742_v6 = vmul.f32 1.442695, %v2740_v32  ;;  %v4958_v61 = vmin.f32 %v2823_v39, 1.0  ;;  %v2888_v0 = vmax.f32 %v2886_v54, 0.0  ;;  %v2917_v1 = vadd.f32 0.5, %v2915_v42 }
 0x670   : > { %v2744_v31 = vmul.f32 1.442695, %v2741_v28  ;;  %v2918_v8 = vadd.f32 0.5, %v2916_v35  ;;  %v4960_v62 = vmin.f32 %v2824_v41, 1.0  ;;  %v4962_v9 = vmin.f32 %v2839_v18, 1.0 }
 0x671   : > { %4074 = vpow2.f32 %v2742_v6  ;;  %v4964_v11 = vmin.f32 %v2840_v48, 1.0  ;;  %v2933_v63 = vadd.f32 0.5, %v2931_v13  ;;  %v4966_v10 = vmin.f32 %v2855_v38, 1.0  ;;  %s4976_s1 = spop %3606 }
 0x672   : > { %4076 = vpow2.f32 %v2744_v31  ;;  %v4968_v59 = vmin.f32 %v2856_v49, 1.0  ;;  %v4970_v23 = vmin.f32 %v2871_v50, 1.0  ;;  %v2934_v24 = vadd.f32 0.5, %v2932_v55  ;;  %s4983_s12 = spop %3608 }
 0x673   : > { %v4972_v46 = vmin.f32 %v2872_v44, 1.0  ;;  %v4974_v2 = vmin.f32 %v2887_v47, 1.0  ;;  %v2903_v27 = vmax.f32 %v2901_v56, 0.0  ;;  %v2904_v32 = vmax.f32 %v2902_v60, 0.0  ;;  %s4991_s18 = spop %3610 }
 0x674   : > { %v4978_v29 = vmin.f32 %v2888_v0, 1.0  ;;  %v2919_v30 = vmax.f32 %v2917_v1, 0.0  ;;  %v2920_v43 = vmax.f32 %v2918_v8, 0.0  ;;  %v2935_v6 = vmax.f32 %v2933_v63, 0.0 }
 0x675   : > { %v2947_v31 = vmul.f32 0.35, %v4773_v57  ;;  %v2979_v16 = vmul.f32 0.25, %v4773_v57  ;;  %v2750_v39 = vstv %s4812_s0  ;;  %v2936_v41 = vmax.f32 %v2934_v24, 0.0 }
 0x676   : > { %v2948_v7 = vmul.f32 0.35, %v4776_v58  ;;  %v2766_v22 = vstv %s4976_s1  ;;  %v4987_v25 = vmin.f32 %v2903_v27, 1.0  ;;  %v4989_v34 = vmin.f32 %v2904_v32, 1.0 }
 0x677   : > { %v4993_v51 = vmin.f32 %v2919_v30, 1.0  ;;  %v4995_v5 = vmin.f32 %v2920_v43, 1.0  ;;  %v2963_v26 = vmul.f32 0.3, %v4773_v57  ;;  %v2782_v42 = vstv %s4983_s12 }
 0x678   : > { %v4999_v35 = vmin.f32 %v2935_v6, 1.0  ;;  %v2949_v18 = vadd.f32 0.5, %v2947_v31  ;;  %v2767_v13 = vmul.f32 %v2766_v22, %v4928_v12  ;;  %v5005_v38 = vmin.f32 %v2936_v41, 1.0 }
 0x679   : > { %v2950_v49 = vadd.f32 0.5, %v2948_v7  ;;  %v2768_v55 = vmul.f32 %v2766_v22, %v4930_v14  ;;  %v2798_v44 = vstv %s4991_s18  ;;  %v2964_v47 = vmul.f32 0.3, %v4776_v58  ;;  %s5150_s18 = sshll.u32 %s4379_s17, 3 }
 0x67a   : > { %v2783_v60 = vmul.f32 %v2782_v42, %v4932_v15  ;;  %v2980_v12 = vmul.f32 0.25, %v4776_v58  ;;  %v2784_v1 = vmul.f32 %v2782_v42, %v4934_v52  ;;  %v2951_v63 = vmax.f32 %v2949_v18, 0.0 }
 0x67b   : > { %v4075_v45 = vpop.eup %4074  ;;  %v2799_v14 = vmul.f32 %v2798_v44, %v4943_v19  ;;  %v2952_v24 = vmax.f32 %v2950_v49, 0.0  ;;  %v2800_v27 = vmul.f32 %v2798_v44, %v4945_v37  ;;  %v2995_v18 = vmul.f32 0.2, %v4773_v57 }
 0x67c   : > { %v4077_v28 = vpop.eup %4076  ;;  %v2746_v33 = vmax.f32 %v4075_v45, 0.0  ;;  %v2981_v45 = vadd.f32 0.5, %v2979_v16  ;;  %v2982_v43 = vadd.f32 0.5, %v2980_v12  ;;  %v5027_v31 = vmin.f32 %v2951_v63, 1.0 }
 0x67d   : > { %v2747_v4 = vmax.f32 %v4077_v28, 0.0  ;;  %v2966_v28 = vadd.f32 0.5, %v2964_v47  ;;  %v5032_v37 = vmin.f32 %v2952_v24, 1.0  ;;  %v3011_v44 = vmul.f32 0.15, %v4773_v57 }
 0x67e   : > { %v2748_v40 = vmin.f32 %v2746_v33, 1.0 }
 0x67f   : > { %v2749_v21 = vmin.f32 %v2747_v4, 1.0  ;;  %v3013_v24 = vadd.f32 0.5, %v3011_v44 }
 0x680   : > { %v2751_v3 = vmul.f32 %v2750_v39, %v2748_v40 }
 0x681   : > { %v2752_v54 = vmul.f32 %v2750_v39, %v2749_v21  ;;  %v2968_v21 = vmax.f32 %v2966_v28, 0.0 }
 0x682   : > { %v2753_v48 = vadd.f32 %v2751_v3, %v4907_v20  ;;  %v2965_v20 = vadd.f32 0.5, %v2963_v26 }
 0x683   : > { %v2754_v50 = vadd.f32 %v2752_v54, %v4909_v17 }
 0x684   : > { %v2769_v56 = vadd.f32 %v2767_v13, %v2753_v48  ;;  %v2967_v52 = vmax.f32 %v2965_v20, 0.0 }
 0x685   : > { %v2770_v0 = vadd.f32 %v2768_v55, %v2754_v50 }
 0x686   : > { %v2785_v17 = vadd.f32 %v2783_v60, %v2769_v56  ;;  %v5039_v3 = vmin.f32 %v2967_v52, 1.0 }
 0x687   : > { %v2786_v15 = vadd.f32 %v2784_v1, %v2770_v0  ;;  %v2997_v0 = vadd.f32 0.5, %v2995_v18 }
 0x688   : > { %v2801_v33 = vadd.f32 %v2799_v14, %v2785_v17 }
 0x689   : > { %v2802_v4 = vadd.f32 %v2800_v27, %v2786_v15 }
 0x68a   : > { %s5003_s0 = spop %3612 }
 0x68b   : > { %s5012_s2 = spop %3614  ;;  %v2814_v8 = vstv %s5003_s0 }
 0x68c   : > { %s5018_s9 = spop %3616  ;;  %v2830_v32 = vstv %s5012_s2  ;;  %v2815_v30 = vmul.f32 %v2814_v8, %v4950_v53  ;;  %v2816_v19 = vmul.f32 %v2814_v8, %v4954_v36  ;;  %v2983_v53 = vmax.f32 %v2981_v45, 0.0 }
 0x68d   : > { %s5023_s21 = spop %3618  ;;  %v2846_v6 = vstv %s5018_s9  ;;  %v2831_v39 = vmul.f32 %v2830_v32, %v4958_v61  ;;  %v2832_v41 = vmul.f32 %v2830_v32, %v4960_v62  ;;  %v2984_v61 = vmax.f32 %v2982_v43, 0.0  ;;  %s356_s9 = scalar_lea.vmem %s5123_s6, %s5150_s18 }
 0x68e   : > { %v2817_v16 = vadd.f32 %v2815_v30, %v2801_v33  ;;  %s5030_s22 = spop %3620  ;;  %v2818_v40 = vadd.f32 %v2816_v19, %v2802_v4  ;;  %v2862_v7 = vstv %s5023_s21  ;;  %v2847_v36 = vmul.f32 %v2846_v6, %v4962_v9 }
 0x68f   : > { %s5037_s10 = spop %3622  ;;  %v2848_v54 = vmul.f32 %v2846_v6, %v4964_v11  ;;  %v2878_v42 = vstv %s5030_s22  ;;  %v2863_v62 = vmul.f32 %v2862_v7, %v4966_v10  ;;  %v5047_v13 = vmin.f32 %v2983_v53, 1.0 }
 0x690   : > { %v2833_v22 = vadd.f32 %v2831_v39, %v2817_v16  ;;  %v2834_v26 = vadd.f32 %v2832_v41, %v2818_v40  ;;  %s5045_s26 = spop %3624  ;;  %v2996_v9 = vmul.f32 0.2, %v4776_v58  ;;  %v2864_v50 = vmul.f32 %v2862_v7, %v4968_v59 }
 0x691   : > { %v2894_v55 = vstv %s5037_s10  ;;  %v2879_v47 = vmul.f32 %v2878_v42, %v4970_v23  ;;  %s5054_s25 = spop %3626  ;;  %v2970_v10 = vmin.f32 %v2968_v21, 1.0  ;;  %v5056_v56 = vmin.f32 %v2984_v61, 1.0 }
 0x692   : > { %v2849_v48 = vadd.f32 %v2847_v36, %v2833_v22  ;;  %v2850_v49 = vadd.f32 %v2848_v54, %v2834_v26  ;;  %v2880_v20 = vmul.f32 %v2878_v42, %v4972_v46  ;;  %v2910_v12 = vstv %s5045_s26  ;;  %s5061_s20 = spop %3628 }
 0x693   : > { %v2895_v59 = vmul.f32 %v2894_v55, %v4974_v2  ;;  %v2998_v8 = vadd.f32 0.5, %v2996_v9  ;;  %v3012_v23 = vmul.f32 0.15, %v4776_v58  ;;  %v2896_v17 = vmul.f32 %v2894_v55, %v4978_v29  ;;  %s5067_s24 = spop %3630 }
 0x694   : > { %v2865_v11 = vadd.f32 %v2863_v62, %v2849_v48  ;;  %v2866_v60 = vadd.f32 %v2864_v50, %v2850_v49  ;;  %v2926_v14 = vstv %s5054_s25  ;;  %v2911_v15 = vmul.f32 %v2910_v12, %v4987_v25  ;;  %s5074_s19 = spop %3632 }
 0x695   : > { %v3027_v46 = vmul.f32 0.1, %v4773_v57  ;;  %v3028_v2 = vmul.f32 0.1, %v4776_v58  ;;  %v2912_v32 = vmul.f32 %v2910_v12, %v4989_v34  ;;  %v2942_v28 = vstv %s5061_s20  ;;  %s5081_s13 = spop %3634 }
 0x696   : > { %v2881_v1 = vadd.f32 %v2879_v47, %v2865_v11  ;;  %v2882_v63 = vadd.f32 %v2880_v20, %v2866_v60  ;;  %v2999_v33 = vmax.f32 %v2997_v0, 0.0  ;;  %v2927_v29 = vmul.f32 %v2926_v14, %v4993_v51  ;;  %s3637_s23 = spop %3636 }
 0x697   : > { %v3014_v52 = vadd.f32 0.5, %v3012_v23  ;;  %v3043_v25 = vmul.f32 0.05, %v4773_v57  ;;  %v2928_v4 = vmul.f32 %v2926_v14, %v4995_v5  ;;  %v2958_v19 = vstv %s5067_s24  ;;  %s3639_s15 = spop %3638 }
 0x698   : > { %v2897_v45 = vadd.f32 %v2895_v59, %v2881_v1  ;;  %v2898_v27 = vadd.f32 %v2896_v17, %v2882_v63  ;;  %v3044_v6 = vmul.f32 0.05, %v4776_v58  ;;  %v2943_v34 = vmul.f32 %v2942_v28, %v4999_v35  ;;  %s3641_s1 = spop %3640 }
 0x699   : > { %v3000_v39 = vmax.f32 %v2998_v8, 0.0  ;;  %v3015_v51 = vmax.f32 %v3013_v24, 0.0  ;;  %v2944_v40 = vmul.f32 %v2942_v28, %v5005_v38  ;;  %v2974_v41 = vstv %s5074_s19  ;;  %s3643_s12 = spop %3642 }
 0x69a   : > { %v2913_v30 = vadd.f32 %v2911_v15, %v2897_v45  ;;  %v2914_v43 = vadd.f32 %v2912_v32, %v2898_v27  ;;  %v3029_v7 = vadd.f32 0.5, %v3027_v46  ;;  %v2959_v21 = vmul.f32 %v2958_v19, %v5027_v31 }
 0x69b   : > { %v3001_v5 = vmin.f32 %v2999_v33, 1.0  ;;  %v3030_v22 = vadd.f32 0.5, %v3028_v2  ;;  %v2960_v36 = vmul.f32 %v2958_v19, %v5032_v37  ;;  %v2990_v35 = vstv %s5081_s13 }
 0x69c   : > { %v2929_v16 = vadd.f32 %v2927_v29, %v2913_v30  ;;  %v2930_v53 = vadd.f32 %v2928_v4, %v2914_v43  ;;  %v3016_v61 = vmax.f32 %v3014_v52, 0.0  ;;  %v2975_v54 = vmul.f32 %v2974_v41, %v5039_v3 }
 0x69d   : > { %v3045_v42 = vadd.f32 0.5, %v3043_v25  ;;  %v3046_v18 = vadd.f32 0.5, %v3044_v6  ;;  %v2976_v48 = vmul.f32 %v2974_v41, %v2970_v10  ;;  %v3002_v62 = vmin.f32 %v3000_v39, 1.0 }
 0x69e   : > { %v2945_v57 = vadd.f32 %v2943_v34, %v2929_v16  ;;  %v2946_v58 = vadd.f32 %v2944_v40, %v2930_v53  ;;  %v3006_v9 = vstv %s3637_s23  ;;  %v2991_v31 = vmul.f32 %v2990_v35, %v5047_v13 }
 0x69f   : > { %v3017_v50 = vmin.f32 %v3015_v51, 1.0  ;;  %v3031_v55 = vmax.f32 %v3029_v7, 0.0  ;;  %v2992_v37 = vmul.f32 %v2990_v35, %v5056_v56  ;;  %v3022_v11 = vstv %s3639_s15 }
 0x6a0   : > { %v2961_v26 = vadd.f32 %v2959_v21, %v2945_v57  ;;  %v2962_v38 = vadd.f32 %v2960_v36, %v2946_v58  ;;  %v3032_v47 = vmax.f32 %v3030_v22, 0.0  ;;  %v3007_v3 = vmul.f32 %v3006_v9, %v3001_v5 }
 0x6a1   : > { %v3018_v20 = vmin.f32 %v3016_v61, 1.0  ;;  %v3047_v12 = vmax.f32 %v3045_v42, 0.0  ;;  %v3008_v10 = vmul.f32 %v3006_v9, %v3002_v62  ;;  %v3038_v1 = vstv %s3641_s1 }
 0x6a2   : > { %v2977_v49 = vadd.f32 %v2975_v54, %v2961_v26  ;;  %v2978_v44 = vadd.f32 %v2976_v48, %v2962_v38  ;;  %v3048_v59 = vmax.f32 %v3046_v18, 0.0  ;;  %v3023_v23 = vmul.f32 %v3022_v11, %v3017_v50 }
 0x6a3   : > { %v3033_v13 = vmin.f32 %v3031_v55, 1.0  ;;  %v3024_v17 = vmul.f32 %v3022_v11, %v3018_v20  ;;  %v3034_v14 = vmin.f32 %v3032_v47, 1.0  ;;  %v3054_v24 = vstv %s3643_s12 }
 0x6a4   : > { %v2993_v60 = vadd.f32 %v2991_v31, %v2977_v49  ;;  %v2994_v0 = vadd.f32 %v2992_v37, %v2978_v44  ;;  %v3049_v15 = vmin.f32 %v3047_v12, 1.0  ;;  %v3050_v27 = vmin.f32 %v3048_v59, 1.0 }
 0x6a5   : > { %v3039_v56 = vmul.f32 %v3038_v1, %v3033_v13  ;;  %v3040_v2 = vmul.f32 %v3038_v1, %v3034_v14 }
 0x6a6   : > { %v3009_v8 = vadd.f32 %v3007_v3, %v2993_v60  ;;  %v3010_v63 = vadd.f32 %v3008_v10, %v2994_v0  ;;  %v3055_v28 = vmul.f32 %v3054_v24, %v3049_v15  ;;  %v3056_v30 = vmul.f32 %v3054_v24, %v3050_v27 }
 0x6a8   : > { %v3025_v45 = vadd.f32 %v3023_v23, %v3009_v8  ;;  %v3026_v46 = vadd.f32 %v3024_v17, %v3010_v63 }
 0x6aa   : > { %v3041_v32 = vadd.f32 %v3039_v56, %v3025_v45  ;;  %v3042_v33 = vadd.f32 %v3040_v2, %v3026_v46 }
 0x6ac   : > { %v3057_v29 = vadd.f32 %v3055_v28, %v3041_v32  ;;  %v3058_v52 = vadd.f32 %v3056_v30, %v3042_v33 }
 0x6ae   : > { %v3059_v25 = vmax.f32 %v3057_v29, 0.0  ;;  %v3060_v43 = vmax.f32 %v3058_v52, 0.0 }
 0x6b0   : > { %v3061_v4 = vmin.f32 %v3059_v25, 1.0  ;;  %v3062_v19 = vmin.f32 %v3060_v43, 1.0 }
 0x6b2   : > { %v3489_v6 = vadd.f32 -0.485, %v3061_v4  ;;  %v3491_v16 = vadd.f32 -0.456, %v3061_v4  ;;  %v3493_v34 = vadd.f32 -0.406, %v3061_v4 }
 0x6b3   : > { %v3490_v39 = vadd.f32 -0.485, %v3062_v19  ;;  %v3492_v51 = vadd.f32 -0.456, %v3062_v19  ;;  %v3494_v53 = vadd.f32 -0.406, %v3062_v19 }
 0x6b4   : > { %v3065_v40 = vmul.f32 4.366812, %v3489_v6  ;;  %v3069_v41 = vmul.f32 4.464286, %v3491_v16  ;;  %v3073_v7 = vmul.f32 4.4444447, %v3493_v34 }
 0x6b5   : > { %v3066_v57 = vmul.f32 4.366812, %v3490_v39  ;;  %v3070_v21 = vmul.f32 4.464286, %v3492_v51  ;;  %v3074_v5 = vmul.f32 4.4444447, %v3494_v53 }
 0x6b6   : > { %v3075_v22 = vsel %vm2247_vm0, %v3065_v40, %v3069_v41 }
 0x6b7   : > { %v3076_v58 = vsel %vm2247_vm0, %v3066_v57, %v3070_v21  ;;  %v3077_v36 = vsel %vm2250_vm1, %v3075_v22, %v3073_v7 }
 0x6b8   : > { %v3078_v35 = vsel %vm2250_vm1, %v3076_v58, %v3074_v5 }
 0x6b9   : > { %v3081_v61 = vcombine.low %v3077_v36, %v3078_v35 }
 0x6bb   : > { %3083 = vst [vmem:[%s356_s9] sm:$0x77] %v3081_v61 }
 0x6bc PF: > { %p3665_p9 = scmp.ge.s32.totalorder %s4204_s30, 2  ;;  %s3142_s21 = sand.u32 1, %s4192_s27  }
 0x6bd   : > { %p5151_p7 = scmp.ne.s32.totalorder %s5137_s16, 0  ;;  %s3143_s22 = scalar_lea.sflag [#allocation4], %s3142_s21 }
 0x6bf   : > { %p3657_p8 = pnand %p3665_p9, %p5151_p7 }
 0x6c1   : > { %4183 = dma.done.wait (!%p3657_p8), %s3143_s22, 16  }
 0x6c2   : > { %4185 = vsyncadd (!%p3657_p8), %s3143_s22, 4294967280  ;;  %s3151_s17 = scalar_lea.sflag [#allocation7], %s3142_s21 }
 0x6c3   : > { %4187 = dma.done.wait (!%p3657_p8), %s3151_s17, 16  }
 0x6c4   : > { %4189 = vsyncadd (!%p3657_p8), %s3151_s17, 4294967280  ;;  %p23_p11 = scmp.ge.s32.totalorder %s4319_s11, 4   ;;  %s5152_s27 = smov %s4196_s28 }
 0x6c5   : > { %s5153_s28 = smov %s4200_s29  ;;  %s5154_s29 = smov %s4330_s14 }
 0x6c6   : > { %s5155_s30 = smov %s4319_s11  ;;  %25 = sbr.rel (!%p23_p11) target bundleno = 10 (0xa), region = 116 }
 0x6cd   :  { %3155 = vsyncpa [#allocation3], 1 }
 0x6ce   :  { %3157 = vsyncpa [#allocation3 + $0x1], 1 }
 0x6cf   :  { %3158 = vsyncpa [#allocation4], 1 }
 0x6d0   :  { %3160 = vsyncpa [#allocation4 + $0x1], 1 }
 0x6d1   :  { %3161 = vsyncpa [#allocation7], 1 }
 0x6d2   :  { %3163 = vsyncpa [#allocation7 + $0x1], 1 }

</bundles_post_ra>
